<compile_context>
chip_gen: v5e
topology: v5e:2x2
jax: 0.10.0
libtpu: 0.0.40
codegen_flags: <defaults>
</compile_context>

<pallas_src>
import functools

import numpy as np
import jax
import jax.numpy as jnp
from jax import lax
from jax.experimental import pallas as pl
from jax.experimental.pallas import tpu as pltpu

# ----------------------------- "config" / "av" ------------------------------
MAX_QUERY_SUBGRAPH_SIZE = 8
MAX_CORPUS_SUBGRAPH_SIZE = 8
MAX_SET_SIZE = max(MAX_QUERY_SUBGRAPH_SIZE, MAX_CORPUS_SUBGRAPH_SIZE)

NODE_FEATURE_DIM = 8          # encoder.node_feature_dim
EDGE_FEATURE_DIM = 4          # encoder.edge_feature_dim (pass-through)
NODE_STATE_DIM = 32           # encoder.node_hidden_sizes = [D] (= transform_dim)
EDGE_HIDDEN = 2 * NODE_STATE_DIM   # prop edge_hidden_sizes = [2D, 2D]
N_PROP_LAYERS = 3             # graph_embedding_net.n_prop_layers (shared params)
OUT_LANES = 128               # lane-dense score row; valid scores in lanes [0,B)

PARAM_ORDER = [
    "w_enc", "b_enc",
    "wm1_from", "wm1_to", "wm1_edge", "bm1", "wm2", "bm2",
    "wxr", "wxz", "wxn", "bxr", "bxz", "bxn",
    "whr", "whz", "whn", "bhr", "bhz", "bhn",
]


# ------------------------------- Pallas kernel --------------------------------
def gmn_colbert_kernel(
    node_feat_ref, edge_feat_ref, src_oh_ref, dst_oh_ref, dst_ohT_ref,
    sel_ref, mask_ref, pool_ref,
    w_enc_ref, b_enc_ref, wm1_from_ref, wm1_to_ref, wm1_edge_ref, bm1_ref,
    wm2wx_ref, deg_bias_ref, wh_ref, bh_ref,
    out_ref, edge_proj_ref,
    *, n_prop_layers, n_pairs, set_size, state_dim):
  f32 = jnp.float32
  bf16 = jnp.bfloat16
  dot = lambda a, b: jnp.dot(a, b, preferred_element_type=f32)
  D = state_dim
  QS = n_pairs * set_size

  # --- GraphEncoder: single Linear on node features (no activation) ---
  h = dot(node_feat_ref[...], w_enc_ref[...]) + b_enc_ref[...]          # (N, D)

  # Edge projection is layer-invariant (bm1 folded in). Park it in VMEM
  # scratch and re-read each layer instead of pinning it in vregs across the
  # fully unrolled loop.
  edge_proj_ref[...] = dot(edge_feat_ref[...], wm1_edge_ref[...]) + bm1_ref[...]

  # --- unrolled propagation layers (shared params) ---
  for _ in range(n_prop_layers):
    # Re-associated first message layer: project node states once, then
    # gather-as-matmul with the bf16 incidence matrices (no lane concat).
    hf = dot(h, wm1_from_ref[...]).astype(bf16)                         # (N, H)
    ht = dot(h, wm1_to_ref[...]).astype(bf16)                           # (N, H)
    pre = (dot(src_oh_ref[...], hf) + dot(dst_oh_ref[...], ht)
           + edge_proj_ref[...])                                        # (2E, H)
    relu_b = jnp.maximum(pre, 0.0).astype(bf16)
    # Segment-sum of the *hidden* activations; wm2/bm2 are folded through:
    #   agg @ wx + bx == aggH @ (wm2@wx) + indeg[:,None]*(bm2@wx) + bx
    agg_h = dot(dst_ohT_ref[...], relu_b)                               # (N, H)
    gx = dot(agg_h, wm2wx_ref[...]) + deg_bias_ref[...]                 # (N, 3D)
    gh = dot(h, wh_ref[...]) + bh_ref[...]                              # (N, 3D)
    # GRU update, torch gate order r, z, n; each slice taken exactly once.
    gxr, gxz, gxn = gx[:, :D], gx[:, D:2 * D], gx[:, 2 * D:]
    ghr, ghz, ghn = gh[:, :D], gh[:, D:2 * D], gh[:, 2 * D:]
    r = jax.nn.sigmoid(gxr + ghr)
    z = jax.nn.sigmoid(gxz + ghz)
    n_gate = jnp.tanh(gxn + r * ghn)
    h = (1.0 - z) * n_gate + z * h

  # --- ColBERT scoring, flattened into one masked matmul ---
  # sel rows [0,QS) pick padded query graphs, [QS,2QS) padded corpus graphs;
  # pad rows are all-zero (so padded q rows / c cols score exactly 0, matching
  # the zero-padding reference).
  stacked = dot(sel_ref[...], h.astype(bf16))                           # (2QS, D)
  q_flat = stacked[:QS]
  c_flat = stacked[QS:]
  sim = lax.dot_general(q_flat, c_flat, (((1,), (1,)), ((), ())),
                        preferred_element_type=f32)                     # (QS, QS)
  row_max = jnp.max(sim + mask_ref[...], axis=-1, keepdims=True)        # (QS, 1)
  # Per-pair sum emitted as a single lane-dense (1, OUT_LANES) row.
  out_ref[...] = jnp.sum(pool_ref[...] * row_max, axis=0, keepdims=True)


# --------------------------------- glue --------------------------------------
def build_selection_matrix(batch_data_sizes, n_nodes):
  """Static bf16 (2*B*S, N) matrix implementing torch.split + F.pad + stack."""
  B = len(batch_data_sizes)
  S = MAX_SET_SIZE
  sizes_flat = [s for pair in batch_data_sizes for s in pair]
  offsets = np.concatenate([[0], np.cumsum(sizes_flat)])
  sel = np.zeros((2 * B * S, n_nodes), np.float32)
  for g, sz in enumerate(sizes_flat):
    b, is_c = g // 2, g % 2
    row0 = (is_c * B + b) * S            # queries first, then corpus graphs
    for i in range(sz):
      sel[row0 + i, int(offsets[g]) + i] = 1.0
  return jnp.asarray(sel, jnp.bfloat16)


def build_colbert_mask_and_pool(B, S, out_lanes):
  """Block-diagonal mask (0 in-block, -1e30 off-block) and per-pair pooling."""
  QS = B * S
  pair = np.arange(QS) // S
  mask = np.where(pair[:, None] == pair[None, :], 0.0, -1e30).astype(np.float32)
  pool = np.zeros((QS, out_lanes), np.float32)
  pool[np.arange(QS), pair] = 1.0
  return jnp.asarray(mask), jnp.asarray(pool)


def split_pad_stack(node_enc, batch_data_sizes):
  """torch.split + F.pad + stack equivalent (used by the pure-JAX reference)."""
  sizes_flat = [s for pair in batch_data_sizes for s in pair]
  offsets = np.concatenate([[0], np.cumsum(sizes_flat)])
  padded = []
  for i, sz in enumerate(sizes_flat):
    g = node_enc[int(offsets[i]):int(offsets[i]) + sz]
    padded.append(jnp.pad(g, ((0, MAX_SET_SIZE - sz), (0, 0))))
  q_stack = jnp.stack(padded[0::2])   # (B, S, D)
  c_stack = jnp.stack(padded[1::2])   # (B, S, D)
  return q_stack, c_stack


def gmn_embed_with_colbert_scores_forward(params, node_features, edge_features,
                                          from_idx, to_idx, graph_idx,
                                          batch_data_sizes, batch_adj=None):
  # batch_adj is unused by the torch forward as well; graph_idx is consistent
  # with batch_data_sizes (splitting uses the static sizes).
  del graph_idx, batch_adj
  N = node_features.shape[0]
  D = NODE_STATE_DIM
  B = len(batch_data_sizes)
  S = MAX_SET_SIZE
  assert B <= OUT_LANES

  # Stacked directed edges: forward (from->to) then reverse (to->from); the
  # reverse direction shares message params, so it is just 2E directed edges.
  src_idx = jnp.concatenate([from_idx, to_idx])
  dst_idx = jnp.concatenate([to_idx, from_idx])
  # 0/1 incidence matrices in bf16 (exact; halves VMEM/vld traffic, matches
  # default MXU operand truncation). dst_oh_T is pre-transposed host-side so
  # the in-kernel aggregation is a plain matmul (no vxpose).
  src_oh = jax.nn.one_hot(src_idx, N, dtype=jnp.bfloat16)     # (2E, N)
  dst_oh = jax.nn.one_hot(dst_idx, N, dtype=jnp.bfloat16)     # (2E, N)
  dst_ohT = dst_oh.T                                          # (N, 2E)
  edge_feat2 = jnp.concatenate([edge_features, edge_features], axis=0)  # (2E, Fe)

  sel = build_selection_matrix(batch_data_sizes, N)           # (2*B*S, N) bf16
  mask, pool = build_colbert_mask_and_pool(B, S, OUT_LANES)

  # Host-side parameter fusion / algebraic folds (one-time, HIGHEST precision).
  p = params
  hi = lax.Precision.HIGHEST
  wx = jnp.concatenate([p["wxr"], p["wxz"], p["wxn"]], axis=1)     # (2D, 3D)
  bx = jnp.concatenate([p["bxr"], p["bxz"], p["bxn"]], axis=1)     # (1, 3D)
  wh = jnp.concatenate([p["whr"], p["whz"], p["whn"]], axis=1)     # (D, 3D)
  bh = jnp.concatenate([p["bhr"], p["bhz"], p["bhn"]], axis=1)     # (1, 3D)
  wm2wx = jnp.dot(p["wm2"], wx, precision=hi)                      # (H, 3D)
  bm2wx = jnp.dot(p["bm2"], wx, precision=hi)                      # (1, 3D)
  deg = jax.ops.segment_sum(jnp.ones(src_idx.shape, jnp.float32), dst_idx,
                            num_segments=N)                        # (N,)
  deg_bias = deg[:, None] * bm2wx + bx                             # (N, 3D)

  args = [node_features, edge_feat2, src_oh, dst_oh, dst_ohT, sel, mask, pool,
          p["w_enc"], p["b_enc"], p["wm1_from"], p["wm1_to"], p["wm1_edge"],
          p["bm1"], wm2wx, deg_bias, wh, bh]

  out = pl.pallas_call(
      functools.partial(gmn_colbert_kernel, n_prop_layers=N_PROP_LAYERS,
                        n_pairs=B, set_size=S, state_dim=D),
      out_shape=jax.ShapeDtypeStruct((1, OUT_LANES), jnp.float32),
      in_specs=[pl.BlockSpec(memory_space=pltpu.MemorySpace.VMEM)] * len(args),
      out_specs=pl.BlockSpec(memory_space=pltpu.MemorySpace.VMEM),
      scratch_shapes=[pltpu.VMEM((src_idx.shape[0], EDGE_HIDDEN), jnp.float32)],
  )(*args)
  return out[0, :B]


# ------------------------------ parameters -----------------------------------
def init_params(key):
  D, F, Fe, H = NODE_STATE_DIM, NODE_FEATURE_DIM, EDGE_FEATURE_DIM, EDGE_HIDDEN
  keys = jax.random.split(key, len(PARAM_ORDER))
  kit = iter(keys)

  def unif(shape, fan_in):
    b = 1.0 / np.sqrt(fan_in)
    return jax.random.uniform(next(kit), shape, jnp.float32, -b, b)

  p = {}
  # encoder node MLP: Linear(F -> D)
  p["w_enc"] = unif((F, D), F)
  p["b_enc"] = unif((1, D), F)
  # message net: Linear(2D+Fe -> H) -> ReLU -> Linear(H -> 2D); first layer split.
  p["wm1_from"] = unif((D, H), 2 * D + Fe)
  p["wm1_to"] = unif((D, H), 2 * D + Fe)
  p["wm1_edge"] = unif((Fe, H), 2 * D + Fe)
  p["bm1"] = unif((1, H), 2 * D + Fe)
  p["wm2"] = unif((H, 2 * D), H)
  p["bm2"] = unif((1, 2 * D), H)
  # GRU(input=2D, hidden=D), torch init uniform(+-1/sqrt(D)); weights pre-transposed.
  for name, shape in [("wxr", (2 * D, D)), ("wxz", (2 * D, D)), ("wxn", (2 * D, D)),
                      ("bxr", (1, D)), ("bxz", (1, D)), ("bxn", (1, D)),
                      ("whr", (D, D)), ("whz", (D, D)), ("whn", (D, D)),
                      ("bhr", (1, D)), ("bhz", (1, D)), ("bhn", (1, D))]:
    p[name] = unif(shape, D)
  return p


# ------------------------------ pure-JAX reference ---------------------------
def reference_forward(params, node_features, edge_features, from_idx, to_idx,
                      batch_data_sizes):
  p = params
  prec = lax.Precision.HIGHEST
  mm = lambda a, b: jnp.dot(a, b, precision=prec)
  N = node_features.shape[0]

  h = mm(node_features, p["w_enc"]) + p["b_enc"]
  edge_proj = mm(edge_features, p["wm1_edge"])

  def message(src, dst):
    pre = mm(src, p["wm1_from"]) + mm(dst, p["wm1_to"]) + edge_proj + p["bm1"]
    return mm(jnp.maximum(pre, 0.0), p["wm2"]) + p["bm2"]

  for _ in range(N_PROP_LAYERS):
    fs, ts = h[from_idx], h[to_idx]
    agg = jax.ops.segment_sum(message(fs, ts), to_idx, num_segments=N)
    agg = agg + jax.ops.segment_sum(message(ts, fs), from_idx, num_segments=N)
    r = jax.nn.sigmoid(mm(agg, p["wxr"]) + p["bxr"] + mm(h, p["whr"]) + p["bhr"])
    z = jax.nn.sigmoid(mm(agg, p["wxz"]) + p["bxz"] + mm(h, p["whz"]) + p["bhz"])
    n_gate = jnp.tanh(mm(agg, p["wxn"]) + p["bxn"]
                      + r * (mm(h, p["whn"]) + p["bhn"]))
    h = (1.0 - z) * n_gate + z * h

  q_stack, c_stack = split_pad_stack(h, batch_data_sizes)
  sim = jnp.einsum("bqd,bkd->bqk", q_stack, c_stack, precision=prec)
  return jnp.sum(jnp.max(sim, axis=-1), axis=-1)


# ---------------------------------- main --------------------------------------
if __name__ == "__main__":
  key = jax.random.PRNGKey(0)
  k_param, k_nf, k_ef, k_edge = jax.random.split(key, 4)

  # (query_size, corpus_size) per pair; graphs are interleaved q0,c0,q1,c1,...
  batch_data_sizes = [(5, 8), (6, 7), (4, 8)]
  sizes_flat = [s for pair in batch_data_sizes for s in pair]
  N = sum(sizes_flat)

  node_features = jax.random.normal(k_nf, (N, NODE_FEATURE_DIM), jnp.float32)

  from_list, to_list, gidx_list = [], [], []
  offset = 0
  ekeys = jax.random.split(k_edge, len(sizes_flat))
  for gi, sz in enumerate(sizes_flat):
    ne = 2 * sz
    ka, kb = jax.random.split(ekeys[gi])
    from_list.append(jax.random.randint(ka, (ne,), 0, sz) + offset)
    to_list.append(jax.random.randint(kb, (ne,), 0, sz) + offset)
    gidx_list.append(jnp.full((sz,), gi, jnp.int32))
    offset += sz
  from_idx = jnp.concatenate(from_list).astype(jnp.int32)
  to_idx = jnp.concatenate(to_list).astype(jnp.int32)
  graph_idx = jnp.concatenate(gidx_list)
  E = int(from_idx.shape[0])
  edge_features = jax.random.normal(k_ef, (E, EDGE_FEATURE_DIM), jnp.float32)

  params = init_params(k_param)

  scores = gmn_embed_with_colbert_scores_forward(
      params, node_features, edge_features, from_idx, to_idx, graph_idx,
      batch_data_sizes, batch_adj=None)
  scores = jax.block_until_ready(scores)

  ref = reference_forward(params, node_features, edge_features, from_idx, to_idx,
                          batch_data_sizes)
  # Default MXU precision (bf16 operand truncation) + algebraic re-association
  # vs. a Precision.HIGHEST reference -> small drift over 3 GRU layers.
  np.testing.assert_allclose(np.asarray(scores), np.asarray(ref),
                             rtol=2e-2, atol=2e-2)
  print("KERNEL_OK")
</pallas_src>

<mosaic_0001>
module attributes {stable_mosaic.version = 11 : i64} {
  func.func @gmn_colbert_kernel(%arg0: memref<38x8xf32, #tpu.memory_space<vmem>>, %arg1: memref<152x4xf32, #tpu.memory_space<vmem>>, %arg2: memref<152x38xbf16, #tpu.memory_space<vmem>>, %arg3: memref<152x38xbf16, #tpu.memory_space<vmem>>, %arg4: memref<38x152xbf16, #tpu.memory_space<vmem>>, %arg5: memref<48x38xbf16, #tpu.memory_space<vmem>>, %arg6: memref<24x24xf32, #tpu.memory_space<vmem>>, %arg7: memref<24x128xf32, #tpu.memory_space<vmem>>, %arg8: memref<8x32xf32, #tpu.memory_space<vmem>>, %arg9: memref<1x32xf32, #tpu.memory_space<vmem>>, %arg10: memref<32x64xf32, #tpu.memory_space<vmem>>, %arg11: memref<32x64xf32, #tpu.memory_space<vmem>>, %arg12: memref<4x64xf32, #tpu.memory_space<vmem>>, %arg13: memref<1x64xf32, #tpu.memory_space<vmem>>, %arg14: memref<64x96xf32, #tpu.memory_space<vmem>>, %arg15: memref<38x96xf32, #tpu.memory_space<vmem>>, %arg16: memref<32x96xf32, #tpu.memory_space<vmem>>, %arg17: memref<1x96xf32, #tpu.memory_space<vmem>>, %arg18: memref<1x128xf32, #tpu.memory_space<vmem>>, %arg19: memref<152x64xf32, #tpu.memory_space<vmem>>) attributes {dimension_semantics = [], scalar_prefetch = 0 : i64, scratch_operands = 1 : i64, tpu.core_type = #tpu.core_type<tc>} {
    %c0 = arith.constant 0 : index
    %c0_0 = arith.constant 0 : index
    %0 = vector.load %arg0[%c0, %c0_0] : memref<38x8xf32, #tpu.memory_space<vmem>>, vector<38x8xf32>
    %c0_1 = arith.constant 0 : index
    %c0_2 = arith.constant 0 : index
    %1 = vector.load %arg8[%c0_1, %c0_2] : memref<8x32xf32, #tpu.memory_space<vmem>>, vector<8x32xf32>
    %cst = arith.constant dense<0.000000e+00> : vector<38x32xf32>
    %2 = tpu.matmul %0, %1, %cst {dimension_numbers = #tpu.dot_dimension_numbers<[1], [0], [0], [1], [0, 0, 1, 1], [], []>} : vector<38x8xf32>, vector<8x32xf32>, vector<38x32xf32> -> vector<38x32xf32>
    %c0_3 = arith.constant 0 : index
    %c0_4 = arith.constant 0 : index
    %3 = vector.load %arg9[%c0_3, %c0_4] : memref<1x32xf32, #tpu.memory_space<vmem>>, vector<1x32xf32>
    %4 = vector.broadcast %3 : vector<1x32xf32> to vector<38x32xf32>
    %5 = arith.addf %2, %4 : vector<38x32xf32>
    %c0_5 = arith.constant 0 : index
    %c0_6 = arith.constant 0 : index
    %6 = vector.load %arg1[%c0_5, %c0_6] : memref<152x4xf32, #tpu.memory_space<vmem>>, vector<152x4xf32>
    %c0_7 = arith.constant 0 : index
    %c0_8 = arith.constant 0 : index
    %7 = vector.load %arg12[%c0_7, %c0_8] : memref<4x64xf32, #tpu.memory_space<vmem>>, vector<4x64xf32>
    %cst_9 = arith.constant dense<0.000000e+00> : vector<152x64xf32>
    %8 = tpu.matmul %6, %7, %cst_9 {dimension_numbers = #tpu.dot_dimension_numbers<[1], [0], [0], [1], [0, 0, 1, 1], [], []>} : vector<152x4xf32>, vector<4x64xf32>, vector<152x64xf32> -> vector<152x64xf32>
    %c0_10 = arith.constant 0 : index
    %c0_11 = arith.constant 0 : index
    %9 = vector.load %arg13[%c0_10, %c0_11] : memref<1x64xf32, #tpu.memory_space<vmem>>, vector<1x64xf32>
    %10 = vector.broadcast %9 : vector<1x64xf32> to vector<152x64xf32>
    %11 = arith.addf %8, %10 : vector<152x64xf32>
    %c0_12 = arith.constant 0 : index
    %c0_13 = arith.constant 0 : index
    %12 = vector.load %arg19[%c0_12, %c0_13] : memref<152x64xf32, #tpu.memory_space<vmem>>, vector<152x64xf32>
    tpu.vector_store %arg19[%c0_12, %c0_13], %11 {strides = array<i32>} : memref<152x64xf32, #tpu.memory_space<vmem>>, vector<152x64xf32>,
    %c0_14 = arith.constant 0 : index
    %c0_15 = arith.constant 0 : index
    %13 = vector.load %arg10[%c0_14, %c0_15] : memref<32x64xf32, #tpu.memory_space<vmem>>, vector<32x64xf32>
    %cst_16 = arith.constant dense<0.000000e+00> : vector<38x64xf32>
    %14 = tpu.matmul %5, %13, %cst_16 {dimension_numbers = #tpu.dot_dimension_numbers<[1], [0], [0], [1], [0, 0, 1, 1], [], []>} : vector<38x32xf32>, vector<32x64xf32>, vector<38x64xf32> -> vector<38x64xf32>
    %15 = arith.truncf %14 : vector<38x64xf32> to vector<38x64xbf16>
    %c0_17 = arith.constant 0 : index
    %c0_18 = arith.constant 0 : index
    %16 = vector.load %arg11[%c0_17, %c0_18] : memref<32x64xf32, #tpu.memory_space<vmem>>, vector<32x64xf32>
    %cst_19 = arith.constant dense<0.000000e+00> : vector<38x64xf32>
    %17 = tpu.matmul %5, %16, %cst_19 {dimension_numbers = #tpu.dot_dimension_numbers<[1], [0], [0], [1], [0, 0, 1, 1], [], []>} : vector<38x32xf32>, vector<32x64xf32>, vector<38x64xf32> -> vector<38x64xf32>
    %18 = arith.truncf %17 : vector<38x64xf32> to vector<38x64xbf16>
    %c0_20 = arith.constant 0 : index
    %c0_21 = arith.constant 0 : index
    %19 = vector.load %arg2[%c0_20, %c0_21] : memref<152x38xbf16, #tpu.memory_space<vmem>>, vector<152x38xbf16>
    %cst_22 = arith.constant dense<0.000000e+00> : vector<152x64xf32>
    %20 = tpu.matmul %19, %15, %cst_22 {dimension_numbers = #tpu.dot_dimension_numbers<[1], [0], [0], [1], [0, 0, 1, 1], [], []>} : vector<152x38xbf16>, vector<38x64xbf16>, vector<152x64xf32> -> vector<152x64xf32>
    %c0_23 = arith.constant 0 : index
    %c0_24 = arith.constant 0 : index
    %21 = vector.load %arg3[%c0_23, %c0_24] : memref<152x38xbf16, #tpu.memory_space<vmem>>, vector<152x38xbf16>
    %cst_25 = arith.constant dense<0.000000e+00> : vector<152x64xf32>
    %22 = tpu.matmul %21, %18, %cst_25 {dimension_numbers = #tpu.dot_dimension_numbers<[1], [0], [0], [1], [0, 0, 1, 1], [], []>} : vector<152x38xbf16>, vector<38x64xbf16>, vector<152x64xf32> -> vector<152x64xf32>
    %23 = arith.addf %20, %22 : vector<152x64xf32>
    %c0_26 = arith.constant 0 : index
    %c0_27 = arith.constant 0 : index
    %24 = vector.load %arg19[%c0_26, %c0_27] : memref<152x64xf32, #tpu.memory_space<vmem>>, vector<152x64xf32>
    %25 = arith.addf %23, %24 : vector<152x64xf32>
    %cst_28 = arith.constant 0.000000e+00 : f32
    %26 = vector.broadcast %cst_28 : f32 to vector<152x64xf32>
    %27 = arith.maximumf %25, %26 : vector<152x64xf32>
    %28 = arith.truncf %27 : vector<152x64xf32> to vector<152x64xbf16>
    %c0_29 = arith.constant 0 : index
    %c0_30 = arith.constant 0 : index
    %29 = vector.load %arg4[%c0_29, %c0_30] : memref<38x152xbf16, #tpu.memory_space<vmem>>, vector<38x152xbf16>
    %cst_31 = arith.constant dense<0.000000e+00> : vector<38x64xf32>
    %30 = tpu.matmul %29, %28, %cst_31 {dimension_numbers = #tpu.dot_dimension_numbers<[1], [0], [0], [1], [0, 0, 1, 1], [], []>} : vector<38x152xbf16>, vector<152x64xbf16>, vector<38x64xf32> -> vector<38x64xf32>
    %c0_32 = arith.constant 0 : index
    %c0_33 = arith.constant 0 : index
    %31 = vector.load %arg14[%c0_32, %c0_33] : memref<64x96xf32, #tpu.memory_space<vmem>>, vector<64x96xf32>
    %cst_34 = arith.constant dense<0.000000e+00> : vector<38x96xf32>
    %32 = tpu.matmul %30, %31, %cst_34 {dimension_numbers = #tpu.dot_dimension_numbers<[1], [0], [0], [1], [0, 0, 1, 1], [], []>} : vector<38x64xf32>, vector<64x96xf32>, vector<38x96xf32> -> vector<38x96xf32>
    %c0_35 = arith.constant 0 : index
    %c0_36 = arith.constant 0 : index
    %33 = vector.load %arg15[%c0_35, %c0_36] : memref<38x96xf32, #tpu.memory_space<vmem>>, vector<38x96xf32>
    %34 = arith.addf %32, %33 : vector<38x96xf32>
    %c0_37 = arith.constant 0 : index
    %c0_38 = arith.constant 0 : index
    %35 = vector.load %arg16[%c0_37, %c0_38] : memref<32x96xf32, #tpu.memory_space<vmem>>, vector<32x96xf32>
    %cst_39 = arith.constant dense<0.000000e+00> : vector<38x96xf32>
    %36 = tpu.matmul %5, %35, %cst_39 {dimension_numbers = #tpu.dot_dimension_numbers<[1], [0], [0], [1], [0, 0, 1, 1], [], []>} : vector<38x32xf32>, vector<32x96xf32>, vector<38x96xf32> -> vector<38x96xf32>
    %c0_40 = arith.constant 0 : index
    %c0_41 = arith.constant 0 : index
    %37 = vector.load %arg17[%c0_40, %c0_41] : memref<1x96xf32, #tpu.memory_space<vmem>>, vector<1x96xf32>
    %38 = vector.broadcast %37 : vector<1x96xf32> to vector<38x96xf32>
    %39 = arith.addf %36, %38 : vector<38x96xf32>
    %40 = vector.extract_strided_slice %34 {offsets = [0, 0], sizes = [38, 32], strides = [1, 1]} : vector<38x96xf32> to vector<38x32xf32>
    %41 = vector.extract_strided_slice %34 {offsets = [0, 32], sizes = [38, 32], strides = [1, 1]} : vector<38x96xf32> to vector<38x32xf32>
    %42 = vector.extract_strided_slice %34 {offsets = [0, 64], sizes = [38, 32], strides = [1, 1]} : vector<38x96xf32> to vector<38x32xf32>
    %43 = vector.extract_strided_slice %39 {offsets = [0, 0], sizes = [38, 32], strides = [1, 1]} : vector<38x96xf32> to vector<38x32xf32>
    %44 = vector.extract_strided_slice %39 {offsets = [0, 32], sizes = [38, 32], strides = [1, 1]} : vector<38x96xf32> to vector<38x32xf32>
    %45 = vector.extract_strided_slice %39 {offsets = [0, 64], sizes = [38, 32], strides = [1, 1]} : vector<38x96xf32> to vector<38x32xf32>
    %46 = arith.addf %40, %43 : vector<38x32xf32>
    %47 = arith.negf %46 : vector<38x32xf32>
    %48 = math.exp %47 : vector<38x32xf32>
    %cst_42 = arith.constant 1.000000e+00 : f32
    %49 = vector.broadcast %cst_42 : f32 to vector<38x32xf32>
    %50 = arith.addf %49, %48 : vector<38x32xf32>
    %51 = arith.divf %49, %50 : vector<38x32xf32>
    %52 = arith.addf %41, %44 : vector<38x32xf32>
    %53 = arith.negf %52 : vector<38x32xf32>
    %54 = math.exp %53 : vector<38x32xf32>
    %cst_43 = arith.constant 1.000000e+00 : f32
    %55 = vector.broadcast %cst_43 : f32 to vector<38x32xf32>
    %56 = arith.addf %55, %54 : vector<38x32xf32>
    %57 = arith.divf %55, %56 : vector<38x32xf32>
    %58 = arith.mulf %51, %45 : vector<38x32xf32>
    %59 = arith.addf %42, %58 : vector<38x32xf32>
    %60 = math.tanh %59 : vector<38x32xf32>
    %cst_44 = arith.constant 1.000000e+00 : f32
    %61 = vector.broadcast %cst_44 : f32 to vector<38x32xf32>
    %62 = arith.subf %61, %57 : vector<38x32xf32>
    %63 = arith.mulf %62, %60 : vector<38x32xf32>
    %64 = arith.mulf %57, %5 : vector<38x32xf32>
    %65 = arith.addf %63, %64 : vector<38x32xf32>
    %c0_45 = arith.constant 0 : index
    %c0_46 = arith.constant 0 : index
    %66 = vector.load %arg10[%c0_45, %c0_46] : memref<32x64xf32, #tpu.memory_space<vmem>>, vector<32x64xf32>
    %cst_47 = arith.constant dense<0.000000e+00> : vector<38x64xf32>
    %67 = tpu.matmul %65, %66, %cst_47 {dimension_numbers = #tpu.dot_dimension_numbers<[1], [0], [0], [1], [0, 0, 1, 1], [], []>} : vector<38x32xf32>, vector<32x64xf32>, vector<38x64xf32> -> vector<38x64xf32>
    %68 = arith.truncf %67 : vector<38x64xf32> to vector<38x64xbf16>
    %c0_48 = arith.constant 0 : index
    %c0_49 = arith.constant 0 : index
    %69 = vector.load %arg11[%c0_48, %c0_49] : memref<32x64xf32, #tpu.memory_space<vmem>>, vector<32x64xf32>
    %cst_50 = arith.constant dense<0.000000e+00> : vector<38x64xf32>
    %70 = tpu.matmul %65, %69, %cst_50 {dimension_numbers = #tpu.dot_dimension_numbers<[1], [0], [0], [1], [0, 0, 1, 1], [], []>} : vector<38x32xf32>, vector<32x64xf32>, vector<38x64xf32> -> vector<38x64xf32>
    %71 = arith.truncf %70 : vector<38x64xf32> to vector<38x64xbf16>
    %c0_51 = arith.constant 0 : index
    %c0_52 = arith.constant 0 : index
    %72 = vector.load %arg2[%c0_51, %c0_52] : memref<152x38xbf16, #tpu.memory_space<vmem>>, vector<152x38xbf16>
    %cst_53 = arith.constant dense<0.000000e+00> : vector<152x64xf32>
    %73 = tpu.matmul %72, %68, %cst_53 {dimension_numbers = #tpu.dot_dimension_numbers<[1], [0], [0], [1], [0, 0, 1, 1], [], []>} : vector<152x38xbf16>, vector<38x64xbf16>, vector<152x64xf32> -> vector<152x64xf32>
    %c0_54 = arith.constant 0 : index
    %c0_55 = arith.constant 0 : index
    %74 = vector.load %arg3[%c0_54, %c0_55] : memref<152x38xbf16, #tpu.memory_space<vmem>>, vector<152x38xbf16>
    %cst_56 = arith.constant dense<0.000000e+00> : vector<152x64xf32>
    %75 = tpu.matmul %74, %71, %cst_56 {dimension_numbers = #tpu.dot_dimension_numbers<[1], [0], [0], [1], [0, 0, 1, 1], [], []>} : vector<152x38xbf16>, vector<38x64xbf16>, vector<152x64xf32> -> vector<152x64xf32>
    %76 = arith.addf %73, %75 : vector<152x64xf32>
    %c0_57 = arith.constant 0 : index
    %c0_58 = arith.constant 0 : index
    %77 = vector.load %arg19[%c0_57, %c0_58] : memref<152x64xf32, #tpu.memory_space<vmem>>, vector<152x64xf32>
    %78 = arith.addf %76, %77 : vector<152x64xf32>
    %cst_59 = arith.constant 0.000000e+00 : f32
    %79 = vector.broadcast %cst_59 : f32 to vector<152x64xf32>
    %80 = arith.maximumf %78, %79 : vector<152x64xf32>
    %81 = arith.truncf %80 : vector<152x64xf32> to vector<152x64xbf16>
    %c0_60 = arith.constant 0 : index
    %c0_61 = arith.constant 0 : index
    %82 = vector.load %arg4[%c0_60, %c0_61] : memref<38x152xbf16, #tpu.memory_space<vmem>>, vector<38x152xbf16>
    %cst_62 = arith.constant dense<0.000000e+00> : vector<38x64xf32>
    %83 = tpu.matmul %82, %81, %cst_62 {dimension_numbers = #tpu.dot_dimension_numbers<[1], [0], [0], [1], [0, 0, 1, 1], [], []>} : vector<38x152xbf16>, vector<152x64xbf16>, vector<38x64xf32> -> vector<38x64xf32>
    %c0_63 = arith.constant 0 : index
    %c0_64 = arith.constant 0 : index
    %84 = vector.load %arg14[%c0_63, %c0_64] : memref<64x96xf32, #tpu.memory_space<vmem>>, vector<64x96xf32>
    %cst_65 = arith.constant dense<0.000000e+00> : vector<38x96xf32>
    %85 = tpu.matmul %83, %84, %cst_65 {dimension_numbers = #tpu.dot_dimension_numbers<[1], [0], [0], [1], [0, 0, 1, 1], [], []>} : vector<38x64xf32>, vector<64x96xf32>, vector<38x96xf32> -> vector<38x96xf32>
    %c0_66 = arith.constant 0 : index
    %c0_67 = arith.constant 0 : index
    %86 = vector.load %arg15[%c0_66, %c0_67] : memref<38x96xf32, #tpu.memory_space<vmem>>, vector<38x96xf32>
    %87 = arith.addf %85, %86 : vector<38x96xf32>
    %c0_68 = arith.constant 0 : index
    %c0_69 = arith.constant 0 : index
    %88 = vector.load %arg16[%c0_68, %c0_69] : memref<32x96xf32, #tpu.memory_space<vmem>>, vector<32x96xf32>
    %cst_70 = arith.constant dense<0.000000e+00> : vector<38x96xf32>
    %89 = tpu.matmul %65, %88, %cst_70 {dimension_numbers = #tpu.dot_dimension_numbers<[1], [0], [0], [1], [0, 0, 1, 1], [], []>} : vector<38x32xf32>, vector<32x96xf32>, vector<38x96xf32> -> vector<38x96xf32>
    %c0_71 = arith.constant 0 : index
    %c0_72 = arith.constant 0 : index
    %90 = vector.load %arg17[%c0_71, %c0_72] : memref<1x96xf32, #tpu.memory_space<vmem>>, vector<1x96xf32>
    %91 = vector.broadcast %90 : vector<1x96xf32> to vector<38x96xf32>
    %92 = arith.addf %89, %91 : vector<38x96xf32>
    %93 = vector.extract_strided_slice %87 {offsets = [0, 0], sizes = [38, 32], strides = [1, 1]} : vector<38x96xf32> to vector<38x32xf32>
    %94 = vector.extract_strided_slice %87 {offsets = [0, 32], sizes = [38, 32], strides = [1, 1]} : vector<38x96xf32> to vector<38x32xf32>
    %95 = vector.extract_strided_slice %87 {offsets = [0, 64], sizes = [38, 32], strides = [1, 1]} : vector<38x96xf32> to vector<38x32xf32>
    %96 = vector.extract_strided_slice %92 {offsets = [0, 0], sizes = [38, 32], strides = [1, 1]} : vector<38x96xf32> to vector<38x32xf32>
    %97 = vector.extract_strided_slice %92 {offsets = [0, 32], sizes = [38, 32], strides = [1, 1]} : vector<38x96xf32> to vector<38x32xf32>
    %98 = vector.extract_strided_slice %92 {offsets = [0, 64], sizes = [38, 32], strides = [1, 1]} : vector<38x96xf32> to vector<38x32xf32>
    %99 = arith.addf %93, %96 : vector<38x32xf32>
    %100 = arith.negf %99 : vector<38x32xf32>
    %101 = math.exp %100 : vector<38x32xf32>
    %cst_73 = arith.constant 1.000000e+00 : f32
    %102 = vector.broadcast %cst_73 : f32 to vector<38x32xf32>
    %103 = arith.addf %102, %101 : vector<38x32xf32>
    %104 = arith.divf %102, %103 : vector<38x32xf32>
    %105 = arith.addf %94, %97 : vector<38x32xf32>
    %106 = arith.negf %105 : vector<38x32xf32>
    %107 = math.exp %106 : vector<38x32xf32>
    %cst_74 = arith.constant 1.000000e+00 : f32
    %108 = vector.broadcast %cst_74 : f32 to vector<38x32xf32>
    %109 = arith.addf %108, %107 : vector<38x32xf32>
    %110 = arith.divf %108, %109 : vector<38x32xf32>
    %111 = arith.mulf %104, %98 : vector<38x32xf32>
    %112 = arith.addf %95, %111 : vector<38x32xf32>
    %113 = math.tanh %112 : vector<38x32xf32>
    %cst_75 = arith.constant 1.000000e+00 : f32
    %114 = vector.broadcast %cst_75 : f32 to vector<38x32xf32>
    %115 = arith.subf %114, %110 : vector<38x32xf32>
    %116 = arith.mulf %115, %113 : vector<38x32xf32>
    %117 = arith.mulf %110, %65 : vector<38x32xf32>
    %118 = arith.addf %116, %117 : vector<38x32xf32>
    %c0_76 = arith.constant 0 : index
    %c0_77 = arith.constant 0 : index
    %119 = vector.load %arg10[%c0_76, %c0_77] : memref<32x64xf32, #tpu.memory_space<vmem>>, vector<32x64xf32>
    %cst_78 = arith.constant dense<0.000000e+00> : vector<38x64xf32>
    %120 = tpu.matmul %118, %119, %cst_78 {dimension_numbers = #tpu.dot_dimension_numbers<[1], [0], [0], [1], [0, 0, 1, 1], [], []>} : vector<38x32xf32>, vector<32x64xf32>, vector<38x64xf32> -> vector<38x64xf32>
    %121 = arith.truncf %120 : vector<38x64xf32> to vector<38x64xbf16>
    %c0_79 = arith.constant 0 : index
    %c0_80 = arith.constant 0 : index
    %122 = vector.load %arg11[%c0_79, %c0_80] : memref<32x64xf32, #tpu.memory_space<vmem>>, vector<32x64xf32>
    %cst_81 = arith.constant dense<0.000000e+00> : vector<38x64xf32>
    %123 = tpu.matmul %118, %122, %cst_81 {dimension_numbers = #tpu.dot_dimension_numbers<[1], [0], [0], [1], [0, 0, 1, 1], [], []>} : vector<38x32xf32>, vector<32x64xf32>, vector<38x64xf32> -> vector<38x64xf32>
    %124 = arith.truncf %123 : vector<38x64xf32> to vector<38x64xbf16>
    %c0_82 = arith.constant 0 : index
    %c0_83 = arith.constant 0 : index
    %125 = vector.load %arg2[%c0_82, %c0_83] : memref<152x38xbf16, #tpu.memory_space<vmem>>, vector<152x38xbf16>
    %cst_84 = arith.constant dense<0.000000e+00> : vector<152x64xf32>
    %126 = tpu.matmul %125, %121, %cst_84 {dimension_numbers = #tpu.dot_dimension_numbers<[1], [0], [0], [1], [0, 0, 1, 1], [], []>} : vector<152x38xbf16>, vector<38x64xbf16>, vector<152x64xf32> -> vector<152x64xf32>
    %c0_85 = arith.constant 0 : index
    %c0_86 = arith.constant 0 : index
    %127 = vector.load %arg3[%c0_85, %c0_86] : memref<152x38xbf16, #tpu.memory_space<vmem>>, vector<152x38xbf16>
    %cst_87 = arith.constant dense<0.000000e+00> : vector<152x64xf32>
    %128 = tpu.matmul %127, %124, %cst_87 {dimension_numbers = #tpu.dot_dimension_numbers<[1], [0], [0], [1], [0, 0, 1, 1], [], []>} : vector<152x38xbf16>, vector<38x64xbf16>, vector<152x64xf32> -> vector<152x64xf32>
    %129 = arith.addf %126, %128 : vector<152x64xf32>
    %c0_88 = arith.constant 0 : index
    %c0_89 = arith.constant 0 : index
    %130 = vector.load %arg19[%c0_88, %c0_89] : memref<152x64xf32, #tpu.memory_space<vmem>>, vector<152x64xf32>
    %131 = arith.addf %129, %130 : vector<152x64xf32>
    %cst_90 = arith.constant 0.000000e+00 : f32
    %132 = vector.broadcast %cst_90 : f32 to vector<152x64xf32>
    %133 = arith.maximumf %131, %132 : vector<152x64xf32>
    %134 = arith.truncf %133 : vector<152x64xf32> to vector<152x64xbf16>
    %c0_91 = arith.constant 0 : index
    %c0_92 = arith.constant 0 : index
    %135 = vector.load %arg4[%c0_91, %c0_92] : memref<38x152xbf16, #tpu.memory_space<vmem>>, vector<38x152xbf16>
    %cst_93 = arith.constant dense<0.000000e+00> : vector<38x64xf32>
    %136 = tpu.matmul %135, %134, %cst_93 {dimension_numbers = #tpu.dot_dimension_numbers<[1], [0], [0], [1], [0, 0, 1, 1], [], []>} : vector<38x152xbf16>, vector<152x64xbf16>, vector<38x64xf32> -> vector<38x64xf32>
    %c0_94 = arith.constant 0 : index
    %c0_95 = arith.constant 0 : index
    %137 = vector.load %arg14[%c0_94, %c0_95] : memref<64x96xf32, #tpu.memory_space<vmem>>, vector<64x96xf32>
    %cst_96 = arith.constant dense<0.000000e+00> : vector<38x96xf32>
    %138 = tpu.matmul %136, %137, %cst_96 {dimension_numbers = #tpu.dot_dimension_numbers<[1], [0], [0], [1], [0, 0, 1, 1], [], []>} : vector<38x64xf32>, vector<64x96xf32>, vector<38x96xf32> -> vector<38x96xf32>
    %c0_97 = arith.constant 0 : index
    %c0_98 = arith.constant 0 : index
    %139 = vector.load %arg15[%c0_97, %c0_98] : memref<38x96xf32, #tpu.memory_space<vmem>>, vector<38x96xf32>
    %140 = arith.addf %138, %139 : vector<38x96xf32>
    %c0_99 = arith.constant 0 : index
    %c0_100 = arith.constant 0 : index
    %141 = vector.load %arg16[%c0_99, %c0_100] : memref<32x96xf32, #tpu.memory_space<vmem>>, vector<32x96xf32>
    %cst_101 = arith.constant dense<0.000000e+00> : vector<38x96xf32>
    %142 = tpu.matmul %118, %141, %cst_101 {dimension_numbers = #tpu.dot_dimension_numbers<[1], [0], [0], [1], [0, 0, 1, 1], [], []>} : vector<38x32xf32>, vector<32x96xf32>, vector<38x96xf32> -> vector<38x96xf32>
    %c0_102 = arith.constant 0 : index
    %c0_103 = arith.constant 0 : index
    %143 = vector.load %arg17[%c0_102, %c0_103] : memref<1x96xf32, #tpu.memory_space<vmem>>, vector<1x96xf32>
    %144 = vector.broadcast %143 : vector<1x96xf32> to vector<38x96xf32>
    %145 = arith.addf %142, %144 : vector<38x96xf32>
    %146 = vector.extract_strided_slice %140 {offsets = [0, 0], sizes = [38, 32], strides = [1, 1]} : vector<38x96xf32> to vector<38x32xf32>
    %147 = vector.extract_strided_slice %140 {offsets = [0, 32], sizes = [38, 32], strides = [1, 1]} : vector<38x96xf32> to vector<38x32xf32>
    %148 = vector.extract_strided_slice %140 {offsets = [0, 64], sizes = [38, 32], strides = [1, 1]} : vector<38x96xf32> to vector<38x32xf32>
    %149 = vector.extract_strided_slice %145 {offsets = [0, 0], sizes = [38, 32], strides = [1, 1]} : vector<38x96xf32> to vector<38x32xf32>
    %150 = vector.extract_strided_slice %145 {offsets = [0, 32], sizes = [38, 32], strides = [1, 1]} : vector<38x96xf32> to vector<38x32xf32>
    %151 = vector.extract_strided_slice %145 {offsets = [0, 64], sizes = [38, 32], strides = [1, 1]} : vector<38x96xf32> to vector<38x32xf32>
    %152 = arith.addf %146, %149 : vector<38x32xf32>
    %153 = arith.negf %152 : vector<38x32xf32>
    %154 = math.exp %153 : vector<38x32xf32>
    %cst_104 = arith.constant 1.000000e+00 : f32
    %155 = vector.broadcast %cst_104 : f32 to vector<38x32xf32>
    %156 = arith.addf %155, %154 : vector<38x32xf32>
    %157 = arith.divf %155, %156 : vector<38x32xf32>
    %158 = arith.addf %147, %150 : vector<38x32xf32>
    %159 = arith.negf %158 : vector<38x32xf32>
    %160 = math.exp %159 : vector<38x32xf32>
    %cst_105 = arith.constant 1.000000e+00 : f32
    %161 = vector.broadcast %cst_105 : f32 to vector<38x32xf32>
    %162 = arith.addf %161, %160 : vector<38x32xf32>
    %163 = arith.divf %161, %162 : vector<38x32xf32>
    %164 = arith.mulf %157, %151 : vector<38x32xf32>
    %165 = arith.addf %148, %164 : vector<38x32xf32>
    %166 = math.tanh %165 : vector<38x32xf32>
    %cst_106 = arith.constant 1.000000e+00 : f32
    %167 = vector.broadcast %cst_106 : f32 to vector<38x32xf32>
    %168 = arith.subf %167, %163 : vector<38x32xf32>
    %169 = arith.mulf %168, %166 : vector<38x32xf32>
    %170 = arith.mulf %163, %118 : vector<38x32xf32>
    %171 = arith.addf %169, %170 : vector<38x32xf32>
    %c0_107 = arith.constant 0 : index
    %c0_108 = arith.constant 0 : index
    %172 = vector.load %arg5[%c0_107, %c0_108] : memref<48x38xbf16, #tpu.memory_space<vmem>>, vector<48x38xbf16>
    %173 = arith.truncf %171 : vector<38x32xf32> to vector<38x32xbf16>
    %cst_109 = arith.constant dense<0.000000e+00> : vector<48x32xf32>
    %174 = tpu.matmul %172, %173, %cst_109 {dimension_numbers = #tpu.dot_dimension_numbers<[1], [0], [0], [1], [0, 0, 1, 1], [], []>} : vector<48x38xbf16>, vector<38x32xbf16>, vector<48x32xf32> -> vector<48x32xf32>
    %175 = vector.extract_strided_slice %174 {offsets = [0, 0], sizes = [24, 32], strides = [1, 1]} : vector<48x32xf32> to vector<24x32xf32>
    %176 = vector.extract_strided_slice %174 {offsets = [24, 0], sizes = [24, 32], strides = [1, 1]} : vector<48x32xf32> to vector<24x32xf32>
    %cst_110 = arith.constant dense<0.000000e+00> : vector<24x24xf32>
    %177 = tpu.matmul %175, %176, %cst_110 {dimension_numbers = #tpu.dot_dimension_numbers<[1], [1], [0], [0], [0, 0, 1, 0], [], []>} : vector<24x32xf32>, vector<24x32xf32>, vector<24x24xf32> -> vector<24x24xf32>
    %c0_111 = arith.constant 0 : index
    %c0_112 = arith.constant 0 : index
    %178 = vector.load %arg6[%c0_111, %c0_112] : memref<24x24xf32, #tpu.memory_space<vmem>>, vector<24x24xf32>
    %179 = arith.addf %177, %178 : vector<24x24xf32>
    %cst_113 = arith.constant dense<0xFF800000> : vector<24xf32>
    %180 = vector.multi_reduction <maximumf>, %179, %cst_113 [1] : vector<24x24xf32> to vector<24xf32>
    %181 = vector.shape_cast %180 : vector<24xf32> to vector<24x1xf32>
    %c0_114 = arith.constant 0 : index
    %c0_115 = arith.constant 0 : index
    %182 = vector.load %arg7[%c0_114, %c0_115] : memref<24x128xf32, #tpu.memory_space<vmem>>, vector<24x128xf32>
    %183 = vector.broadcast %181 : vector<24x1xf32> to vector<24x128xf32>
    %184 = arith.mulf %182, %183 : vector<24x128xf32>
    %cst_116 = arith.constant dense<0.000000e+00> : vector<128xf32>
    %185 = vector.multi_reduction <add>, %184, %cst_116 [0] : vector<24x128xf32> to vector<128xf32>
    %186 = vector.shape_cast %185 : vector<128xf32> to vector<1x128xf32>
    %c0_117 = arith.constant 0 : index
    %c0_118 = arith.constant 0 : index
    %187 = vector.load %arg18[%c0_117, %c0_118] : memref<1x128xf32, #tpu.memory_space<vmem>>, vector<1x128xf32>
    tpu.vector_store %arg18[%c0_117, %c0_118], %186 {strides = array<i32>} : memref<1x128xf32, #tpu.memory_space<vmem>>, vector<1x128xf32>,
    return
  }
}

</mosaic_0001>

<bundles_post_ra>
// kernel: tpu_custom_call.1
= control target key start
LH: loop header
LB: loop body
LE: loop exit
PB: predicated region body
PF: predicated region fallthrough
CT: control target
= control target key end

     0   :  { %s4416_s0 = inlined_call_operand.vmem [shape: f32[38,8], index: 0, kind: input, shape index: {}]   ;;  %s4417_s1 = inlined_call_operand.vmem [shape: f32[152,4], index: 1, kind: input, shape index: {}]   ;;  %s4418_s2 = inlined_call_operand.vmem [shape: bf16[152,38], index: 2, kind: input, shape index: {}]   ;;  %s4419_s3 = inlined_call_operand.vmem [shape: bf16[152,38], index: 3, kind: input, shape index: {}]   ;;  %s4420_s4 = inlined_call_operand.vmem [shape: bf16[38,152], index: 4, kind: input, shape index: {}]   ;;  %s4421_s5 = inlined_call_operand.vmem [shape: bf16[48,38], index: 5, kind: input, shape index: {}]   ;;  %s4422_s6 = inlined_call_operand.vmem [shape: f32[24,24], index: 6, kind: input, shape index: {}]   ;;  %s4423_s7 = inlined_call_operand.vmem [shape: f32[24,128], index: 7, kind: input, shape index: {}]   ;;  %s4424_s8 = inlined_call_operand.vmem [shape: f32[8,32], index: 8, kind: input, shape index: {}]   ;;  %s4425_s9 = inlined_call_operand.vmem [shape: f32[1,32], index: 9, kind: input, shape index: {}]   ;;  %s4426_s10 = inlined_call_operand.vmem [shape: f32[32,64], index: 10, kind: input, shape index: {}]   ;;  %s4427_s11 = inlined_call_operand.vmem [shape: f32[32,64], index: 11, kind: input, shape index: {}]   ;;  %s4428_s12 = inlined_call_operand.vmem [shape: f32[4,64], index: 12, kind: input, shape index: {}]   ;;  %s4429_s13 = inlined_call_operand.vmem [shape: f32[1,64], index: 13, kind: input, shape index: {}]   ;;  %s4430_s14 = inlined_call_operand.vmem [shape: f32[64,96], index: 14, kind: input, shape index: {}]   ;;  %s4431_s15 = inlined_call_operand.vmem [shape: f32[38,96], index: 15, kind: input, shape index: {}]   ;;  %s4432_s16 = inlined_call_operand.vmem [shape: f32[32,96], index: 16, kind: input, shape index: {}]   ;;  %s4433_s17 = inlined_call_operand.vmem [shape: f32[1,96], index: 17, kind: input, shape index: {}]   ;;  %s4434_s18 = inlined_call_operand.hbm [shape: f32[1,128], index: 18, kind: output, shape index: {}]  }
   0x1   :  { %4488 = sst [smem:[#allocation48_spill]] %s4416_s0 }
   0x2   :  { %4489 = sst [smem:[#allocation49_spill]] %s4417_s1 }
   0x3   :  { %4490 = sst [smem:[#allocation50_spill]] %s4418_s2 }
   0x4   :  { %v66_v0 = vld [vmem:[%s4424_s8] sm:$0xff]  ;;  %s4491_s0 = sld [smem:[#allocation48_spill]]  ;;  %vm71_vm0 = vcmask 64512   ;;  %vm201_vm1 = vcmask 1043456  }
   0x5   :  { %102 = vmatpush.msra.mxu0 %v66_v0  ;;  %2813 = vmatpush.msra.mxu1 %v66_v0  ;;  %v138_v4 = vld [vmem:[%s4428_s12] sm:$0xf] }
   0x6   :  { %2814 = vmatpush.msra.mxu2 %v66_v0 }
   0x7   :  { %2515 = vmatpush.msk.msrb.mxu1 %vm201_vm1, %v138_v4 }
   0xa   :  { %v61_v1 = vld [vmem:[%s4491_s0] sm:$0xff]  ;;  %v62_v2 = vld [vmem:[%s4491_s0 + $0x8] sm:$0xff]  ;;  %v63_v3 = vld [vmem:[%s4491_s0 + $0x10] sm:$0xff] }
   0xb   :  { %2510 = vmatmul.msk.f32.vlgmr.msra.gmra.mxu0 %vm71_vm0, %v61_v1  ;;  %2511 = vmatmul.msk.f32.vlgmr.msra.gmra.mxu1 %vm71_vm0, %v62_v2 }
   0xc   :  { %2512 = vmatmul.msk.f32.vlgmr.msra.gmra.mxu2 %vm71_vm0, %v63_v3 }
   0xd   :  { %23 = vsyncpa [#allocation4], 0  ;;  %s4492_s24 = sld [smem:[#allocation49_spill]]  ;;  %vm143_vm2 = vcmask 31744   ;;  %v64_v6 = vld [vmem:[%s4491_s0 + $0x18] sm:$0xff]  ;;  %v3186_v20 = vld [vmem:[%s4426_s10 + $0x10] sm:$0xff] }
   0xe   :  { %v65_v8 = vld [vmem:[%s4491_s0 + $0x20] sm:$0x3f]  ;;  %v3178_v18 = vld [vmem:[%s4426_s10 + $0x18] sm:$0xff]  ;;  %v356_v21 = vld [vmem:[%s4427_s11 + $0x10] sm:$0xff]  ;;  %vm303_vm3 = vcmask 261120   ;;  %vm279_vm4 = vcmask 523264  }
   0xf   :  { %v357_v19 = vld [vmem:[%s4427_s11 + $0x18] sm:$0xff]  ;;  %331 = vmatpush.msrb.mxu2 %v3178_v18  ;;  %v3196_v22 = vld [vmem:[%s4426_s10 + $0x8] sm:$0xff]  ;;  %v3208_v25 = vld [vmem:[%s4426_s10] sm:$0xff]  ;;  %vm510_vm5 = vcmask 1042432   ;;  %s3005_s27 = smov 64   ;;  %vm479_vm6 = vcmask 310272  }
  0x10   :  { %370 = vmatpush.msrb.mxu0 %v357_v19  ;;  %2815 = vmatpush.msra.mxu3 %v357_v19  ;;  %v355_v23 = vld [vmem:[%s4427_s11 + $0x8] sm:$0xff]  ;;  %v354_v26 = vld [vmem:[%s4427_s11] sm:$0xff]  ;;  %v929_v30 = vld [vmem:[%s4432_s16 + $0x18] sm:$0xff]  ;;  %s4493_s1 = sld [smem:[#allocation50_spill]]  ;;  %vm807_vm7 = vcmask 195584   ;;  %s3006_s26 = smov 32  }
  0x11   :  { %332 = vmatpush.msrb.mxu2 %v3186_v20  ;;  %v928_v31 = vld [vmem:[%s4432_s16 + $0x10] sm:$0xff]  ;;  %v2823_v32 = vld [vmem:[%s4425_s9] ss:$0 sm:$0xff]  ;;  %946 = vmatpush.msra.mxu1 %v929_v30  ;;  %v927_v36 = vld [vmem:[%s4432_s16 + $0x8] sm:$0xff]  ;;  %s2501_s23 = sshll.u32 %s4434_s18, 4  ;;  %s2502_s23 = int_to_ptr.hbm [resolvable:$true] %s2501_s23 }
  0x12   :  { %371 = vmatpush.msrb.mxu0 %v356_v21  ;;  %2816 = vmatpush.msra.mxu3 %v356_v21  ;;  %v926_v39 = vld [vmem:[%s4432_s16] sm:$0xff] }
  0x13   :  { %v119_v5 = vld [vmem:[%s4492_s24] sm:$0xff]  ;;  %v120_v7 = vld [vmem:[%s4492_s24 + $0x8] sm:$0xff]  ;;  %v121_v9 = vld [vmem:[%s4492_s24 + $0x10] sm:$0xff]  ;;  %333 = vmatpush.msrb.mxu2 %v3196_v22  ;;  %947 = vmatpush.msra.mxu1 %v928_v31 }
  0x14   :  { %2516 = vmatmul.msk.f32.vlgmr.msrb.gmra.mxu1 %vm143_vm2, %v119_v5  ;;  %2513 = vmatmul.msk.f32.gmra.mxu2 %vm71_vm0, %v64_v6  ;;  %v122_v10 = vld [vmem:[%s4492_s24 + $0x18] sm:$0xff]  ;;  %v123_v11 = vld [vmem:[%s4492_s24 + $0x20] sm:$0xff]  ;;  %v124_v12 = vld [vmem:[%s4492_s24 + $0x28] sm:$0xff] }
  0x15   :  { %v125_v13 = vld [vmem:[%s4492_s24 + $0x30] sm:$0xff]  ;;  %v126_v14 = vld [vmem:[%s4492_s24 + $0x38] sm:$0xff]  ;;  %v127_v15 = vld [vmem:[%s4492_s24 + $0x40] sm:$0xff]  ;;  %372 = vmatpush.msrb.mxu0 %v355_v23  ;;  %2817 = vmatpush.msra.mxu3 %v355_v23 }
  0x16   :  { %v128_v16 = vld [vmem:[%s4492_s24 + $0x48] sm:$0xff]  ;;  %v129_v17 = vld [vmem:[%s4492_s24 + $0x50] sm:$0xff]  ;;  %v130_v24 = vld [vmem:[%s4492_s24 + $0x58] sm:$0xff]  ;;  %334 = vmatpush.msrb.mxu2 %v3208_v25  ;;  %948 = vmatpush.msra.mxu1 %v927_v36 }
  0x17   :  { %373 = vmatpush.msrb.mxu0 %v354_v26  ;;  %2818 = vmatpush.msra.mxu3 %v354_v26  ;;  %v131_v27 = vld [vmem:[%s4492_s24 + $0x60] sm:$0xff]  ;;  %v132_v28 = vld [vmem:[%s4492_s24 + $0x68] sm:$0xff]  ;;  %v133_v29 = vld [vmem:[%s4492_s24 + $0x70] sm:$0xff] }
  0x18   :  { %v134_v35 = vld [vmem:[%s4492_s24 + $0x78] sm:$0xff]  ;;  %v3259_v40 = vld [vmem:[%s4429_s13] ss:$0 sm:$0xff]  ;;  %949 = vmatpush.msra.mxu1 %v926_v39  ;;  %v136_v48 = vld [vmem:[%s4492_s24 + $0x88] sm:$0xff] }
  0x19   :  { %v135_v43 = vld [vmem:[%s4492_s24 + $0x80] sm:$0xff]  ;;  %v137_v53 = vld [vmem:[%s4492_s24 + $0x90] sm:$0xff]  ;;  %s3007_s24 = smov 96  }
  0x1a   :  { %1248 = vmatpush.msrb.mxu1 %v357_v19 }
  0x1c   :  { %2517 = vmatmul.msk.f32.gmra.mxu1 %vm143_vm2, %v120_v7  ;;  %2514 = vmatmul.msk.f32.gmra.mxu2 %vm71_vm0, %v65_v8 }
  0x1d   :  { %1249 = vmatpush.msrb.mxu1 %v356_v21 }
  0x1f   :  { %1250 = vmatpush.msrb.mxu1 %v355_v23 }
  0x21   :  { %1251 = vmatpush.msrb.mxu1 %v354_v26 }
  0x24   :  { %2518 = vmatmul.msk.f32.gmra.mxu1 %vm143_vm2, %v121_v9 }
  0x2c   :  { %2519 = vmatmul.msk.f32.gmra.mxu1 %vm143_vm2, %v122_v10 }
  0x34   :  { %2520 = vmatmul.msk.f32.gmra.mxu1 %vm143_vm2, %v123_v11 }
  0x3c   :  { %2521 = vmatmul.msk.f32.gmra.mxu1 %vm143_vm2, %v124_v12 }
  0x44   :  { %2522 = vmatmul.msk.f32.gmra.mxu1 %vm143_vm2, %v125_v13 }
  0x4c   :  { %2523 = vmatmul.msk.f32.gmra.mxu1 %vm143_vm2, %v126_v14 }
  0x54   :  { %2524 = vmatmul.msk.f32.gmra.mxu1 %vm143_vm2, %v127_v15 }
  0x5c   :  { %2525 = vmatmul.msk.f32.gmra.mxu1 %vm143_vm2, %v128_v16 }
  0x64   :  { %2526 = vmatmul.msk.f32.gmra.mxu1 %vm143_vm2, %v129_v17 }
  0x6c   :  { %2527 = vmatmul.msk.f32.gmra.mxu1 %vm143_vm2, %v130_v24 }
  0x74   :  { %2528 = vmatmul.msk.f32.gmra.mxu1 %vm143_vm2, %v131_v27 }
  0x7c   :  { %2529 = vmatmul.msk.f32.gmra.mxu1 %vm143_vm2, %v132_v28 }
  0x84   :  { %2530 = vmatmul.msk.f32.gmra.mxu1 %vm143_vm2, %v133_v29 }
  0x88   :  { %v104_v33 = vpop.f32.mrf.mxu0  ;;  %v107_v34 = vpop.f32.mrf.mxu1 }
  0x89   :  { %v3242_v37 = vadd.f32 %v2823_v32, %v104_v33  ;;  %v3244_v38 = vadd.f32 %v2823_v32, %v107_v34  ;;  %v2825_v34 = vld [vmem:[%s4433_s17] ss:$0 sm:$0xff] }
  0x8b   :  { %2535 = vmatmul.msk.f32.vlgmr.msrb.gmra.mxu2 %vm303_vm3, %v3242_v37  ;;  %2540 = vmatmul.msk.f32.vlgmr.msrb.gmra.mxu0 %vm303_vm3, %v3242_v37 }
  0x8c   :  { %2531 = vmatmul.msk.f32.gmra.mxu1 %vm143_vm2, %v134_v35  ;;  %2541 = vmatmul.msk.f32.vlgmr.msra.gmra.mxu3 %vm303_vm3, %v3244_v38 }
  0x8f   :  { %v110_v41 = vpop.f32.mrf.mxu2 }
  0x90   :  { %v3264_v44 = vadd.f32 %v2823_v32, %v110_v41 }
  0x91   :  { %v222_v42 = vpop.f32.mrf.mxu1 }
  0x92   :  { %v223_v45 = vadd.f32 %v3259_v40, %v222_v42 }
  0x93   :  { %2536 = vmatmul.msk.f32.gmra.mxu2 %vm303_vm3, %v3244_v38 }
  0x94   :  { %280 = vst.msk [vmem:[#allocation2] sm:$0xff] %vm279_vm4, %v223_v45  ;;  %2532 = vmatmul.msk.f32.gmra.mxu1 %vm143_vm2, %v135_v43  ;;  %2542 = vmatmul.msk.f32.gmra.mxu3 %vm303_vm3, %v3264_v44 }
  0x97   :  { %v113_v46 = vpop.f32.mrf.mxu2 }
  0x98   :  { %v3276_v49 = vadd.f32 %v2823_v32, %v113_v46 }
  0x99   :  { %v225_v47 = vpop.f32.mrf.mxu1 }
  0x9a   :  { %v226_v50 = vadd.f32 %v3259_v40, %v225_v47 }
  0x9b   :  { %2537 = vmatmul.msk.f32.gmra.mxu2 %vm303_vm3, %v3264_v44 }
  0x9c   :  { %281 = vst.msk [vmem:[#allocation2 + $0x8] sm:$0xff] %vm279_vm4, %v226_v50  ;;  %2533 = vmatmul.msk.f32.gmra.mxu1 %vm143_vm2, %v136_v48  ;;  %2543 = vmatmul.msk.f32.gmra.mxu3 %vm303_vm3, %v3276_v49 }
  0x9f   :  { %v116_v51 = vpop.f32.mrf.mxu2 }
  0xa0   :  { %v3288_v54 = vadd.f32 %v2823_v32, %v116_v51 }
  0xa1   :  { %v228_v52 = vpop.f32.mrf.mxu1 }
  0xa2   :  { %v229_v55 = vadd.f32 %v3259_v40, %v228_v52 }
  0xa3   :  { %2538 = vmatmul.msk.f32.gmra.mxu2 %vm303_vm3, %v3276_v49 }
  0xa4   :  { %282 = vst.msk [vmem:[#allocation2 + $0x10] sm:$0xff] %vm279_vm4, %v229_v55  ;;  %2534 = vmatmul.msk.f32.gmra.mxu1 %vm143_vm2, %v137_v53  ;;  %2544 = vmatmul.msk.f32.gmra.mxu3 %vm303_vm3, %v3288_v54  ;;  %v3355_v53 = vld [vmem:[%s4419_s3] sm:$0xff] }
  0xa9   :  { %v231_v56 = vpop.f32.mrf.mxu1 }
  0xaa   :  { %v232_v57 = vadd.f32 %v3259_v40, %v231_v56 }
  0xab   :  { %2539 = vmatmul.msk.f32.gmra.mxu2 %vm303_vm3, %v3288_v54 }
  0xac   :  { %283 = vst.msk [vmem:[#allocation2 + $0x18] sm:$0xff] %vm279_vm4, %v232_v57  ;;  %2661 = vmatmul.msk.f32.vlgmr.msra.gmra.mxu1 %vm303_vm3, %v3242_v37 }
  0xb1   :  { %v234_v58 = vpop.f32.mrf.mxu1 }
  0xb2   :  { %v235_v59 = vadd.f32 %v3259_v40, %v234_v58 }
  0xb4   :  { %284 = vst.msk [vmem:[#allocation2 + $0x20] sm:$0xff] %vm279_vm4, %v235_v59  ;;  %2662 = vmatmul.msk.f32.gmra.mxu1 %vm303_vm3, %v3244_v38  ;;  %v3366_v59 = vld [vmem:[%s4493_s1] sm:$0xff] }
  0xb9   :  { %v237_v60 = vpop.f32.mrf.mxu1 }
  0xba   :  { %v238_v61 = vadd.f32 %v3259_v40, %v237_v60 }
  0xbc   :  { %285 = vst.msk [vmem:[#allocation2 + $0x28] sm:$0xff] %vm279_vm4, %v238_v61  ;;  %2663 = vmatmul.msk.f32.gmra.mxu1 %vm303_vm3, %v3264_v44 }
  0xc1   :  { %v240_v62 = vpop.f32.mrf.mxu1 }
  0xc2   :  { %v241_v63 = vadd.f32 %v3259_v40, %v240_v62  ;;  %v3377_v62 = vld [vmem:[%s4419_s3 + $0x8] sm:$0xff] }
  0xc4   :  { %286 = vst.msk [vmem:[#allocation2 + $0x30] sm:$0xff] %vm279_vm4, %v241_v63  ;;  %2664 = vmatmul.msk.f32.gmra.mxu1 %vm303_vm3, %v3276_v49 }
  0xc9   :  { %v243_v0 = vpop.f32.mrf.mxu1 }
  0xca   :  { %v244_v1 = vadd.f32 %v3259_v40, %v243_v0 }
  0xcc   :  { %287 = vst.msk [vmem:[#allocation2 + $0x38] sm:$0xff] %vm279_vm4, %v244_v1  ;;  %2665 = vmatmul.msk.f32.gmra.mxu1 %vm303_vm3, %v3288_v54  ;;  %v3388_v1 = vld [vmem:[%s4493_s1 + $0x8] sm:$0xff] }
  0xd1   :  { %v246_v2 = vpop.f32.mrf.mxu1 }
  0xd2   :  { %v247_v3 = vadd.f32 %v3259_v40, %v246_v2  ;;  %v3397_v2 = vld [vmem:[%s4419_s3 + $0x10] sm:$0xff] }
  0xd4   :  { %288 = vst.msk [vmem:[#allocation2 + $0x40] sm:$0xff] %vm279_vm4, %v247_v3  ;;  %v3404_v3 = vld [vmem:[%s4493_s1 + $0x10] sm:$0xff] }
  0xd9   :  { %v249_v4 = vpop.f32.mrf.mxu1 }
  0xda   :  { %v250_v5 = vadd.f32 %v3259_v40, %v249_v4  ;;  %v3411_v4 = vld [vmem:[%s4419_s3 + $0x18] sm:$0xff] }
  0xdc   :  { %289 = vst.msk [vmem:[#allocation2 + $0x48] sm:$0xff] %vm279_vm4, %v250_v5  ;;  %v3418_v5 = vld [vmem:[%s4493_s1 + $0x18] sm:$0xff] }
  0xe1   :  { %v252_v6 = vpop.f32.mrf.mxu1 }
  0xe2   :  { %v253_v7 = vadd.f32 %v3259_v40, %v252_v6  ;;  %v3425_v6 = vld [vmem:[%s4419_s3 + $0x20] sm:$0xff] }
  0xe3   :  { %4494 = vst [vmem:[#allocation6_spill] sm:$0xff] %v3425_v6 }
  0xe4   :  { %290 = vst.msk [vmem:[#allocation2 + $0x50] sm:$0xff] %vm279_vm4, %v253_v7  ;;  %v3432_v7 = vld [vmem:[%s4493_s1 + $0x20] sm:$0xff] }
  0xe5   :  { %4495 = vst [vmem:[#allocation7_spill] sm:$0xff] %v3432_v7 }
  0xe9   :  { %v255_v8 = vpop.f32.mrf.mxu1 }
  0xea   :  { %v256_v9 = vadd.f32 %v3259_v40, %v255_v8  ;;  %v3439_v8 = vld [vmem:[%s4419_s3 + $0x28] sm:$0xff] }
  0xeb   :  { %4496 = vst [vmem:[#allocation8_spill] sm:$0xff] %v3439_v8 }
  0xec   :  { %291 = vst.msk [vmem:[#allocation2 + $0x58] sm:$0xff] %vm279_vm4, %v256_v9  ;;  %v3446_v9 = vld [vmem:[%s4493_s1 + $0x28] sm:$0xff] }
  0xed   :  { %4497 = vst [vmem:[#allocation9_spill] sm:$0xff] %v3446_v9 }
  0xf1   :  { %v258_v10 = vpop.f32.mrf.mxu1 }
  0xf2   :  { %v259_v11 = vadd.f32 %v3259_v40, %v258_v10  ;;  %v3453_v10 = vld [vmem:[%s4419_s3 + $0x30] sm:$0xff] }
  0xf3   :  { %4498 = vst [vmem:[#allocation10_spill] sm:$0xff] %v3453_v10 }
  0xf4   :  { %292 = vst.msk [vmem:[#allocation2 + $0x60] sm:$0xff] %vm279_vm4, %v259_v11  ;;  %v3460_v11 = vld [vmem:[%s4493_s1 + $0x30] sm:$0xff] }
  0xf5   :  { %4499 = vst [vmem:[#allocation11_spill] sm:$0xff] %v3460_v11 }
  0xf9   :  { %v261_v12 = vpop.f32.mrf.mxu1 }
  0xfa   :  { %v262_v13 = vadd.f32 %v3259_v40, %v261_v12  ;;  %v3467_v12 = vld [vmem:[%s4419_s3 + $0x38] sm:$0xff] }
  0xfb   :  { %4500 = vst [vmem:[#allocation12_spill] sm:$0xff] %v3467_v12 }
  0xfc   :  { %293 = vst.msk [vmem:[#allocation2 + $0x68] sm:$0xff] %vm279_vm4, %v262_v13  ;;  %v3474_v13 = vld [vmem:[%s4493_s1 + $0x38] sm:$0xff] }
  0xfd   :  { %4501 = vst [vmem:[#allocation13_spill] sm:$0xff] %v3474_v13 }
 0x101   :  { %v264_v14 = vpop.f32.mrf.mxu1 }
 0x102   :  { %v265_v15 = vadd.f32 %v3259_v40, %v264_v14 }
 0x104   :  { %294 = vst.msk [vmem:[#allocation2 + $0x70] sm:$0xff] %vm279_vm4, %v265_v15  ;;  %v3481_v15 = vld [vmem:[%s4493_s1 + $0x40] sm:$0xff] }
 0x105   :  { %4502 = vst [vmem:[#allocation14_spill] sm:$0xff] %v3481_v15 }
 0x108   :  { %v375_v47 = vpop.f32.mrf.mxu0 }
 0x109   :  { %v267_v16 = vpop.f32.mrf.mxu1 }
 0x10a   :  { %v268_v17 = vadd.f32 %v3259_v40, %v267_v16 }
 0x10c   :  { %295 = vst.msk [vmem:[#allocation2 + $0x78] sm:$0xff] %vm279_vm4, %v268_v17  ;;  %v3488_v17 = vld [vmem:[%s4419_s3 + $0x40] sm:$0xff] }
 0x10d   :  { %4503 = vst [vmem:[#allocation15_spill] sm:$0xff] %v3488_v17 }
 0x10e   :  { %v336_v19 = vpop.f32.mrf.mxu2 }
 0x10f   :  { %v378_v21 = vpop.f32.mrf.mxu3 }
 0x110   :  { %v390_v50 = vpack.c.bf16 %v378_v21, %v375_v47 }
 0x111   :  { %v270_v23 = vpop.f32.mrf.mxu1 }
 0x112   :  { %v271_v24 = vadd.f32 %v3259_v40, %v270_v23 }
 0x114   :  { %296 = vst.msk [vmem:[#allocation2 + $0x80] sm:$0xff] %vm279_vm4, %v271_v24  ;;  %v411_v24 = vld [vmem:[%s4493_s1 + $0x48] sm:$0xf] }
 0x116   :  { %v339_v26 = vpop.f32.mrf.mxu2 }
 0x117   :  { %v381_v27 = vpop.f32.mrf.mxu3  ;;  %v351_v56 = vpack.c.bf16 %v339_v26, %v336_v19  ;;  %v609_v26 = vunpack.c.l.b16 %v411_v24 }
 0x119   :  { %v273_v28 = vpop.f32.mrf.mxu1 }
 0x11a   :  { %v274_v29 = vadd.f32 %v3259_v40, %v273_v28  ;;  %v3501_v28 = vpack.c.b16 %v609_v26, %v609_v26 }
 0x11c   :  { %297 = vst.msk [vmem:[#allocation2 + $0x88] sm:$0xff] %vm279_vm4, %v274_v29  ;;  %v430_v29 = vld [vmem:[%s4419_s3 + $0x48] sm:$0xf] }
 0x11d   :  { %4504 = vst [vmem:[#allocation16_spill] sm:$0xff] %v3501_v28 }
 0x11e   :  { %v342_v30 = vpop.f32.mrf.mxu2 }
 0x11f   :  { %v384_v31 = vpop.f32.mrf.mxu3 }
 0x121   :  { %v276_v32 = vpop.f32.mrf.mxu1 }
 0x122   :  { %v277_v33 = vadd.f32 %v3259_v40, %v276_v32  ;;  %v391_v40 = vpack.c.bf16 %v384_v31, %v381_v27 }
 0x124   :  { %298 = vst.msk [vmem:[#allocation2 + $0x90] sm:$0xff] %vm279_vm4, %v277_v33 }
 0x126   :  { %v345_v35 = vpop.f32.mrf.mxu2 }
 0x127   :  { %v387_v36 = vpop.f32.mrf.mxu3  ;;  %v352_v55 = vpack.c.bf16 %v345_v35, %v342_v30  ;;  %v468_v30 = vunpack.c.l.b16 %v430_v29 }
 0x128   :  { %v392_v39 = vpack.c.bf16 %v387_v36, %v387_v36 }
 0x129   :  { %v951_v41 = vpop.f32.mrf.mxu1  ;;  %v3508_v32 = vpack.c.b16 %v468_v30, %v468_v30 }
 0x12a   :  { %v3344_v42 = vadd.f32 %v2825_v34, %v951_v41  ;;  %v512_v43 = vsel %vm510_vm5, %v392_v39, 0 }
 0x12b   :  { %519 = vmatpush.bf16.msra.mxu0 %v512_v43  ;;  %4505 = vst [vmem:[#allocation17_spill] sm:$0xff] %v3508_v32 }
 0x12c   :  { %1071 = vrot.lane.b32.xlu0 %v3344_v42, %s3005_s27 }
 0x12e   :  { %v348_v45 = vpop.f32.mrf.mxu2 }
 0x12f   :  { %v353_v46 = vpack.c.bf16 %v348_v45, %v348_v45  ;;  %520 = vmatpush.bf16.msra.mxu0 %v391_v40 }
 0x131   :  { %v954_v48 = vpop.f32.mrf.mxu1  ;;  %v651_v52 = vsel %vm510_vm5, %v353_v46, 0 }
 0x132   :  { %v3349_v51 = vadd.f32 %v2825_v34, %v954_v48  ;;  %658 = vmatpush.bf16.msra.mxu2 %v651_v52 }
 0x133   :  { %521 = vmatpush.bf16.msra.mxu0 %v390_v50 }
 0x134   :  { %1073 = vrot.lane.b32.xlu0 %v3349_v51, %s3005_s27 }
 0x136   :  { %659 = vmatpush.bf16.msra.mxu2 %v352_v55  ;;  %2581 = vmatmul.msk.bf16.vlgmr.msra.gmra.mxu0 %vm479_vm6, %v3355_v53 }
 0x139   :  { %v957_v57 = vpop.f32.mrf.mxu1 }
 0x13a   :  { %v3361_v58 = vadd.f32 %v2825_v34, %v957_v57  ;;  %660 = vmatpush.bf16.msra.mxu2 %v351_v56 }
 0x13c   :  { %1075 = vrot.lane.b32.xlu1 %v3361_v58, %s3005_s27 }
 0x13d   :  { %2627 = vmatmul.msk.bf16.vlgmr.msra.gmra.mxu2 %vm479_vm6, %v3366_v59 }
 0x141   :  { %v960_v60 = vpop.f32.mrf.mxu1 }
 0x142   :  { %v3372_v61 = vadd.f32 %v2825_v34, %v960_v60 }
 0x144   :  { %1077 = vrot.lane.b32.xlu1 %v3372_v61, %s3005_s27 }
 0x146   :  { %2582 = vmatmul.msk.bf16.gmra.mxu0 %vm479_vm6, %v3377_v62 }
 0x149   :  { %v963_v63 = vpop.f32.mrf.mxu1 }
 0x14a   :  { %v3383_v0 = vadd.f32 %v2825_v34, %v963_v63 }
 0x14c   :  { %1079 = vrot.lane.b32.xlu2 %v3383_v0, %s3005_s27 }
 0x14d   :  { %2628 = vmatmul.msk.bf16.gmra.mxu2 %vm479_vm6, %v3388_v1 }
 0x156   :  { %2583 = vmatmul.msk.bf16.gmra.mxu0 %vm479_vm6, %v3397_v2 }
 0x15d   :  { %2629 = vmatmul.msk.bf16.gmra.mxu2 %vm479_vm6, %v3404_v3 }
 0x166   :  { %2584 = vmatmul.msk.bf16.gmra.mxu0 %vm479_vm6, %v3411_v4 }
 0x16d   :  { %2630 = vmatmul.msk.bf16.gmra.mxu2 %vm479_vm6, %v3418_v5 }
 0x176   :  { %2585 = vmatmul.msk.bf16.gmra.mxu0 %vm479_vm6, %v3425_v6  ;;  %v3538_v6 = vld [vmem:[#allocation2 + $0x50] sm:$0xff] }
 0x17d   :  { %2631 = vmatmul.msk.bf16.gmra.mxu2 %vm479_vm6, %v3432_v7 }
 0x186   :  { %2586 = vmatmul.msk.bf16.gmra.mxu0 %vm479_vm6, %v3439_v8 }
 0x18d   :  { %2632 = vmatmul.msk.bf16.gmra.mxu2 %vm479_vm6, %v3446_v9 }
 0x196   :  { %2587 = vmatmul.msk.bf16.gmra.mxu0 %vm479_vm6, %v3453_v10 }
 0x19d   :  { %2633 = vmatmul.msk.bf16.gmra.mxu2 %vm479_vm6, %v3460_v11 }
 0x1a6   :  { %2588 = vmatmul.msk.bf16.gmra.mxu0 %vm479_vm6, %v3467_v12  ;;  %v3531_v12 = vld [vmem:[#allocation2 + $0x60] sm:$0xff] }
 0x1ad   :  { %2634 = vmatmul.msk.bf16.gmra.mxu2 %vm479_vm6, %v3474_v13 }
 0x1b3   :  { %v523_v14 = vpop.f32.mrf.mxu0 }
 0x1b6   :  { %2589 = vmatmul.msk.bf16.gmra.mxu0 %vm479_vm6, %v3488_v17 }
 0x1bb   :  { %v3483_v16 = vpop.f32.mrf.mxu0 }
 0x1bd   :  { %2635 = vmatmul.msk.bf16.gmra.mxu2 %vm479_vm6, %v3481_v15 }
 0x1c0   :  { %v662_v19 = vpop.f32.mrf.mxu2 }
 0x1c1   :  { %v3494_v21 = vadd.f32 %v662_v19, %v523_v14 }
 0x1c3   :  { %v528_v23 = vpop.f32.mrf.mxu0 }
 0x1c6   :  { %2590 = vmatmul.msk.bf16.gmra.mxu0 %vm479_vm6, %v3508_v32  ;;  %v3526_v32 = vld [vmem:[#allocation2 + $0x68] sm:$0xff] }
 0x1c8   :  { %v3499_v27 = vpop.f32.mrf.mxu2 }
 0x1cb   :  { %v3506_v31 = vpop.f32.mrf.mxu0 }
 0x1cd   :  { %2636 = vmatmul.msk.bf16.gmra.mxu2 %vm479_vm6, %v3501_v28 }
 0x1d0   :  { %v667_v33 = vpop.f32.mrf.mxu2 }
 0x1d1   :  { %v3514_v34 = vadd.f32 %v667_v33, %v528_v23 }
 0x1d3   :  { %v533_v35 = vpop.f32.mrf.mxu0 }
 0x1d8   :  { %v3516_v36 = vpop.f32.mrf.mxu2 }
 0x1db   :  { %v3518_v39 = vpop.f32.mrf.mxu0 }
 0x1e0   :  { %v672_v41 = vpop.f32.mrf.mxu2 }
 0x1e1   :  { %v3520_v43 = vadd.f32 %v672_v41, %v533_v35 }
 0x1e3   :  { %v538_v40 = vpop.f32.mrf.mxu0 }
 0x1e8   :  { %v674_v45 = vpop.f32.mrf.mxu2 }
 0x1eb   :  { %v540_v46 = vpop.f32.mrf.mxu0 }
 0x1f0   :  { %v677_v47 = vpop.f32.mrf.mxu2 }
 0x1f1   :  { %v3522_v48 = vadd.f32 %v677_v47, %v538_v40  ;;  %v3524_v40 = vld [vmem:[#allocation2 + $0x70] sm:$0xff] }
 0x1f3   :  { %v543_v50 = vpop.f32.mrf.mxu0 }
 0x1f8   :  { %v679_v52 = vpop.f32.mrf.mxu2 }
 0x1fb   :  { %v545_v55 = vpop.f32.mrf.mxu0 }
 0x200   :  { %v682_v56 = vpop.f32.mrf.mxu2 }
 0x201   :  { %v683_v57 = vadd.f32 %v682_v56, %v543_v50  ;;  %v3528_v50 = vld [vmem:[#allocation2 + $0x78] sm:$0xff] }
 0x203   :  { %v548_v60 = vpop.f32.mrf.mxu0 }
 0x208   :  { %v684_v63 = vpop.f32.mrf.mxu2 }
 0x20b   :  { %v550_v14 = vpop.f32.mrf.mxu0 }
 0x210   :  { %v687_v19 = vpop.f32.mrf.mxu2 }
 0x213   :  { %v553_v23 = vpop.f32.mrf.mxu0 }
 0x218   :  { %v689_v24 = vpop.f32.mrf.mxu2 }
 0x219   :  { %v690_v10 = vadd.f32 %v689_v24, %v550_v14 }
 0x21b   :  { %v555_v26 = vpop.f32.mrf.mxu0 }
 0x220   :  { %v692_v29 = vpop.f32.mrf.mxu2 }
 0x221   :  { %v693_v56 = vadd.f32 %v692_v29, %v553_v23  ;;  %v685_v23 = vadd.f32 %v684_v63, %v545_v55  ;;  %v3547_v55 = vld [vmem:[#allocation2 + $0x38] sm:$0xff] }
 0x223   :  { %v558_v30 = vpop.f32.mrf.mxu0 }
 0x228   :  { %v694_v33 = vpop.f32.mrf.mxu2 }
 0x229   :  { %v695_v47 = vadd.f32 %v694_v33, %v555_v26  ;;  %v688_v26 = vadd.f32 %v687_v19, %v548_v60  ;;  %v742_v33 = vadd.f32 %v3531_v12, %v693_v56  ;;  %v680_v19 = vadd.f32 %v679_v52, %v540_v46 }
 0x22b   :  { %v560_v41 = vpop.f32.mrf.mxu0  ;;  %v743_v9 = vadd.f32 %v3526_v32, %v695_v47  ;;  %v740_v24 = vadd.f32 %v3538_v6, %v688_v26  ;;  %v3544_v47 = vld [vmem:[#allocation2 + $0x40] sm:$0xff]  ;;  %v737_v63 = vadd.f32 %v3547_v55, %v680_v19 }
 0x22d   :  { %v762_v29 = vmax.f32 %v743_v9, 0.0  ;;  %v3550_v9 = vld [vmem:[#allocation2 + $0x30] sm:$0xff] }
 0x22e   :  { %v736_v52 = vadd.f32 %v3550_v9, %v3522_v48  ;;  %v3567_v48 = vld [vmem:[#allocation2 + $0x10] sm:$0xff] }
 0x230   :  { %v697_v35 = vpop.f32.mrf.mxu2 }
 0x231   :  { %v698_v28 = vadd.f32 %v697_v35, %v558_v30  ;;  %v3535_v35 = vld [vmem:[#allocation2 + $0x58] sm:$0xff] }
 0x233   :  { %v744_v17 = vadd.f32 %v3524_v40, %v698_v28  ;;  %v563_v11 = vpop.f32.mrf.mxu0 }
 0x235   :  { %v763_v8 = vmax.f32 %v744_v17, 0.0 }
 0x238   :  { %v699_v15 = vpop.f32.mrf.mxu2 }
 0x239   :  { %v700_v13 = vadd.f32 %v699_v15, %v560_v41  ;;  %v741_v15 = vadd.f32 %v3535_v35, %v690_v10  ;;  %v3541_v41 = vld [vmem:[#allocation2 + $0x48] sm:$0xff]  ;;  %v675_v10 = vadd.f32 %v674_v45, %v3518_v39  ;;  %v756_v45 = vmax.f32 %v737_v63, 0.0 }
 0x23a   :  { %v739_v17 = vadd.f32 %v3541_v41, %v685_v23  ;;  %v732_v63 = vadd.f32 %v3567_v48, %v3514_v34 }
 0x23b   :  { %v745_v30 = vadd.f32 %v3528_v50, %v700_v13  ;;  %v761_v13 = vmax.f32 %v742_v33, 0.0  ;;  %v565_v60 = vpop.f32.mrf.mxu0 }
 0x23c   :  { %v758_v33 = vmax.f32 %v739_v17, 0.0  ;;  %v755_v17 = vmax.f32 %v736_v52, 0.0 }
 0x23d   :  { %v764_v7 = vmax.f32 %v745_v30, 0.0  ;;  %v774_v56 = vpack.c.bf16 %v762_v29, %v761_v13  ;;  %v760_v30 = vmax.f32 %v741_v15, 0.0  ;;  %v3558_v15 = vld [vmem:[#allocation2 + $0x20] sm:$0xff]  ;;  %v3563_v13 = vld [vmem:[#allocation2 + $0x18] sm:$0xff] }
 0x23e   :  { %v734_v19 = vadd.f32 %v3558_v15, %v3520_v43 }
 0x23f   :  { %v775_v28 = vpack.c.bf16 %v764_v7, %v763_v8  ;;  %v738_v7 = vadd.f32 %v3544_v47, %v683_v57  ;;  %v759_v8 = vmax.f32 %v740_v24, 0.0  ;;  %v670_v57 = vadd.f32 %v3516_v36, %v3506_v31 }
 0x240   :  { %v702_v14 = vpop.f32.mrf.mxu2  ;;  %v771_v31 = vpack.c.bf16 %v756_v45, %v755_v17  ;;  %v753_v43 = vmax.f32 %v734_v19, 0.0  ;;  %v751_v19 = vmax.f32 %v732_v63, 0.0 }
 0x241   :  { %820 = vmatpush.bf16.msrb.mxu3 %v775_v28  ;;  %v773_v26 = vpack.c.bf16 %v760_v30, %v759_v8  ;;  %v3554_v28 = vld [vmem:[#allocation2 + $0x28] sm:$0xff]  ;;  %v757_v23 = vmax.f32 %v738_v7, 0.0  ;;  %v733_v30 = vadd.f32 %v3563_v13, %v670_v57  ;;  %v703_v52 = vadd.f32 %v702_v14, %v563_v11 }
 0x242   :  { %v735_v29 = vadd.f32 %v3554_v28, %v675_v10  ;;  %v3572_v7 = vld [vmem:[#allocation2 + $0x8] sm:$0xff]  ;;  %v3574_v10 = vld [vmem:[#allocation2 + $0x90] sm:$0xff] }
 0x243   :  { %v772_v39 = vpack.c.bf16 %v758_v33, %v757_v23  ;;  %v568_v24 = vpop.f32.mrf.mxu0  ;;  %v3578_v33 = vld [vmem:[#allocation2] sm:$0xff]  ;;  %v752_v57 = vmax.f32 %v733_v30, 0.0 }
 0x244   :  { %v754_v36 = vmax.f32 %v735_v29, 0.0  ;;  %v3581_v29 = vld [vmem:[#allocation2 + $0x80] sm:$0xff]  ;;  %v730_v34 = vadd.f32 %v3578_v33, %v3494_v21  ;;  %v2807_v21 = vld [vmem:[%s4420_s4 + $0x4] sm:$0xf0] }
 0x245   :  { %821 = vmatpush.bf16.msrb.mxu3 %v774_v56  ;;  %v665_v56 = vadd.f32 %v3499_v27, %v3483_v16  ;;  %4506 = vst [vmem:[#allocation18_spill] sm:$0xff] %v3581_v29  ;;  %v746_v11 = vadd.f32 %v3581_v29, %v703_v52 }
 0x246   :  { %v770_v27 = vpack.c.bf16 %v754_v36, %v753_v43  ;;  %v2639_v36 = vld [vmem:[%s4420_s4] sm:$0xf] }
 0x247   :  { %v731_v16 = vadd.f32 %v3572_v7, %v665_v56  ;;  %v3597_v52 = vor.u32 %v2807_v21, %v2639_v36  ;;  %v3642_v36 = vld [vmem:[%s4430_s14 + $0x38] sm:$0xff]  ;;  %v3647_v21 = vld [vmem:[%s4430_s14 + $0x30] sm:$0xff] }
 0x248   :  { %v704_v46 = vpop.f32.mrf.mxu2  ;;  %4513 = vst [vmem:[#allocation25_spill] sm:$0xff] %v3642_v36 }
 0x249   :  { %822 = vmatpush.bf16.msrb.mxu3 %v773_v26  ;;  %v705_v23 = vadd.f32 %v704_v46, %v565_v60  ;;  %v769_v60 = vpack.c.bf16 %v752_v57, %v751_v19  ;;  %v750_v46 = vmax.f32 %v731_v16, 0.0  ;;  %4507 = vst [vmem:[#allocation19_spill] sm:$0xff] %v3597_v52  ;;  %v2647_v16 = vld [vmem:[%s4420_s4 + $0x10] sm:$0xf]  ;;  %v2806_v19 = vld [vmem:[%s4420_s4 + $0x4] sm:$0xf] }
 0x24a   :  { %4514 = vst [vmem:[#allocation26_spill] sm:$0xff] %v3647_v21 }
 0x24b   :  { %v570_v17 = vpop.f32.mrf.mxu0 }
 0x24d   :  { %823 = vmatpush.bf16.msrb.mxu3 %v772_v39  ;;  %v3583_v39 = vld [vmem:[#allocation2 + $0x88] sm:$0xff] }
 0x24e   :  { %v747_v14 = vadd.f32 %v3583_v39, %v705_v23 }
 0x250   :  { %v707_v8 = vpop.f32.mrf.mxu2  ;;  %v766_v63 = vmax.f32 %v747_v14, 0.0  ;;  %v2808_v14 = vld [vmem:[%s4420_s4 + $0x14] sm:$0xf] }
 0x251   :  { %824 = vmatpush.bf16.msrb.mxu3 %v771_v31  ;;  %v708_v26 = vadd.f32 %v707_v8, %v568_v24  ;;  %v749_v31 = vmax.f32 %v730_v34, 0.0  ;;  %v765_v8 = vmax.f32 %v746_v11, 0.0 }
 0x253   :  { %v748_v45 = vadd.f32 %v3574_v10, %v708_v26  ;;  %v768_v43 = vpack.c.bf16 %v750_v46, %v749_v31  ;;  %v776_v23 = vpack.c.bf16 %v766_v63, %v765_v8  ;;  %v3654_v63 = vld [vmem:[%s4430_s14 + $0x28] sm:$0xff] }
 0x254   :  { %4515 = vst [vmem:[#allocation27_spill] sm:$0xff] %v3654_v63 }
 0x255   :  { %825 = vmatpush.bf16.msrb.mxu3 %v770_v27  ;;  %v767_v24 = vmax.f32 %v748_v45, 0.0  ;;  %v2809_v27 = vld [vmem:[%s4420_s4 + $0x14] sm:$0xf0]  ;;  %v782_v45 = vld [vmem:[%s4420_s4 + $0x20] sm:$0x77] }
 0x256   :  { %v3606_v57 = vor.u32 %v2809_v27, %v2647_v16  ;;  %v796_v17 = vunpack.c.l.b16 %v782_v45  ;;  %v3678_v27 = vld [vmem:[%s4430_s14 + $0x8] sm:$0xff] }
 0x257   :  { %v777_v56 = vpack.c.bf16 %v767_v24, %v767_v24  ;;  %v2641_v24 = vld [vmem:[%s4420_s4 + $0x8] sm:$0xf0]  ;;  %4519 = vst [vmem:[#allocation31_spill] sm:$0xff] %v3678_v27 }
 0x258   :  { %v709_v30 = vpop.f32.mrf.mxu2  ;;  %4508 = vst [vmem:[#allocation20_spill] sm:$0xff] %v3606_v57  ;;  %v3612_v34 = vpack.c.b16 %v796_v17, %v796_v17  ;;  %v3621_v11 = vor.u32 %v2806_v19, %v2641_v24 }
 0x259   :  { %826 = vmatpush.bf16.msrb.mxu3 %v769_v60  ;;  %v818_v26 = vsel %vm201_vm1, %v777_v56, 0  ;;  %v2649_v60 = vld [vmem:[%s4420_s4 + $0x18] sm:$0xf0]  ;;  %v797_v56 = vunpack.c.h.b16 %v782_v45  ;;  %v3684_v45 = vld [vmem:[%s4430_s14] sm:$0xff] }
 0x25a   :  { %4509 = vst [vmem:[#allocation21_spill] sm:$0xff] %v3612_v34  ;;  %v3631_v46 = vor.u32 %v2808_v14, %v2649_v60 }
 0x25b   :  { %4510 = vst [vmem:[#allocation22_spill] sm:$0xff] %v3621_v11  ;;  %v3635_v30 = vpack.c.b16 %v797_v56, %v797_v56 }
 0x25c   :  { %4511 = vst [vmem:[#allocation23_spill] sm:$0xff] %v3631_v46 }
 0x25d   :  { %827 = vmatpush.bf16.msrb.mxu3 %v768_v43  ;;  %4512 = vst [vmem:[#allocation24_spill] sm:$0xff] %v3635_v30  ;;  %v3659_v43 = vld [vmem:[%s4430_s14 + $0x20] sm:$0xff] }
 0x25e   :  { %4516 = vst [vmem:[#allocation28_spill] sm:$0xff] %v3659_v43 }
 0x25f   :  { %4520 = vst [vmem:[#allocation32_spill] sm:$0xff] %v3684_v45 }
 0x260   :  { %828 = vmatmul.bf16.vlgmr.msrb.gmra.mxu3 %v3597_v52 }
 0x261   :  { %849 = vmatpush.bf16.msra.mxu3 %v818_v26  ;;  %v3665_v26 = vld [vmem:[%s4430_s14 + $0x18] sm:$0xff] }
 0x262   :  { %4517 = vst [vmem:[#allocation29_spill] sm:$0xff] %v3665_v26 }
 0x265   :  { %850 = vmatpush.bf16.msra.mxu3 %v776_v23  ;;  %v3671_v23 = vld [vmem:[%s4430_s14 + $0x10] sm:$0xff] }
 0x266   :  { %4518 = vst [vmem:[#allocation30_spill] sm:$0xff] %v3671_v23 }
 0x269   :  { %902 = vmatpush.msrb.mxu3 %v3642_v36 }
 0x26b   :  { %903 = vmatpush.msrb.mxu3 %v3647_v21 }
 0x26d   :  { %904 = vmatpush.msrb.mxu3 %v3654_v63 }
 0x26f   :  { %905 = vmatpush.msrb.mxu3 %v3659_v43 }
 0x270   :  { %833 = vmatmul.bf16.gmra.mxu3 %v3606_v57 }
 0x271   :  { %906 = vmatpush.msrb.mxu3 %v3665_v26 }
 0x273   :  { %907 = vmatpush.msrb.mxu3 %v3671_v23 }
 0x275   :  { %908 = vmatpush.msrb.mxu3 %v3678_v27 }
 0x277   :  { %909 = vmatpush.msrb.mxu3 %v3684_v45 }
 0x280   :  { %838 = vmatmul.bf16.gmra.mxu3 %v3612_v34 }
 0x290   :  { %2653 = vmatmul.msk.bf16.vlgmr.msra.gmra.mxu3 %vm807_vm7, %v3621_v11 }
 0x291   :  { %1213 = vmatpush.msra.mxu3 %v3178_v18 }
 0x293   :  { %1214 = vmatpush.msra.mxu3 %v3186_v20 }
 0x295   :  { %1215 = vmatpush.msra.mxu3 %v3196_v22 }
 0x297   :  { %1216 = vmatpush.msra.mxu3 %v3208_v25 }
 0x2a0   :  { %2654 = vmatmul.msk.bf16.gmra.mxu3 %vm807_vm7, %v3631_v46 }
 0x2b0   :  { %2655 = vmatmul.msk.bf16.gmra.mxu3 %vm807_vm7, %v3635_v30 }
 0x2e3   :  { %v829_v31 = vpop.f32.mrf.mxu3 }
 0x2eb   :  { %v831_v8 = vpop.f32.mrf.mxu3 }
 0x2f3   :  { %v834_v16 = vpop.f32.mrf.mxu3 }
 0x2fb   :  { %v836_v17 = vpop.f32.mrf.mxu3 }
 0x303   :  { %v839_v19 = vpop.f32.mrf.mxu3 }
 0x30b   :  { %v841_v24 = vpop.f32.mrf.mxu3 }
 0x313   :  { %v852_v14 = vpop.f32.mrf.mxu3 }
 0x314   :  { %v853_v60 = vadd.f32 %v852_v14, %v829_v31  ;;  %v3699_v31 = vld [vmem:[%s4431_s15] sm:$0xff] }
 0x315   :  { %4521 = vst [vmem:[#allocation33_spill] sm:$0xff] %v3699_v31 }
 0x316   :  { %2656 = vmatmul.msk.f32.vlgmr.msrb.gmra.mxu3 %vm279_vm4, %v853_v60 }
 0x31b   :  { %v854_v56 = vpop.f32.mrf.mxu3 }
 0x31c   :  { %v855_v30 = vadd.f32 %v854_v56, %v831_v8 }
 0x31e   :  { %2657 = vmatmul.msk.f32.gmra.mxu3 %vm279_vm4, %v855_v30 }
 0x323   :  { %v857_v34 = vpop.f32.mrf.mxu3 }
 0x324   :  { %v858_v46 = vadd.f32 %v857_v34, %v834_v16  ;;  %v3709_v16 = vld [vmem:[%s4431_s15 + $0x8] sm:$0xff] }
 0x325   :  { %4522 = vst [vmem:[#allocation34_spill] sm:$0xff] %v3709_v16 }
 0x326   :  { %2658 = vmatmul.msk.f32.gmra.mxu3 %vm279_vm4, %v858_v46 }
 0x32b   :  { %v859_v18 = vpop.f32.mrf.mxu3 }
 0x32c   :  { %v860_v20 = vadd.f32 %v859_v18, %v836_v17 }
 0x32e   :  { %2659 = vmatmul.msk.f32.gmra.mxu3 %vm279_vm4, %v860_v20 }
 0x333   :  { %v862_v22 = vpop.f32.mrf.mxu3 }
 0x334   :  { %v863_v25 = vadd.f32 %v862_v22, %v839_v19 }
 0x336   :  { %2660 = vmatmul.msk.f32.gmra.mxu3 %vm279_vm4, %v863_v25 }
 0x33b   :  { %v864_v24 = vpop.f32.mrf.mxu3 }
 0x399   :  { %v911_v8 = vpop.f32.mrf.mxu3 }
 0x39a   :  { %v3702_v30 = vadd.f32 %v911_v8, %v3699_v31 }
 0x39c   :  { %v966_v34 = vadd.f32 %v3344_v42, %v3702_v30  ;;  %v3719_v42 = vld [vmem:[%s4431_s15 + $0x10] sm:$0xff] }
 0x39d   :  { %4523 = vst [vmem:[#allocation35_spill] sm:$0xff] %v3719_v42 }
 0x39e   :  { %v2666_v46 = vmul.f32 -1.442695, %v966_v34 }
 0x3a0   :  { %2826 = vpow2.f32 %v2666_v46  ;;  %v3729_v46 = vld [vmem:[%s4431_s15 + $0x18] sm:$0xff] }
 0x3a1   :  { %v914_v17 = vpop.f32.mrf.mxu3  ;;  %4524 = vst [vmem:[#allocation36_spill] sm:$0xff] %v3729_v46 }
 0x3a2   :  { %v3712_v19 = vadd.f32 %v914_v17, %v3709_v16 }
 0x3a4   :  { %v967_v14 = vadd.f32 %v3349_v51, %v3712_v19 }
 0x3a6   :  { %v2827_v60 = vpop.eup %2826  ;;  %v2667_v56 = vmul.f32 -1.442695, %v967_v14 }
 0x3a7   :  { %v986_v18 = vadd.f32 1.0, %v2827_v60 }
 0x3a8   :  { %2828 = vpow2.f32 %v2667_v56 }
 0x3a9   :  { %2830 = vrcp.f32 %v986_v18  ;;  %v917_v20 = vpop.f32.mrf.mxu3  ;;  %vm996_vm9 = vweird.f32 %v986_v18 }
 0x3aa   :  { %v3722_v22 = vadd.f32 %v917_v20, %v3719_v42  ;;  %v1002_v20 = vand.u32 2147483648, %v986_v18 }
 0x3ac   :  { %v968_v25 = vadd.f32 %v3361_v58, %v3722_v22 }
 0x3ae   :  { %v2829_v24 = vpop.eup %2828  ;;  %v2668_v8 = vmul.f32 -1.442695, %v968_v25 }
 0x3af   :  { %v2831_v51 = vpop.eup %2830  ;;  %v987_v34 = vadd.f32 1.0, %v2829_v24  ;;  %v1000_v24 = vand.u32 2147483647, %v986_v18 }
 0x3b0   :  { %2832 = vpow2.f32 %v2668_v8  ;;  %v992_v17 = vmul.f32 %v2831_v51, %v986_v18  ;;  %vm997_vm8 = vweird.f32 %v2831_v51  ;;  %v1072_v8 = vpop.permute.xlu0 %1071 }
 0x3b1   :  { %2834 = vrcp.f32 %v987_v34  ;;  %v920_v14 = vpop.f32.mrf.mxu3  ;;  %vm998_vm10 = vmor %vm996_vm9, %vm997_vm8  ;;  %vm1001_vm11 = vcmp.eq.f32.partialorder %v1000_v24, 8.507059e+37  ;;  %vm1011_vm13 = vweird.f32 %v987_v34 }
 0x3b2   :  { %v3732_v60 = vadd.f32 %v920_v14, %v3729_v46  ;;  %v993_v56 = vsub.f32 1.0, %v992_v17  ;;  %v3739_v14 = vld [vmem:[%s4431_s15 + $0x20] sm:$0x3f]  ;;  %v1003_v17 = vor.u32 1.1754944e-38, %v1002_v20 }
 0x3b3   :  { %4525 = vst [vmem:[#allocation37_spill] sm:$0xff] %v3739_v14 }
 0x3b4   :  { %v969_v58 = vadd.f32 %v3372_v61, %v3732_v60  ;;  %v994_v25 = vmul.f32 %v2831_v51, %v993_v56 }
 0x3b6   :  { %v2833_v42 = vpop.eup %2832  ;;  %v2669_v16 = vmul.f32 -1.442695, %v969_v58  ;;  %v995_v31 = vadd.f32 %v2831_v51, %v994_v25  ;;  %v1017_v25 = vand.u32 2147483648, %v987_v34 }
 0x3b7   :  { %v2835_v57 = vpop.eup %2834  ;;  %v988_v45 = vadd.f32 1.0, %v2833_v42 }
 0x3b8   :  { %2836 = vpow2.f32 %v2669_v16  ;;  %v999_v46 = vsel %vm998_vm10, %v2831_v51, %v995_v31  ;;  %v1007_v61 = vmul.f32 %v2835_v57, %v987_v34  ;;  %vm1012_vm12 = vweird.f32 %v2835_v57 }
 0x3b9   :  { %2838 = vrcp.f32 %v988_v45  ;;  %v923_v56 = vpop.f32.mrf.mxu3  ;;  %v3741_v27 = vsel %vm1001_vm11, %v1003_v17, %v999_v46  ;;  %v1015_v31 = vand.u32 2147483647, %v987_v34  ;;  %vm1013_vm14 = vmor %vm1011_vm13, %vm1012_vm12  ;;  %v1032_v26 = vand.u32 2147483648, %v988_v45 }
 0x3ba   :  { %v3744_v18 = vadd.f32 %v923_v56, %v3739_v14  ;;  %v1086_v42 = vmul.f32 %v1072_v8, %v3741_v27  ;;  %v1008_v58 = vsub.f32 1.0, %v1007_v61  ;;  %v1018_v56 = vor.u32 1.1754944e-38, %v1017_v25  ;;  %v1074_v14 = vpop.permute.xlu0 %1073 }
 0x3bb   :  { %vm1016_vm15 = vcmp.eq.f32.partialorder %v1015_v31, 8.507059e+37  ;;  %v1030_v34 = vand.u32 2147483647, %v988_v45  ;;  %vm1026_vm2 = vweird.f32 %v988_v45 }
 0x3bc   :  { %v970_v23 = vadd.f32 %v3383_v0, %v3744_v18  ;;  %1096 = vrot.lane.b32.xlu2 %v1086_v42, %s3005_s27  ;;  %v1009_v16 = vmul.f32 %v2835_v57, %v1008_v58 }
 0x3bd   :  { %vm1031_vm9 = vcmp.eq.f32.partialorder %v1030_v34, 8.507059e+37 }
 0x3be   :  { %v2837_v51 = vpop.eup %2836  ;;  %v2670_v20 = vmul.f32 -1.442695, %v970_v23  ;;  %v1010_v24 = vadd.f32 %v2835_v57, %v1009_v16 }
 0x3bf   :  { %v2839_v46 = vpop.eup %2838  ;;  %v989_v17 = vadd.f32 1.0, %v2837_v51 }
 0x3c0   :  { %2840 = vpow2.f32 %v2670_v20  ;;  %v1014_v8 = vsel %vm1013_vm14, %v2835_v57, %v1010_v24  ;;  %v1022_v61 = vmul.f32 %v2839_v46, %v988_v45  ;;  %vm1027_vm0 = vweird.f32 %v2839_v46  ;;  %v1076_v57 = vpop.permute.xlu1 %1075 }
 0x3c1   :  { %2842 = vrcp.f32 %v989_v17  ;;  %v3750_v0 = vsel %vm1016_vm15, %v1018_v56, %v1014_v8  ;;  %vm1028_vm8 = vmor %vm1026_vm2, %vm1027_vm0  ;;  %v1033_v20 = vor.u32 1.1754944e-38, %v1032_v26  ;;  %v1045_v45 = vand.u32 2147483647, %v989_v17 }
 0x3c2   :  { %v1087_v42 = vmul.f32 %v1074_v14, %v3750_v0  ;;  %v1023_v58 = vsub.f32 1.0, %v1022_v61  ;;  %vm1041_vm11 = vweird.f32 %v989_v17 }
 0x3c3   :  { %vm1046_vm13 = vcmp.eq.f32.partialorder %v1045_v45, 8.507059e+37 }
 0x3c4   :  { %1098 = vrot.lane.b32.xlu0 %v1087_v42, %s3005_s27  ;;  %v1024_v23 = vmul.f32 %v2839_v46, %v1023_v58  ;;  %v1047_v42 = vand.u32 2147483648, %v989_v17 }
 0x3c6   :  { %v2841_v16 = vpop.eup %2840  ;;  %v1025_v51 = vadd.f32 %v2839_v46, %v1024_v23  ;;  %v1048_v26 = vor.u32 1.1754944e-38, %v1047_v42 }
 0x3c7   :  { %v2843_v25 = vpop.eup %2842  ;;  %v990_v31 = vadd.f32 1.0, %v2841_v16 }
 0x3c8   :  { %v1029_v24 = vsel %vm1028_vm8, %v2839_v46, %v1025_v51  ;;  %v1037_v56 = vmul.f32 %v2843_v25, %v989_v17  ;;  %vm1042_vm10 = vweird.f32 %v2843_v25  ;;  %v1078_v51 = vpop.permute.xlu1 %1077 }
 0x3c9   :  { %2844 = vrcp.f32 %v990_v31  ;;  %v3754_v14 = vsel %vm1031_vm9, %v1033_v20, %v1029_v24  ;;  %vm1043_vm12 = vmor %vm1041_vm11, %vm1042_vm10  ;;  %vm1056_vm15 = vweird.f32 %v990_v31 }
 0x3ca   :  { %v1088_v8 = vmul.f32 %v1076_v57, %v3754_v14  ;;  %v1038_v61 = vsub.f32 1.0, %v1037_v56  ;;  %v1062_v56 = vand.u32 2147483648, %v990_v31 }
 0x3cc   :  { %1100 = vrot.lane.b32.xlu1 %v1088_v8, %s3005_s27  ;;  %v1039_v58 = vmul.f32 %v2843_v25, %v1038_v61  ;;  %v1060_v61 = vand.u32 2147483647, %v990_v31  ;;  %v1063_v17 = vor.u32 1.1754944e-38, %v1062_v56 }
 0x3ce   :  { %v1040_v23 = vadd.f32 %v2843_v25, %v1039_v58  ;;  %vm1061_vm2 = vcmp.eq.f32.partialorder %v1060_v61, 8.507059e+37  ;;  %v1121_v61 = vsub.f32 1.0, %v3741_v27 }
 0x3cf   :  { %v2845_v16 = vpop.eup %2844 }
 0x3d0   :  { %v1044_v46 = vsel %vm1043_vm12, %v2843_v25, %v1040_v23  ;;  %v1052_v34 = vmul.f32 %v2845_v16, %v990_v31  ;;  %vm1057_vm14 = vweird.f32 %v2845_v16  ;;  %v1080_v25 = vpop.permute.xlu2 %1079 }
 0x3d1   :  { %v3758_v20 = vsel %vm1046_vm13, %v1048_v26, %v1044_v46  ;;  %vm1058_vm0 = vmor %vm1056_vm15, %vm1057_vm14 }
 0x3d2   :  { %v1089_v57 = vmul.f32 %v1078_v51, %v3758_v20  ;;  %v1053_v24 = vsub.f32 1.0, %v1052_v34 }
 0x3d4   :  { %1102 = vrot.lane.b32.xlu2 %v1089_v57, %s3005_s27  ;;  %v1054_v8 = vmul.f32 %v2845_v16, %v1053_v24 }
 0x3d6   :  { %v1055_v58 = vadd.f32 %v2845_v16, %v1054_v8 }
 0x3d8   :  { %v1059_v42 = vsel %vm1058_vm0, %v2845_v16, %v1055_v58 }
 0x3d9   :  { %v3762_v45 = vsel %vm1061_vm2, %v1063_v17, %v1059_v42 }
 0x3da   :  { %v1090_v23 = vmul.f32 %v1080_v25, %v3762_v45 }
 0x3dc   :  { %1104 = vrot.lane.b32.xlu0 %v1090_v23, %s3005_s27  ;;  %1151 = vrot.lane.b32.xlu2 %v3242_v37, %s3006_s26 }
 0x416   :  { %v1097_v26 = vpop.permute.xlu2 %1096 }
 0x417   :  { %v1111_v46 = vadd.f32 %v1097_v26, %v3702_v30 }
 0x419   :  { %2846 = vtanh.f32 %v1111_v46 }
 0x41f   :  { %v2847_v34 = vpop.eup %2846 }
 0x420   :  { %1131 = vrot.lane.b32.xlu1 %v2847_v34, %s3007_s24 }
 0x428   :  { %1153 = vrot.lane.b32.xlu1 %v3244_v38, %s3006_s26 }
 0x42e   :  { %v1103_v31 = vpop.permute.xlu2 %1102 }
 0x42f   :  { %v1114_v16 = vadd.f32 %v1103_v31, %v3732_v60 }
 0x431   :  { %2848 = vtanh.f32 %v1114_v16 }
 0x436   :  { %v1099_v51 = vpop.permute.xlu0 %1098 }
 0x437   :  { %v2849_v57 = vpop.eup %2848  ;;  %v1112_v24 = vadd.f32 %v1099_v51, %v3712_v19 }
 0x438   :  { %1137 = vrot.lane.b32.xlu1 %v2849_v57, %s3007_s24 }
 0x439   :  { %2850 = vtanh.f32 %v1112_v24  ;;  %v1123_v24 = vsub.f32 1.0, %v3754_v14 }
 0x43e   :  { %v1101_v37 = vpop.permute.xlu1 %1100 }
 0x43f   :  { %v2851_v30 = vpop.eup %2850  ;;  %v1113_v56 = vadd.f32 %v1101_v37, %v3722_v22  ;;  %v1152_v22 = vpop.permute.xlu2 %1151 }
 0x440   :  { %1133 = vrot.lane.b32.xlu0 %v2851_v30, %s3007_s24  ;;  %1159 = vrot.lane.b32.xlu1 %v3288_v54, %s3006_s26  ;;  %v1166_v54 = vmul.f32 %v1152_v22, %v3741_v27  ;;  %v1122_v27 = vsub.f32 1.0, %v3750_v0 }
 0x441   :  { %2852 = vtanh.f32 %v1113_v56 }
 0x447   :  { %v2853_v38 = vpop.eup %2852 }
 0x448   :  { %1155 = vrot.lane.b32.xlu0 %v3264_v44, %s3006_s26  ;;  %1135 = vrot.lane.b32.xlu2 %v2853_v38, %s3007_s24 }
 0x44e   :  { %v1105_v60 = vpop.permute.xlu0 %1104 }
 0x44f   :  { %v1115_v19 = vadd.f32 %v1105_v60, %v3744_v18 }
 0x450   :  { %1157 = vrot.lane.b32.xlu2 %v3276_v49, %s3006_s26  ;;  %v1124_v49 = vsub.f32 1.0, %v3758_v20 }
 0x451   :  { %2854 = vtanh.f32 %v1115_v19 }
 0x457   :  { %v2855_v8 = vpop.eup %2854 }
 0x458   :  { %1139 = vrot.lane.b32.xlu0 %v2855_v8, %s3007_s24 }
 0x492   :  { %v1132_v58 = vpop.permute.xlu1 %1131 }
 0x493   :  { %v1146_v17 = vmul.f32 %v1132_v58, %v1121_v61 }
 0x495   :  { %v3783_v42 = vadd.f32 %v1166_v54, %v1146_v17 }
 0x497   :  { %4526 = vst [vmem:[#allocation38_spill] sm:$0xff] %v3783_v42  ;;  %1181 = vrot.lane.b32.xlu2 %v3783_v42, %s3007_s24 }
 0x49a   :  { %v1154_v44 = vpop.permute.xlu1 %1153 }
 0x49b   :  { %v1167_v16 = vmul.f32 %v1154_v44, %v3750_v0  ;;  %v1125_v0 = vsub.f32 1.0, %v3762_v45 }
 0x4a2   :  { %v1136_v18 = vpop.permute.xlu2 %1135 }
 0x4aa   :  { %v1138_v25 = vpop.permute.xlu1 %1137  ;;  %v1158_v23 = vpop.permute.xlu2 %1157 }
 0x4ab   :  { %v1149_v26 = vmul.f32 %v1138_v25, %v1124_v49  ;;  %v1169_v46 = vmul.f32 %v1158_v23, %v3758_v20  ;;  %v1148_v20 = vmul.f32 %v1136_v18, %v1123_v24 }
 0x4ad   :  { %v3789_v34 = vadd.f32 %v1169_v46, %v1149_v26 }
 0x4af   :  { %4527 = vst [vmem:[#allocation39_spill] sm:$0xff] %v3789_v34  ;;  %1187 = vrot.lane.b32.xlu2 %v3789_v34, %s3007_s24 }
 0x4b2   :  { %v1134_v31 = vpop.permute.xlu0 %1133  ;;  %v1160_v38 = vpop.permute.xlu1 %1159 }
 0x4b3   :  { %v1147_v51 = vmul.f32 %v1134_v31, %v1122_v27  ;;  %v1170_v19 = vmul.f32 %v1160_v38, %v3762_v45 }
 0x4b5   :  { %v3795_v57 = vadd.f32 %v1167_v16, %v1147_v51 }
 0x4b7   :  { %4528 = vst [vmem:[#allocation40_spill] sm:$0xff] %v3795_v57  ;;  %1183 = vrot.lane.b32.xlu0 %v3795_v57, %s3007_s24 }
 0x4ba   :  { %v1156_v37 = vpop.permute.xlu0 %1155 }
 0x4bb   :  { %v1168_v30 = vmul.f32 %v1156_v37, %v3754_v14 }
 0x4bd   :  { %v3801_v56 = vadd.f32 %v1168_v30, %v1148_v20 }
 0x4bf   :  { %4529 = vst [vmem:[#allocation41_spill] sm:$0xff] %v3801_v56  ;;  %1185 = vrot.lane.b32.xlu1 %v3801_v56, %s3007_s24 }
 0x4ca   :  { %v1140_v60 = vpop.permute.xlu0 %1139 }
 0x4cb   :  { %v1150_v8 = vmul.f32 %v1140_v60, %v1125_v0 }
 0x4cd   :  { %v3807_v22 = vadd.f32 %v1170_v19, %v1150_v8  ;;  %v4544_v19 = vld [vmem:[#allocation15_spill] sm:$0xff] }
 0x4cf   :  { %4530 = vst [vmem:[#allocation42_spill] sm:$0xff] %v3807_v22  ;;  %1189 = vrot.lane.b32.xlu0 %v3807_v22, %s3007_s24 }
 0x4f1   :  { %v3811_v61 = vpop.permute.xlu2 %1181 }
 0x4f2   :  { %4531 = vst [vmem:[#allocation43_spill] sm:$0xff] %v3811_v61  ;;  %2671 = vmatmul.msk.f32.vlgmr.msra.gmra.mxu3 %vm303_vm3, %v3811_v61  ;;  %2676 = vmatmul.msk.f32.vlgmr.msrb.gmra.mxu1 %vm303_vm3, %v3811_v61 }
 0x509   :  { %v3829_v58 = vpop.permute.xlu2 %1187 }
 0x50a   :  { %4534 = vst [vmem:[#allocation46_spill] sm:$0xff] %v3829_v58 }
 0x529   :  { %v3817_v14 = vpop.permute.xlu0 %1183 }
 0x52a   :  { %4532 = vst [vmem:[#allocation44_spill] sm:$0xff] %v3817_v14  ;;  %2672 = vmatmul.msk.f32.gmra.mxu3 %vm303_vm3, %v3817_v14  ;;  %2677 = vmatmul.msk.f32.gmra.mxu1 %vm303_vm3, %v3817_v14 }
 0x531   :  { %v3823_v45 = vpop.permute.xlu1 %1185 }
 0x532   :  { %4533 = vst [vmem:[#allocation45_spill] sm:$0xff] %v3823_v45  ;;  %2673 = vmatmul.msk.f32.gmra.mxu3 %vm303_vm3, %v3823_v45  ;;  %2678 = vmatmul.msk.f32.gmra.mxu1 %vm303_vm3, %v3823_v45 }
 0x53a   :  { %2674 = vmatmul.msk.f32.gmra.mxu3 %vm303_vm3, %v3829_v58  ;;  %2679 = vmatmul.msk.f32.gmra.mxu1 %vm303_vm3, %v3829_v58 }
 0x541   :  { %v3835_v54 = vpop.permute.xlu0 %1189 }
 0x542   :  { %4535 = vst [vmem:[#allocation47_spill] sm:$0xff] %v3835_v54  ;;  %2675 = vmatmul.msk.f32.gmra.mxu3 %vm303_vm3, %v3835_v54  ;;  %2680 = vmatmul.msk.f32.gmra.mxu1 %vm303_vm3, %v3835_v54 }
 0x56f   :  { %v1253_v17 = vpop.f32.mrf.mxu1 }
 0x575   :  { %v1218_v44 = vpop.f32.mrf.mxu3 }
 0x5a7   :  { %v1256_v18 = vpop.f32.mrf.mxu1 }
 0x5a8   :  { %v1268_v30 = vpack.c.bf16 %v1256_v18, %v1253_v17  ;;  %v4545_v17 = vld [vmem:[#allocation14_spill] sm:$0xff] }
 0x5ad   :  { %v1221_v49 = vpop.f32.mrf.mxu3 }
 0x5ae   :  { %v1233_v0 = vpack.c.bf16 %v1221_v49, %v1218_v44 }
 0x5af   :  { %v1259_v25 = vpop.f32.mrf.mxu1 }
 0x5b5   :  { %v1224_v23 = vpop.f32.mrf.mxu3 }
 0x5b7   :  { %v1262_v26 = vpop.f32.mrf.mxu1 }
 0x5b8   :  { %v1269_v51 = vpack.c.bf16 %v1262_v26, %v1259_v25  ;;  %v4546_v25 = vld [vmem:[#allocation17_spill] sm:$0xff] }
 0x5bd   :  { %v1227_v46 = vpop.f32.mrf.mxu3 }
 0x5be   :  { %v1234_v38 = vpack.c.bf16 %v1227_v46, %v1224_v23  ;;  %v4547_v46 = vld [vmem:[#allocation16_spill] sm:$0xff] }
 0x5bf   :  { %v1265_v27 = vpop.f32.mrf.mxu1 }
 0x5c0   :  { %v1270_v31 = vpack.c.bf16 %v1265_v27, %v1265_v27 }
 0x5c2   :  { %v1272_v16 = vsel %vm510_vm5, %v1270_v31, 0 }
 0x5c3   :  { %1279 = vmatpush.bf16.msrb.mxu0 %v1272_v16 }
 0x5c5   :  { %v1230_v24 = vpop.f32.mrf.mxu3 }
 0x5c6   :  { %v1235_v37 = vpack.c.bf16 %v1230_v24, %v1230_v24 }
 0x5c7   :  { %1280 = vmatpush.bf16.msrb.mxu0 %v1269_v51 }
 0x5c8   :  { %v1333_v20 = vsel %vm510_vm5, %v1235_v37, 0 }
 0x5c9   :  { %1340 = vmatpush.bf16.msrb.mxu2 %v1333_v20 }
 0x5cb   :  { %1281 = vmatpush.bf16.msrb.mxu0 %v1268_v30 }
 0x5cd   :  { %1341 = vmatpush.bf16.msrb.mxu2 %v1234_v38 }
 0x5ce   :  { %2681 = vmatmul.msk.bf16.vlgmr.msrb.gmra.mxu0 %vm479_vm6, %v3355_v53  ;;  %v4536_v53 = vld [vmem:[#allocation6_spill] sm:$0xff] }
 0x5d1   :  { %1342 = vmatpush.bf16.msrb.mxu2 %v1233_v0 }
 0x5d4   :  { %2691 = vmatmul.msk.bf16.vlgmr.msrb.gmra.mxu2 %vm479_vm6, %v3366_v59  ;;  %v4537_v59 = vld [vmem:[#allocation7_spill] sm:$0xff] }
 0x5de   :  { %2682 = vmatmul.msk.bf16.gmra.mxu0 %vm479_vm6, %v3377_v62  ;;  %v4538_v62 = vld [vmem:[#allocation8_spill] sm:$0xff] }
 0x5e4   :  { %2692 = vmatmul.msk.bf16.gmra.mxu2 %vm479_vm6, %v3388_v1  ;;  %v4539_v1 = vld [vmem:[#allocation9_spill] sm:$0xff] }
 0x5ee   :  { %2683 = vmatmul.msk.bf16.gmra.mxu0 %vm479_vm6, %v3397_v2  ;;  %v4540_v2 = vld [vmem:[#allocation10_spill] sm:$0xff] }
 0x5f4   :  { %2693 = vmatmul.msk.bf16.gmra.mxu2 %vm479_vm6, %v3404_v3  ;;  %v4541_v3 = vld [vmem:[#allocation11_spill] sm:$0xff] }
 0x5fe   :  { %2684 = vmatmul.msk.bf16.gmra.mxu0 %vm479_vm6, %v3411_v4  ;;  %v4542_v4 = vld [vmem:[#allocation12_spill] sm:$0xff] }
 0x604   :  { %2694 = vmatmul.msk.bf16.gmra.mxu2 %vm479_vm6, %v3418_v5  ;;  %v4543_v5 = vld [vmem:[#allocation13_spill] sm:$0xff] }
 0x60e   :  { %2685 = vmatmul.msk.bf16.gmra.mxu0 %vm479_vm6, %v4536_v53 }
 0x614   :  { %2695 = vmatmul.msk.bf16.gmra.mxu2 %vm479_vm6, %v4537_v59 }
 0x61e   :  { %2686 = vmatmul.msk.bf16.gmra.mxu0 %vm479_vm6, %v4538_v62 }
 0x624   :  { %2696 = vmatmul.msk.bf16.gmra.mxu2 %vm479_vm6, %v4539_v1 }
 0x62e   :  { %2687 = vmatmul.msk.bf16.gmra.mxu0 %vm479_vm6, %v4540_v2 }
 0x634   :  { %2697 = vmatmul.msk.bf16.gmra.mxu2 %vm479_vm6, %v4541_v3 }
 0x63e   :  { %2688 = vmatmul.msk.bf16.gmra.mxu0 %vm479_vm6, %v4542_v4 }
 0x644   :  { %2698 = vmatmul.msk.bf16.gmra.mxu2 %vm479_vm6, %v4543_v5 }
 0x64b   :  { %v1283_v60 = vpop.f32.mrf.mxu0 }
 0x64e   :  { %2689 = vmatmul.msk.bf16.gmra.mxu0 %vm479_vm6, %v4544_v19 }
 0x653   :  { %v3877_v8 = vpop.f32.mrf.mxu0 }
 0x654   :  { %2699 = vmatmul.msk.bf16.gmra.mxu2 %vm479_vm6, %v4545_v17 }
 0x657   :  { %v1344_v44 = vpop.f32.mrf.mxu2 }
 0x658   :  { %v3881_v18 = vadd.f32 %v1344_v44, %v1283_v60 }
 0x65b   :  { %v3883_v49 = vpop.f32.mrf.mxu0 }
 0x65e   :  { %2690 = vmatmul.msk.bf16.gmra.mxu0 %vm479_vm6, %v4546_v25 }
 0x65f   :  { %v3887_v23 = vpop.f32.mrf.mxu2 }
 0x663   :  { %v3889_v26 = vpop.f32.mrf.mxu0 }
 0x664   :  { %2700 = vmatmul.msk.bf16.gmra.mxu2 %vm479_vm6, %v4547_v46 }
 0x667   :  { %v3893_v27 = vpop.f32.mrf.mxu2 }
 0x66b   :  { %v1293_v31 = vpop.f32.mrf.mxu0 }
 0x66f   :  { %v3895_v16 = vpop.f32.mrf.mxu2 }
 0x673   :  { %v1295_v51 = vpop.f32.mrf.mxu0 }
 0x677   :  { %v1354_v24 = vpop.f32.mrf.mxu2 }
 0x67b   :  { %v1298_v37 = vpop.f32.mrf.mxu0 }
 0x67f   :  { %v1356_v20 = vpop.f32.mrf.mxu2 }
 0x683   :  { %v1300_v30 = vpop.f32.mrf.mxu0 }
 0x687   :  { %v1359_v38 = vpop.f32.mrf.mxu2 }
 0x68b   :  { %v1303_v0 = vpop.f32.mrf.mxu0 }
 0x68f   :  { %v1361_v53 = vpop.f32.mrf.mxu2 }
 0x693   :  { %v1305_v59 = vpop.f32.mrf.mxu0 }
 0x697   :  { %v1364_v62 = vpop.f32.mrf.mxu2 }
 0x69b   :  { %v1308_v1 = vpop.f32.mrf.mxu0 }
 0x69f   :  { %v1366_v2 = vpop.f32.mrf.mxu2 }
 0x6a0   :  { %v1367_v29 = vadd.f32 %v1366_v2, %v1305_v59  ;;  %v4548_v59 = vld [vmem:[#allocation18_spill] sm:$0xff] }
 0x6a3   :  { %v1310_v3 = vpop.f32.mrf.mxu0 }
 0x6a7   :  { %v1369_v4 = vpop.f32.mrf.mxu2 }
 0x6a8   :  { %v1370_v21 = vadd.f32 %v1369_v4, %v1308_v1 }
 0x6ab   :  { %v1313_v5 = vpop.f32.mrf.mxu0 }
 0x6af   :  { %v1371_v60 = vpop.f32.mrf.mxu2 }
 0x6b0   :  { %v1372_v14 = vadd.f32 %v1371_v60, %v1310_v3 }
 0x6b3   :  { %v1315_v19 = vpop.f32.mrf.mxu0 }
 0x6b7   :  { %v1374_v17 = vpop.f32.mrf.mxu2 }
 0x6b8   :  { %v1375_v54 = vadd.f32 %v1374_v17, %v1313_v5  ;;  %v1365_v17 = vadd.f32 %v1364_v62, %v1303_v0 }
 0x6ba   :  { %v1405_v11 = vadd.f32 %v1375_v54, %v3531_v12  ;;  %v1360_v12 = vadd.f32 %v1359_v38, %v1298_v37 }
 0x6bb   :  { %v1318_v44 = vpop.f32.mrf.mxu0 }
 0x6bf   :  { %v1376_v46 = vpop.f32.mrf.mxu2 }
 0x6c0   :  { %v1377_v56 = vadd.f32 %v1376_v46, %v1315_v19 }
 0x6c2   :  { %v1406_v61 = vadd.f32 %v1377_v56, %v3526_v32  ;;  %v1362_v32 = vadd.f32 %v1361_v53, %v1300_v30 }
 0x6c3   :  { %v1320_v25 = vpop.f32.mrf.mxu0 }
 0x6c4   :  { %v1425_v46 = vmax.f32 %v1406_v61, 0.0 }
 0x6c7   :  { %v1379_v22 = vpop.f32.mrf.mxu2 }
 0x6c8   :  { %v1380_v34 = vadd.f32 %v1379_v22, %v1318_v44  ;;  %v1404_v22 = vadd.f32 %v1372_v14, %v3535_v35  ;;  %v1357_v35 = vadd.f32 %v1356_v20, %v1295_v51  ;;  %v1350_v51 = vadd.f32 %v3893_v27, %v3883_v49  ;;  %v4550_v44 = vld [vmem:[#allocation19_spill] sm:$0xff] }
 0x6ca   :  { %v1407_v58 = vadd.f32 %v1380_v34, %v3524_v40  ;;  %v1403_v40 = vadd.f32 %v1370_v21, %v3538_v6  ;;  %v1423_v34 = vmax.f32 %v1404_v22, 0.0  ;;  %v1355_v6 = vadd.f32 %v1354_v24, %v1293_v31  ;;  %v4551_v22 = vld [vmem:[#allocation22_spill] sm:$0xff] }
 0x6cb   :  { %v1323_v57 = vpop.f32.mrf.mxu0 }
 0x6cc   :  { %v1426_v52 = vmax.f32 %v1407_v58, 0.0  ;;  %v1422_v58 = vmax.f32 %v1403_v40, 0.0  ;;  %v4554_v40 = vld [vmem:[#allocation28_spill] sm:$0xff] }
 0x6ce   :  { %v1436_v61 = vpack.c.bf16 %v1423_v34, %v1422_v58  ;;  %v4556_v34 = vld [vmem:[#allocation30_spill] sm:$0xff] }
 0x6cf   :  { %v1381_v42 = vpop.f32.mrf.mxu2  ;;  %v2923_v58 = vld [vmem:[%s4427_s11] sm:$0xff] }
 0x6d0   :  { %v1382_v45 = vadd.f32 %v1381_v42, %v1320_v25  ;;  %v1424_v42 = vmax.f32 %v1405_v11, 0.0  ;;  %v1399_v11 = vadd.f32 %v1360_v12, %v3550_v9  ;;  %v1347_v9 = vadd.f32 %v3887_v23, %v3877_v8  ;;  %v2922_v12 = vld [vmem:[%s4427_s11 + $0x8] sm:$0xff] }
 0x6d2   :  { %v1408_v43 = vadd.f32 %v1382_v45, %v3528_v50  ;;  %v1402_v50 = vadd.f32 %v1367_v29, %v3541_v41  ;;  %v1437_v56 = vpack.c.bf16 %v1425_v46, %v1424_v42  ;;  %v1352_v41 = vadd.f32 %v3895_v16, %v3889_v26  ;;  %v4552_v46 = vld [vmem:[#allocation26_spill] sm:$0xff] }
 0x6d3   :  { %v1325_v63 = vpop.f32.mrf.mxu0  ;;  %v1398_v29 = vadd.f32 %v1357_v35, %v3554_v28  ;;  %v1418_v37 = vmax.f32 %v1399_v11, 0.0  ;;  %v1395_v28 = vadd.f32 %v1350_v51, %v3567_v48  ;;  %v1394_v49 = vadd.f32 %v1347_v9, %v3572_v7  ;;  %v3952_v42 = vld [vmem:[%s4432_s16] sm:$0xff]  ;;  %v2924_v35 = vld [vmem:[%s4426_s10 + $0x18] sm:$0xff] }
 0x6d4   :  { %v1427_v36 = vmax.f32 %v1408_v43, 0.0  ;;  %v1401_v43 = vadd.f32 %v1365_v17, %v3544_v47  ;;  %v1396_v31 = vadd.f32 %v1352_v41, %v3563_v13  ;;  %v1393_v13 = vadd.f32 %v3881_v18, %v3578_v33  ;;  %v4549_v33 = vld [vmem:[#allocation25_spill] sm:$0xff]  ;;  %v3945_v17 = vld [vmem:[%s4432_s16 + $0x8] sm:$0xff] }
 0x6d5   :  { %v1417_v24 = vmax.f32 %v1398_v29, 0.0  ;;  %v1414_v23 = vmax.f32 %v1395_v28, 0.0  ;;  %v1413_v62 = vmax.f32 %v1394_v49, 0.0  ;;  %v3928_v18 = vld [vmem:[%s4432_s16 + $0x18] sm:$0xff]  ;;  %v4563_v41 = vld [vmem:[#allocation43_spill] sm:$0xff]  ;;  %v4564_v29 = vld [vmem:[#allocation44_spill] sm:$0xff] }
 0x6d6   :  { %v1438_v19 = vpack.c.bf16 %v1427_v36, %v1426_v52  ;;  %v1400_v52 = vadd.f32 %v1362_v32, %v3547_v55  ;;  %v1421_v36 = vmax.f32 %v1402_v50, 0.0  ;;  %v1420_v21 = vmax.f32 %v1401_v43, 0.0  ;;  %v4555_v32 = vld [vmem:[#allocation29_spill] sm:$0xff]  ;;  %v4558_v43 = vld [vmem:[#allocation32_spill] sm:$0xff] }
 0x6d7   :  { %v1384_v5 = vpop.f32.mrf.mxu2  ;;  %v1397_v55 = vadd.f32 %v1355_v6, %v3558_v15  ;;  %v1415_v15 = vmax.f32 %v1396_v31, 0.0  ;;  %v1412_v7 = vmax.f32 %v1393_v13, 0.0  ;;  %v2920_v50 = vld [vmem:[%s4427_s11 + $0x18] sm:$0xff]  ;;  %v2927_v6 = vld [vmem:[%s4426_s10] sm:$0xff] }
 0x6d8   :  { %1444 = vmatpush.bf16.msrb.mxu3 %v1438_v19  ;;  %v1419_v54 = vmax.f32 %v1400_v52, 0.0  ;;  %v1435_v47 = vpack.c.bf16 %v1421_v36, %v1420_v21  ;;  %v1385_v0 = vadd.f32 %v1384_v5, %v1323_v57  ;;  %v3938_v19 = vld [vmem:[%s4432_s16 + $0x10] sm:$0xff]  ;;  %v4553_v5 = vld [vmem:[#allocation27_spill] sm:$0xff]  ;;  %v4007_v13 = vld [vmem:[%s4433_s17] ss:$0 sm:$0xff] }
 0x6d9   :  { %v1416_v30 = vmax.f32 %v1397_v55, 0.0  ;;  %v1432_v2 = vpack.c.bf16 %v1415_v15, %v1414_v23  ;;  %v4559_v52 = vld [vmem:[#allocation20_spill] sm:$0xff]  ;;  %v4560_v36 = vld [vmem:[#allocation23_spill] sm:$0xff]  ;;  %v4561_v11 = vld [vmem:[#allocation21_spill] sm:$0xff] }
 0x6da   :  { %v1434_v20 = vpack.c.bf16 %v1419_v54, %v1418_v37  ;;  %v1409_v48 = vadd.f32 %v1385_v0, %v4548_v59  ;;  %v4562_v21 = vld [vmem:[#allocation24_spill] sm:$0xff]  ;;  %v4565_v54 = vld [vmem:[#allocation45_spill] sm:$0xff] }
 0x6db   :  { %v1328_v45 = vpop.f32.mrf.mxu0  ;;  %v1433_v53 = vpack.c.bf16 %v1417_v24, %v1416_v30 }
 0x6dc   :  { %1445 = vmatpush.bf16.msrb.mxu3 %v1437_v56  ;;  %v1428_v4 = vmax.f32 %v1409_v48, 0.0  ;;  %v2921_v56 = vld [vmem:[%s4427_s11 + $0x10] sm:$0xff] }
 0x6df   :  { %v1386_v14 = vpop.f32.mrf.mxu2 }
 0x6e0   :  { %1446 = vmatpush.bf16.msrb.mxu3 %v1436_v61  ;;  %v1387_v26 = vadd.f32 %v1386_v14, %v1325_v63  ;;  %v2925_v61 = vld [vmem:[%s4426_s10 + $0x10] sm:$0xff]  ;;  %v2926_v14 = vld [vmem:[%s4426_s10 + $0x8] sm:$0xff] }
 0x6e2   :  { %v1410_v8 = vadd.f32 %v1387_v26, %v3583_v39  ;;  %v1431_v39 = vpack.c.bf16 %v1413_v62, %v1412_v7 }
 0x6e3   :  { %v1330_v25 = vpop.f32.mrf.mxu0 }
 0x6e4   :  { %1447 = vmatpush.bf16.msrb.mxu3 %v1435_v47  ;;  %v1429_v57 = vmax.f32 %v1410_v8, 0.0  ;;  %v4566_v47 = vld [vmem:[#allocation46_spill] sm:$0xff]  ;;  %v4567_v25 = vld [vmem:[#allocation47_spill] sm:$0xff] }
 0x6e6   :  { %v1439_v60 = vpack.c.bf16 %v1429_v57, %v1428_v4 }
 0x6e7   :  { %v1389_v16 = vpop.f32.mrf.mxu2 }
 0x6e8   :  { %v1390_v38 = vadd.f32 %v1389_v16, %v1328_v45  ;;  %1448 = vmatpush.bf16.msrb.mxu3 %v1434_v20  ;;  %v4557_v45 = vld [vmem:[#allocation31_spill] sm:$0xff] }
 0x6ea   :  { %v1411_v27 = vadd.f32 %v1390_v38, %v3574_v10 }
 0x6ec   :  { %v1430_v63 = vmax.f32 %v1411_v27, 0.0  ;;  %1449 = vmatpush.bf16.msrb.mxu3 %v1433_v53 }
 0x6ee   :  { %v1440_v1 = vpack.c.bf16 %v1430_v63, %v1430_v63 }
 0x6ef   :  { %v1391_v3 = vpop.f32.mrf.mxu2 }
 0x6f0   :  { %1450 = vmatpush.bf16.msrb.mxu3 %v1432_v2  ;;  %v1442_v10 = vsel %vm201_vm1, %v1440_v1, 0 }
 0x6f1   :  { %1473 = vmatpush.bf16.msra.mxu1 %v1442_v10  ;;  %v4568_v10 = vld [vmem:[#allocation33_spill] sm:$0xff] }
 0x6f4   :  { %1451 = vmatpush.bf16.msrb.mxu3 %v1431_v39 }
 0x6f5   :  { %1474 = vmatpush.bf16.msra.mxu1 %v1439_v60 }
 0x6f7   :  { %1452 = vmatmul.bf16.vlgmr.msrb.gmra.mxu3 %v4550_v44 }
 0x6f8   :  { %1513 = vmatpush.msra.mxu3 %v4549_v33  ;;  %2701 = vmatmul.msk.bf16.vlgmr.msra.gmra.mxu1 %vm807_vm7, %v4551_v22 }
 0x6f9   :  { %1549 = vmatpush.msrb.mxu1 %v3928_v18 }
 0x6fa   :  { %1514 = vmatpush.msra.mxu3 %v4552_v46  ;;  %v4569_v46 = vld [vmem:[#allocation34_spill] sm:$0xff] }
 0x6fb   :  { %1550 = vmatpush.msrb.mxu1 %v3938_v19 }
 0x6fc   :  { %1515 = vmatpush.msra.mxu3 %v4553_v5 }
 0x6fd   :  { %1551 = vmatpush.msrb.mxu1 %v3945_v17 }
 0x6fe   :  { %1516 = vmatpush.msra.mxu3 %v4554_v40 }
 0x6ff   :  { %1552 = vmatpush.msrb.mxu1 %v3952_v42 }
 0x700   :  { %1517 = vmatpush.msra.mxu3 %v4555_v32 }
 0x701   :  { %1836 = vmatpush.msra.mxu1 %v2920_v50 }
 0x702   :  { %1518 = vmatpush.msra.mxu3 %v4556_v34 }
 0x703   :  { %1837 = vmatpush.msra.mxu1 %v2921_v56 }
 0x704   :  { %1519 = vmatpush.msra.mxu3 %v4557_v45  ;;  %v4570_v45 = vld [vmem:[#allocation35_spill] sm:$0xff] }
 0x705   :  { %1838 = vmatpush.msra.mxu1 %v2922_v12 }
 0x706   :  { %1520 = vmatpush.msra.mxu3 %v4558_v43 }
 0x707   :  { %1839 = vmatpush.msra.mxu1 %v2923_v58  ;;  %1457 = vmatmul.bf16.gmra.mxu3 %v4559_v52 }
 0x708   :  { %1801 = vmatpush.msrb.mxu3 %v2924_v35  ;;  %2702 = vmatmul.msk.bf16.gmra.mxu1 %vm807_vm7, %v4560_v36 }
 0x70a   :  { %1802 = vmatpush.msrb.mxu3 %v2925_v61 }
 0x70c   :  { %1803 = vmatpush.msrb.mxu3 %v2926_v14 }
 0x70e   :  { %1804 = vmatpush.msrb.mxu3 %v2927_v6 }
 0x717   :  { %1462 = vmatmul.bf16.gmra.mxu3 %v4561_v11 }
 0x718   :  { %2703 = vmatmul.msk.bf16.gmra.mxu1 %vm807_vm7, %v4562_v21 }
 0x728   :  { %2709 = vmatmul.msk.f32.vlgmr.msrb.gmra.mxu1 %vm303_vm3, %v4563_v41 }
 0x730   :  { %2710 = vmatmul.msk.f32.gmra.mxu1 %vm303_vm3, %v4564_v29  ;;  %v4571_v29 = vld [vmem:[#allocation36_spill] sm:$0xff] }
 0x738   :  { %2711 = vmatmul.msk.f32.gmra.mxu1 %vm303_vm3, %v4565_v54 }
 0x740   :  { %2712 = vmatmul.msk.f32.gmra.mxu1 %vm303_vm3, %v4566_v47 }
 0x748   :  { %2713 = vmatmul.msk.f32.gmra.mxu1 %vm303_vm3, %v4567_v25 }
 0x775   :  { %v1476_v51 = vpop.f32.mrf.mxu1 }
 0x77a   :  { %v1453_v55 = vpop.f32.mrf.mxu3 }
 0x77b   :  { %v1477_v37 = vadd.f32 %v1476_v51, %v1453_v55 }
 0x77d   :  { %v1478_v9 = vpop.f32.mrf.mxu1  ;;  %2704 = vmatmul.msk.f32.vlgmr.msra.gmra.mxu3 %vm279_vm4, %v1477_v37 }
 0x782   :  { %v1455_v31 = vpop.f32.mrf.mxu3 }
 0x783   :  { %v1479_v24 = vadd.f32 %v1478_v9, %v1455_v31 }
 0x785   :  { %v1481_v20 = vpop.f32.mrf.mxu1  ;;  %2705 = vmatmul.msk.f32.gmra.mxu3 %vm279_vm4, %v1479_v24 }
 0x78a   :  { %v1458_v26 = vpop.f32.mrf.mxu3 }
 0x78b   :  { %v1482_v16 = vadd.f32 %v1481_v20, %v1458_v26 }
 0x78d   :  { %v1483_v28 = vpop.f32.mrf.mxu1  ;;  %2706 = vmatmul.msk.f32.gmra.mxu3 %vm279_vm4, %v1482_v16 }
 0x792   :  { %v1460_v30 = vpop.f32.mrf.mxu3 }
 0x793   :  { %v1484_v38 = vadd.f32 %v1483_v28, %v1460_v30 }
 0x795   :  { %v1486_v0 = vpop.f32.mrf.mxu1  ;;  %2707 = vmatmul.msk.f32.gmra.mxu3 %vm279_vm4, %v1484_v38 }
 0x79a   :  { %v1463_v49 = vpop.f32.mrf.mxu3 }
 0x79b   :  { %v1487_v15 = vadd.f32 %v1486_v0, %v1463_v49 }
 0x79d   :  { %v1488_v27 = vpop.f32.mrf.mxu1  ;;  %2708 = vmatmul.msk.f32.gmra.mxu3 %vm279_vm4, %v1487_v15 }
 0x7a2   :  { %v1465_v53 = vpop.f32.mrf.mxu3 }
 0x7a3   :  { %v4572_v53 = vld [vmem:[#allocation37_spill] sm:$0xff] }
 0x7a5   :  { %v1554_v8 = vpop.f32.mrf.mxu1 }
 0x7a6   :  { %v1555_v23 = vadd.f32 %v4007_v13, %v1554_v8 }
 0x7a8   :  { %1674 = vrot.lane.b32.xlu1 %v1555_v23, %s3005_s27 }
 0x7ad   :  { %v1557_v63 = vpop.f32.mrf.mxu1 }
 0x7ae   :  { %v1558_v59 = vadd.f32 %v4007_v13, %v1557_v63 }
 0x7b0   :  { %1676 = vrot.lane.b32.xlu2 %v1558_v59, %s3005_s27 }
 0x7b5   :  { %v1560_v48 = vpop.f32.mrf.mxu1 }
 0x7b6   :  { %v1561_v62 = vadd.f32 %v4007_v13, %v1560_v48 }
 0x7b8   :  { %1678 = vrot.lane.b32.xlu0 %v1561_v62, %s3005_s27 }
 0x7bd   :  { %v1563_v1 = vpop.f32.mrf.mxu1 }
 0x7be   :  { %v1564_v2 = vadd.f32 %v4007_v13, %v1563_v1 }
 0x7c0   :  { %1680 = vrot.lane.b32.xlu1 %v1564_v2, %s3005_s27 }
 0x7c5   :  { %v1566_v57 = vpop.f32.mrf.mxu1 }
 0x7c6   :  { %v1567_v3 = vadd.f32 %v4007_v13, %v1566_v57 }
 0x7c8   :  { %1682 = vrot.lane.b32.xlu2 %v1567_v3, %s3005_s27 }
 0x800   :  { %v1522_v7 = vpop.f32.mrf.mxu3 }
 0x801   :  { %v4020_v4 = vadd.f32 %v1522_v7, %v4568_v10 }
 0x803   :  { %v1569_v39 = vadd.f32 %v1555_v23, %v4020_v4 }
 0x805   :  { %v2714_v60 = vmul.f32 -1.442695, %v1569_v39 }
 0x807   :  { %2856 = vpow2.f32 %v2714_v60 }
 0x808   :  { %v1525_v33 = vpop.f32.mrf.mxu3 }
 0x809   :  { %v4024_v5 = vadd.f32 %v1525_v33, %v4569_v46 }
 0x80a   :  { %v1677_v33 = vpop.permute.xlu2 %1676 }
 0x80b   :  { %v1570_v40 = vadd.f32 %v1558_v59, %v4024_v5 }
 0x80d   :  { %v2857_v32 = vpop.eup %2856  ;;  %v2715_v50 = vmul.f32 -1.442695, %v1570_v40 }
 0x80e   :  { %v1589_v34 = vadd.f32 1.0, %v2857_v32 }
 0x80f   :  { %2858 = vpow2.f32 %v2715_v50 }
 0x810   :  { %2860 = vrcp.f32 %v1589_v34  ;;  %v1528_v56 = vpop.f32.mrf.mxu3  ;;  %v1605_v25 = vand.u32 2147483648, %v1589_v34  ;;  %v1603_v37 = vand.u32 2147483647, %v1589_v34  ;;  %vm1599_vm9 = vweird.f32 %v1589_v34 }
 0x811   :  { %v4028_v12 = vadd.f32 %v1528_v56, %v4570_v45 }
 0x812   :  { %v1606_v16 = vor.u32 1.1754944e-38, %v1605_v25  ;;  %vm1604_vm11 = vcmp.eq.f32.partialorder %v1603_v37, 8.507059e+37 }
 0x813   :  { %v1571_v43 = vadd.f32 %v1561_v62, %v4028_v12 }
 0x815   :  { %v2859_v58 = vpop.eup %2858  ;;  %v2716_v35 = vmul.f32 -1.442695, %v1571_v43 }
 0x816   :  { %v2861_v61 = vpop.eup %2860  ;;  %v1590_v14 = vadd.f32 1.0, %v2859_v58 }
 0x817   :  { %2862 = vpow2.f32 %v2716_v35  ;;  %v1595_v6 = vmul.f32 %v2861_v61, %v1589_v34  ;;  %vm1600_vm8 = vweird.f32 %v2861_v61 }
 0x818   :  { %2864 = vrcp.f32 %v1590_v14  ;;  %v1531_v41 = vpop.f32.mrf.mxu3  ;;  %vm1601_vm10 = vmor %vm1599_vm9, %vm1600_vm8  ;;  %v1620_v23 = vand.u32 2147483648, %v1590_v14  ;;  %v1618_v59 = vand.u32 2147483647, %v1590_v14  ;;  %vm1614_vm13 = vweird.f32 %v1590_v14 }
 0x819   :  { %v4032_v54 = vadd.f32 %v1531_v41, %v4571_v29  ;;  %v1596_v47 = vsub.f32 1.0, %v1595_v6 }
 0x81a   :  { %v1675_v38 = vpop.permute.xlu1 %1674  ;;  %v1621_v7 = vor.u32 1.1754944e-38, %v1620_v23  ;;  %vm1619_vm15 = vcmp.eq.f32.partialorder %v1618_v59, 8.507059e+37 }
 0x81b   :  { %v1572_v51 = vadd.f32 %v1564_v2, %v4032_v54  ;;  %v1597_v55 = vmul.f32 %v2861_v61, %v1596_v47 }
 0x81d   :  { %v2863_v9 = vpop.eup %2862  ;;  %v2717_v31 = vmul.f32 -1.442695, %v1572_v51  ;;  %v1598_v24 = vadd.f32 %v2861_v61, %v1597_v55 }
 0x81e   :  { %v2865_v20 = vpop.eup %2864  ;;  %v1591_v26 = vadd.f32 1.0, %v2863_v9 }
 0x81f   :  { %v1610_v28 = vmul.f32 %v2865_v20, %v1590_v14  ;;  %2866 = vpow2.f32 %v2717_v31  ;;  %v1602_v30 = vsel %vm1601_vm10, %v2861_v61, %v1598_v24  ;;  %vm1615_vm12 = vweird.f32 %v2865_v20 }
 0x820   :  { %2868 = vrcp.f32 %v1591_v26  ;;  %v4035_v0 = vsel %vm1604_vm11, %v1606_v16, %v1602_v30  ;;  %v1534_v49 = vpop.f32.mrf.mxu3  ;;  %vm1616_vm14 = vmor %vm1614_vm13, %vm1615_vm12  ;;  %v1635_v50 = vand.u32 2147483648, %v1591_v26  ;;  %v1633_v34 = vand.u32 2147483647, %v1591_v26 }
 0x821   :  { %v1611_v15 = vsub.f32 1.0, %v1610_v28  ;;  %v1689_v27 = vmul.f32 %v1675_v38, %v4035_v0  ;;  %v4039_v8 = vadd.f32 %v1534_v49, %v4572_v53  ;;  %vm1629_vm2 = vweird.f32 %v1591_v26 }
 0x822   :  { %v1636_v61 = vor.u32 1.1754944e-38, %v1635_v50  ;;  %vm1634_vm9 = vcmp.eq.f32.partialorder %v1633_v34, 8.507059e+37 }
 0x823   :  { %v1612_v63 = vmul.f32 %v2865_v20, %v1611_v15  ;;  %v1573_v48 = vadd.f32 %v1567_v3, %v4039_v8  ;;  %1699 = vrot.lane.b32.xlu0 %v1689_v27, %s3005_s27 }
 0x825   :  { %v2867_v62 = vpop.eup %2866  ;;  %v1613_v1 = vadd.f32 %v2865_v20, %v1612_v63  ;;  %v2718_v2 = vmul.f32 -1.442695, %v1573_v48  ;;  %v1683_v63 = vpop.permute.xlu2 %1682 }
 0x826   :  { %v2869_v57 = vpop.eup %2868  ;;  %v1592_v10 = vadd.f32 1.0, %v2867_v62 }
 0x827   :  { %v1617_v39 = vsel %vm1616_vm14, %v2865_v20, %v1613_v1  ;;  %2870 = vpow2.f32 %v2718_v2  ;;  %v1625_v60 = vmul.f32 %v2869_v57, %v1591_v26  ;;  %vm1630_vm0 = vweird.f32 %v2869_v57 }
 0x828   :  { %v4043_v46 = vsel %vm1619_vm15, %v1621_v7, %v1617_v39  ;;  %2872 = vrcp.f32 %v1592_v10  ;;  %vm1631_vm8 = vmor %vm1629_vm2, %vm1630_vm0  ;;  %v1650_v25 = vand.u32 2147483648, %v1592_v10  ;;  %v1648_v55 = vand.u32 2147483647, %v1592_v10 }
 0x829   :  { %v1690_v3 = vmul.f32 %v1677_v33, %v4043_v46  ;;  %v1626_v40 = vsub.f32 1.0, %v1625_v60  ;;  %vm1644_vm11 = vweird.f32 %v1592_v10 }
 0x82a   :  { %v1679_v6 = vpop.permute.xlu0 %1678  ;;  %v1651_v31 = vor.u32 1.1754944e-38, %v1650_v25  ;;  %vm1649_vm13 = vcmp.eq.f32.partialorder %v1648_v55, 8.507059e+37 }
 0x82b   :  { %v1627_v32 = vmul.f32 %v2869_v57, %v1626_v40  ;;  %1701 = vrot.lane.b32.xlu1 %v1690_v3, %s3005_s27 }
 0x82d   :  { %v2871_v56 = vpop.eup %2870  ;;  %v1628_v45 = vadd.f32 %v2869_v57, %v1627_v32 }
 0x82e   :  { %v2873_v43 = vpop.eup %2872  ;;  %v1593_v58 = vadd.f32 1.0, %v2871_v56  ;;  %v4573_v56 = vld [vmem:[#allocation38_spill] sm:$0xff] }
 0x82f   :  { %v1632_v35 = vsel %vm1631_vm8, %v2869_v57, %v1628_v45  ;;  %v1640_v14 = vmul.f32 %v2873_v43, %v1592_v10  ;;  %vm1645_vm10 = vweird.f32 %v2873_v43  ;;  %v1754_v45 = vmul.f32 %v4035_v0, %v4573_v56  ;;  %v2931_v56 = vld [vmem:[%s4419_s3 + $0x8] sm:$0xff] }
 0x830   :  { %2874 = vrcp.f32 %v1593_v58  ;;  %v4047_v41 = vsel %vm1634_vm9, %v1636_v61, %v1632_v35  ;;  %vm1646_vm12 = vmor %vm1644_vm11, %vm1645_vm10  ;;  %v1665_v38 = vand.u32 2147483648, %v1593_v58  ;;  %v1663_v15 = vand.u32 2147483647, %v1593_v58  ;;  %v4574_v35 = vld [vmem:[#allocation41_spill] sm:$0xff] }
 0x831   :  { %v1641_v29 = vsub.f32 1.0, %v1640_v14  ;;  %v1691_v47 = vmul.f32 %v1679_v6, %v4047_v41  ;;  %vm1659_vm15 = vweird.f32 %v1593_v58  ;;  %v1756_v61 = vmul.f32 %v4047_v41, %v4574_v35  ;;  %v2936_v35 = vld [vmem:[%s4493_s1 + $0x18] sm:$0xff] }
 0x832   :  { %v1681_v26 = vpop.permute.xlu1 %1680  ;;  %v1666_v53 = vor.u32 1.1754944e-38, %v1665_v38  ;;  %vm1664_vm2 = vcmp.eq.f32.partialorder %v1663_v15, 8.507059e+37 }
 0x833   :  { %v1642_v51 = vmul.f32 %v2873_v43, %v1641_v29  ;;  %1703 = vrot.lane.b32.xlu2 %v1691_v47, %s3005_s27  ;;  %v4575_v47 = vld [vmem:[#allocation39_spill] sm:$0xff] }
 0x835   :  { %v1643_v37 = vadd.f32 %v2873_v43, %v1642_v51 }
 0x836   :  { %v2875_v9 = vpop.eup %2874 }
 0x837   :  { %v1655_v24 = vmul.f32 %v2875_v9, %v1593_v58  ;;  %v1647_v20 = vsel %vm1646_vm12, %v2873_v43, %v1643_v37  ;;  %vm1660_vm14 = vweird.f32 %v2875_v9  ;;  %v1725_v37 = vsub.f32 1.0, %v4043_v46 }
 0x838   :  { %v1652_v16 = vsel %vm1649_vm13, %v1651_v31, %v1647_v20  ;;  %vm1661_vm0 = vmor %vm1659_vm15, %vm1660_vm14 }
 0x839   :  { %v1656_v28 = vsub.f32 1.0, %v1655_v24  ;;  %v1692_v30 = vmul.f32 %v1681_v26, %v1652_v16  ;;  %v1727_v29 = vsub.f32 1.0, %v1652_v16  ;;  %v1757_v25 = vmul.f32 %v1652_v16, %v4575_v47  ;;  %v2941_v47 = vld [vmem:[%s4419_s3 + $0x30] sm:$0xff] }
 0x83b   :  { %v1657_v49 = vmul.f32 %v2875_v9, %v1656_v28  ;;  %1705 = vrot.lane.b32.xlu0 %v1692_v30, %s3005_s27  ;;  %v4577_v28 = vld [vmem:[#allocation42_spill] sm:$0xff] }
 0x83d   :  { %v1658_v27 = vadd.f32 %v2875_v9, %v1657_v49 }
 0x83f   :  { %v1662_v23 = vsel %vm1661_vm0, %v2875_v9, %v1658_v27 }
 0x840   :  { %v1667_v59 = vsel %vm1664_vm2, %v1666_v53, %v1662_v23 }
 0x841   :  { %v1693_v48 = vmul.f32 %v1683_v63, %v1667_v59  ;;  %v1728_v26 = vsub.f32 1.0, %v1667_v59  ;;  %v1758_v30 = vmul.f32 %v1667_v59, %v4577_v28 }
 0x843   :  { %1707 = vrot.lane.b32.xlu1 %v1693_v48, %s3005_s27 }
 0x88d   :  { %v1704_v62 = vpop.permute.xlu2 %1703 }
 0x88e   :  { %v1716_v1 = vadd.f32 %v1704_v62, %v4028_v12 }
 0x890   :  { %2876 = vtanh.f32 %v1716_v1 }
 0x895   :  { %v1700_v2 = vpop.permute.xlu0 %1699 }
 0x896   :  { %v1714_v57 = vadd.f32 %v1700_v2, %v4020_v4  ;;  %v2877_v7 = vpop.eup %2876 }
 0x897   :  { %1738 = vrot.lane.b32.xlu1 %v2877_v7, %s3007_s24 }
 0x898   :  { %2878 = vtanh.f32 %v1714_v57 }
 0x89d   :  { %v1702_v10 = vpop.permute.xlu1 %1701 }
 0x89e   :  { %v2879_v39 = vpop.eup %2878  ;;  %v1715_v60 = vadd.f32 %v1702_v10, %v4024_v5  ;;  %v1724_v5 = vsub.f32 1.0, %v4035_v0 }
 0x89f   :  { %1734 = vrot.lane.b32.xlu2 %v2879_v39, %s3007_s24 }
 0x8a0   :  { %2880 = vtanh.f32 %v1715_v60 }
 0x8a6   :  { %v2881_v33 = vpop.eup %2880 }
 0x8a7   :  { %1736 = vrot.lane.b32.xlu0 %v2881_v33, %s3007_s24 }
 0x8ad   :  { %v1706_v3 = vpop.permute.xlu0 %1705 }
 0x8ae   :  { %v1717_v12 = vadd.f32 %v1706_v3, %v4032_v54  ;;  %v1726_v54 = vsub.f32 1.0, %v4047_v41  ;;  %v4576_v41 = vld [vmem:[#allocation40_spill] sm:$0xff] }
 0x8af   :  { %v1755_v31 = vmul.f32 %v4043_v46, %v4576_v41 }
 0x8b0   :  { %2882 = vtanh.f32 %v1717_v12 }
 0x8b5   :  { %v1708_v40 = vpop.permute.xlu1 %1707 }
 0x8b6   :  { %v2883_v4 = vpop.eup %2882  ;;  %v1718_v32 = vadd.f32 %v1708_v40, %v4039_v8 }
 0x8b7   :  { %1740 = vrot.lane.b32.xlu2 %v2883_v4, %s3007_s24 }
 0x8b8   :  { %2884 = vtanh.f32 %v1718_v32 }
 0x8be   :  { %v2885_v50 = vpop.eup %2884 }
 0x8bf   :  { %1742 = vrot.lane.b32.xlu0 %v2885_v50, %s3007_s24  ;;  %v2929_v50 = vld [vmem:[%s4419_s3] sm:$0xff] }
 0x8f9   :  { %v1735_v34 = vpop.permute.xlu2 %1734 }
 0x8fa   :  { %v1749_v43 = vmul.f32 %v1735_v34, %v1724_v5  ;;  %v2930_v34 = vld [vmem:[%s4493_s1] sm:$0xff] }
 0x8fc   :  { %v4066_v58 = vadd.f32 %v1754_v45, %v1749_v43  ;;  %v2932_v45 = vld [vmem:[%s4493_s1 + $0x8] sm:$0xff]  ;;  %v2933_v43 = vld [vmem:[%s4419_s3 + $0x10] sm:$0xff] }
 0x8fe   :  { %1769 = vrot.lane.b32.xlu1 %v4066_v58, %s3007_s24 }
 0x909   :  { %v1739_v8 = vpop.permute.xlu1 %1738 }
 0x90a   :  { %v1751_v14 = vmul.f32 %v1739_v8, %v1726_v54  ;;  %v2934_v54 = vld [vmem:[%s4493_s1 + $0x10] sm:$0xff]  ;;  %v2935_v8 = vld [vmem:[%s4419_s3 + $0x18] sm:$0xff] }
 0x90c   :  { %v4073_v6 = vadd.f32 %v1756_v61, %v1751_v14  ;;  %v2937_v61 = vld [vmem:[%s4419_s3 + $0x20] sm:$0xff] }
 0x90d   :  { %v2938_v14 = vld [vmem:[%s4493_s1 + $0x20] sm:$0xff] }
 0x90e   :  { %1773 = vrot.lane.b32.xlu0 %v4073_v6, %s3007_s24 }
 0x911   :  { %v1741_v0 = vpop.permute.xlu2 %1740 }
 0x912   :  { %v1752_v51 = vmul.f32 %v1741_v0, %v1727_v29  ;;  %v2939_v29 = vld [vmem:[%s4419_s3 + $0x28] sm:$0xff] }
 0x913   :  { %v2940_v0 = vld [vmem:[%s4493_s1 + $0x28] sm:$0xff] }
 0x914   :  { %v4078_v55 = vadd.f32 %v1757_v25, %v1752_v51  ;;  %v2942_v25 = vld [vmem:[%s4493_s1 + $0x30] sm:$0xff]  ;;  %v2943_v51 = vld [vmem:[%s4419_s3 + $0x38] sm:$0xff] }
 0x916   :  { %1775 = vrot.lane.b32.xlu1 %v4078_v55, %s3007_s24 }
 0x919   :  { %v1737_v9 = vpop.permute.xlu0 %1736 }
 0x91a   :  { %v1750_v24 = vmul.f32 %v1737_v9, %v1725_v37  ;;  %v2944_v37 = vld [vmem:[%s4493_s1 + $0x38] sm:$0xff]  ;;  %v2945_v9 = vld [vmem:[%s4419_s3 + $0x40] sm:$0xff] }
 0x91c   :  { %v4085_v20 = vadd.f32 %v1755_v31, %v1750_v24 }
 0x91e   :  { %1771 = vrot.lane.b32.xlu2 %v4085_v20, %s3007_s24 }
 0x931   :  { %v1743_v16 = vpop.permute.xlu0 %1742 }
 0x932   :  { %v1753_v38 = vmul.f32 %v1743_v16, %v1728_v26  ;;  %v2946_v26 = vld [vmem:[%s4493_s1 + $0x40] sm:$0xff] }
 0x934   :  { %v4090_v49 = vadd.f32 %v1758_v30, %v1753_v38  ;;  %v2947_v30 = vld [vmem:[#allocation2] sm:$0xff] }
 0x936   :  { %1777 = vrot.lane.b32.xlu2 %v4090_v49, %s3007_s24 }
 0x970   :  { %v4094_v15 = vpop.permute.xlu1 %1769 }
 0x971   :  { %2719 = vmatmul.msk.f32.vlgmr.msrb.gmra.mxu3 %vm303_vm3, %v4094_v15  ;;  %2724 = vmatmul.msk.f32.vlgmr.msra.gmra.mxu1 %vm303_vm3, %v4094_v15 }
 0x978   :  { %v4100_v46 = vpop.permute.xlu2 %1771 }
 0x979   :  { %2720 = vmatmul.msk.f32.gmra.mxu3 %vm303_vm3, %v4100_v46  ;;  %2725 = vmatmul.msk.f32.gmra.mxu1 %vm303_vm3, %v4100_v46 }
 0x980   :  { %v4106_v27 = vpop.permute.xlu0 %1773 }
 0x981   :  { %2721 = vmatmul.msk.f32.gmra.mxu3 %vm303_vm3, %v4106_v27  ;;  %2726 = vmatmul.msk.f32.gmra.mxu1 %vm303_vm3, %v4106_v27 }
 0x988   :  { %v4112_v53 = vpop.permute.xlu1 %1775 }
 0x989   :  { %2722 = vmatmul.msk.f32.gmra.mxu3 %vm303_vm3, %v4112_v53  ;;  %2727 = vmatmul.msk.f32.gmra.mxu1 %vm303_vm3, %v4112_v53 }
 0x990   :  { %v4118_v23 = vpop.permute.xlu2 %1777 }
 0x991   :  { %2723 = vmatmul.msk.f32.gmra.mxu3 %vm303_vm3, %v4118_v23  ;;  %2728 = vmatmul.msk.f32.gmra.mxu1 %vm303_vm3, %v4118_v23 }
 0x9ee   :  { %v1841_v63 = vpop.f32.mrf.mxu1 }
 0x9f4   :  { %v1806_v59 = vpop.f32.mrf.mxu3 }
 0x9f6   :  { %v1844_v48 = vpop.f32.mrf.mxu1 }
 0x9f7   :  { %v1856_v4 = vpack.c.bf16 %v1844_v48, %v1841_v63 }
 0x9fc   :  { %v1809_v62 = vpop.f32.mrf.mxu3 }
 0x9fd   :  { %v1821_v5 = vpack.c.bf16 %v1809_v62, %v1806_v59  ;;  %v2948_v59 = vld [vmem:[#allocation2 + $0x8] sm:$0xff] }
 0x9fe   :  { %v1847_v1 = vpop.f32.mrf.mxu1 }
 0xa04   :  { %v1812_v2 = vpop.f32.mrf.mxu3 }
 0xa06   :  { %v1850_v57 = vpop.f32.mrf.mxu1 }
 0xa07   :  { %v1857_v33 = vpack.c.bf16 %v1850_v57, %v1847_v1 }
 0xa0c   :  { %v1815_v7 = vpop.f32.mrf.mxu3 }
 0xa0d   :  { %v1822_v32 = vpack.c.bf16 %v1815_v7, %v1812_v2  ;;  %v4578_v2 = vld [vmem:[#allocation17_spill] sm:$0xff] }
 0xa0e   :  { %v1853_v10 = vpop.f32.mrf.mxu1 }
 0xa0f   :  { %v1858_v39 = vpack.c.bf16 %v1853_v10, %v1853_v10 }
 0xa11   :  { %v1860_v60 = vsel %vm510_vm5, %v1858_v39, 0 }
 0xa12   :  { %1867 = vmatpush.bf16.msra.mxu3 %v1860_v60  ;;  %v4579_v60 = vld [vmem:[#allocation16_spill] sm:$0xff] }
 0xa14   :  { %v1818_v3 = vpop.f32.mrf.mxu3 }
 0xa15   :  { %v1823_v12 = vpack.c.bf16 %v1818_v3, %v1818_v3 }
 0xa16   :  { %1868 = vmatpush.bf16.msra.mxu3 %v1857_v33 }
 0xa17   :  { %v1921_v40 = vsel %vm510_vm5, %v1823_v12, 0  ;;  %v2949_v12 = vld [vmem:[#allocation2 + $0x10] sm:$0xff] }
 0xa18   :  { %1928 = vmatpush.bf16.msra.mxu0 %v1921_v40 }
 0xa1a   :  { %1869 = vmatpush.bf16.msra.mxu3 %v1856_v4 }
 0xa1c   :  { %1929 = vmatpush.bf16.msra.mxu0 %v1822_v32  ;;  %v2950_v32 = vld [vmem:[#allocation2 + $0x18] sm:$0xff] }
 0xa1d   :  { %2729 = vmatmul.msk.bf16.vlgmr.msra.gmra.mxu3 %vm479_vm6, %v2929_v50 }
 0xa20   :  { %1930 = vmatpush.bf16.msra.mxu0 %v1821_v5 }
 0xa23   :  { %2739 = vmatmul.msk.bf16.vlgmr.msra.gmra.mxu0 %vm479_vm6, %v2930_v34 }
 0xa2d   :  { %2730 = vmatmul.msk.bf16.gmra.mxu3 %vm479_vm6, %v2931_v56 }
 0xa33   :  { %2740 = vmatmul.msk.bf16.gmra.mxu0 %vm479_vm6, %v2932_v45 }
 0xa3d   :  { %2731 = vmatmul.msk.bf16.gmra.mxu3 %vm479_vm6, %v2933_v43 }
 0xa43   :  { %2741 = vmatmul.msk.bf16.gmra.mxu0 %vm479_vm6, %v2934_v54 }
 0xa4d   :  { %2732 = vmatmul.msk.bf16.gmra.mxu3 %vm479_vm6, %v2935_v8 }
 0xa53   :  { %2742 = vmatmul.msk.bf16.gmra.mxu0 %vm479_vm6, %v2936_v35 }
 0xa5d   :  { %2733 = vmatmul.msk.bf16.gmra.mxu3 %vm479_vm6, %v2937_v61  ;;  %v2951_v61 = vld [vmem:[#allocation2 + $0x20] sm:$0xff] }
 0xa63   :  { %2743 = vmatmul.msk.bf16.gmra.mxu0 %vm479_vm6, %v2938_v14 }
 0xa6d   :  { %2734 = vmatmul.msk.bf16.gmra.mxu3 %vm479_vm6, %v2939_v29 }
 0xa73   :  { %2744 = vmatmul.msk.bf16.gmra.mxu0 %vm479_vm6, %v2940_v0  ;;  %v2952_v0 = vld [vmem:[#allocation2 + $0x28] sm:$0xff] }
 0xa7d   :  { %2735 = vmatmul.msk.bf16.gmra.mxu3 %vm479_vm6, %v2941_v47 }
 0xa83   :  { %2745 = vmatmul.msk.bf16.gmra.mxu0 %vm479_vm6, %v2942_v25 }
 0xa8d   :  { %2736 = vmatmul.msk.bf16.gmra.mxu3 %vm479_vm6, %v2943_v51 }
 0xa93   :  { %2746 = vmatmul.msk.bf16.gmra.mxu0 %vm479_vm6, %v2944_v37 }
 0xa9d   :  { %2737 = vmatmul.msk.bf16.gmra.mxu3 %vm479_vm6, %v2945_v9 }
 0xaa0   :  { %v1871_v41 = vpop.f32.mrf.mxu3  ;;  %v1932_v31 = vpop.f32.mrf.mxu0 }
 0xaa1   :  { %v1933_v24 = vadd.f32 %v1932_v31, %v1871_v41 }
 0xaa3   :  { %2747 = vmatmul.msk.bf16.gmra.mxu0 %vm479_vm6, %v2946_v26  ;;  %v1981_v38 = vadd.f32 %v2947_v30, %v1933_v24 }
 0xaa5   :  { %v2000_v62 = vmax.f32 %v1981_v38, 0.0  ;;  %v2954_v38 = vld [vmem:[#allocation2 + $0x38] sm:$0xff] }
 0xaa8   :  { %v1873_v16 = vpop.f32.mrf.mxu3  ;;  %v1934_v28 = vpop.f32.mrf.mxu0 }
 0xaa9   :  { %v1935_v63 = vadd.f32 %v1934_v28, %v1873_v16  ;;  %v2953_v16 = vld [vmem:[#allocation2 + $0x30] sm:$0xff] }
 0xaab   :  { %v1982_v48 = vadd.f32 %v2948_v59, %v1935_v63 }
 0xaad   :  { %v2001_v1 = vmax.f32 %v1982_v48, 0.0  ;;  %2738 = vmatmul.msk.bf16.gmra.mxu3 %vm479_vm6, %v4578_v2 }
 0xaaf   :  { %v4200_v57 = vpack.c.bf16 %v2001_v1, %v2000_v62 }
 0xab0   :  { %v1876_v7 = vpop.f32.mrf.mxu3  ;;  %v1937_v10 = vpop.f32.mrf.mxu0 }
 0xab1   :  { %v1938_v39 = vadd.f32 %v1937_v10, %v1876_v7 }
 0xab3   :  { %2748 = vmatmul.msk.bf16.gmra.mxu0 %vm479_vm6, %v4579_v60  ;;  %v1983_v40 = vadd.f32 %v2949_v12, %v1938_v39 }
 0xab5   :  { %v2002_v5 = vmax.f32 %v1983_v40, 0.0 }
 0xab8   :  { %v1878_v33 = vpop.f32.mrf.mxu3  ;;  %v1939_v3 = vpop.f32.mrf.mxu0 }
 0xab9   :  { %v1940_v4 = vadd.f32 %v1939_v3, %v1878_v33 }
 0xabb   :  { %v1984_v50 = vadd.f32 %v2950_v32, %v1940_v4 }
 0xabd   :  { %v2003_v34 = vmax.f32 %v1984_v50, 0.0 }
 0xabf   :  { %v4204_v56 = vpack.c.bf16 %v2003_v34, %v2002_v5 }
 0xac0   :  { %v1881_v45 = vpop.f32.mrf.mxu3  ;;  %v1942_v43 = vpop.f32.mrf.mxu0 }
 0xac1   :  { %v1943_v54 = vadd.f32 %v1942_v43, %v1881_v45 }
 0xac3   :  { %v1985_v14 = vadd.f32 %v2951_v61, %v1943_v54  ;;  %v2955_v61 = vld [vmem:[#allocation2 + $0x70] sm:$0xff] }
 0xac5   :  { %v2004_v25 = vmax.f32 %v1985_v14, 0.0 }
 0xac8   :  { %v1883_v8 = vpop.f32.mrf.mxu3  ;;  %v1944_v35 = vpop.f32.mrf.mxu0 }
 0xac9   :  { %v1945_v29 = vadd.f32 %v1944_v35, %v1883_v8 }
 0xacb   :  { %v1986_v47 = vadd.f32 %v2952_v0, %v1945_v29 }
 0xacd   :  { %v2005_v51 = vmax.f32 %v1986_v47, 0.0  ;;  %v2956_v47 = vld [vmem:[#allocation2 + $0x68] sm:$0xff] }
 0xacf   :  { %v4206_v37 = vpack.c.bf16 %v2005_v51, %v2004_v25  ;;  %v2957_v51 = vld [vmem:[#allocation2 + $0x78] sm:$0xff] }
 0xad0   :  { %v1886_v9 = vpop.f32.mrf.mxu3  ;;  %v1947_v41 = vpop.f32.mrf.mxu0 }
 0xad1   :  { %v1948_v31 = vadd.f32 %v1947_v41, %v1886_v9 }
 0xad3   :  { %v1987_v28 = vadd.f32 %v2953_v16, %v1948_v31  ;;  %v2958_v31 = vld [vmem:[#allocation2 + $0x60] sm:$0xff] }
 0xad5   :  { %v2006_v59 = vmax.f32 %v1987_v28, 0.0 }
 0xad8   :  { %v1888_v24 = vpop.f32.mrf.mxu3  ;;  %v1949_v26 = vpop.f32.mrf.mxu0 }
 0xad9   :  { %v1950_v30 = vadd.f32 %v1949_v26, %v1888_v24 }
 0xadb   :  { %v1988_v63 = vadd.f32 %v2954_v38, %v1950_v30  ;;  %v2959_v30 = vld [vmem:[#allocation2 + $0x58] sm:$0xff] }
 0xadd   :  { %v2007_v48 = vmax.f32 %v1988_v63, 0.0 }
 0xadf   :  { %v4208_v62 = vpack.c.bf16 %v2007_v48, %v2006_v59 }
 0xae0   :  { %v1891_v1 = vpop.f32.mrf.mxu3  ;;  %v1952_v2 = vpop.f32.mrf.mxu0 }
 0xae1   :  { %v1953_v7 = vadd.f32 %v1952_v2, %v1891_v1  ;;  %v2960_v2 = vld [vmem:[#allocation2 + $0x50] sm:$0xff] }
 0xae8   :  { %v1893_v10 = vpop.f32.mrf.mxu3  ;;  %v1954_v39 = vpop.f32.mrf.mxu0 }
 0xae9   :  { %v1955_v28 = vadd.f32 %v1954_v39, %v1893_v10 }
 0xaf0   :  { %v1896_v60 = vpop.f32.mrf.mxu3  ;;  %v1957_v33 = vpop.f32.mrf.mxu0 }
 0xaf1   :  { %v1958_v41 = vadd.f32 %v1957_v33, %v1896_v60  ;;  %v2962_v60 = vld [vmem:[#allocation2 + $0x40] sm:$0xff] }
 0xaf2   :  { %v1989_v33 = vadd.f32 %v2962_v60, %v1953_v7  ;;  %v2964_v7 = vld [vmem:[#allocation2 + $0x88] sm:$0xff] }
 0xaf8   :  { %v1898_v3 = vpop.f32.mrf.mxu3  ;;  %v1959_v12 = vpop.f32.mrf.mxu0 }
 0xaf9   :  { %v1960_v0 = vadd.f32 %v1959_v12, %v1898_v3  ;;  %v2961_v3 = vld [vmem:[#allocation2 + $0x48] sm:$0xff] }
 0xafa   :  { %v1990_v12 = vadd.f32 %v2961_v3, %v1955_v28 }
 0xafb   :  { %v1992_v38 = vadd.f32 %v2959_v30, %v1960_v0  ;;  %v2963_v0 = vld [vmem:[#allocation2 + $0x90] sm:$0xff] }
 0xb00   :  { %v1901_v40 = vpop.f32.mrf.mxu3  ;;  %v1962_v4 = vpop.f32.mrf.mxu0 }
 0xb01   :  { %v1963_v35 = vadd.f32 %v1962_v4, %v1901_v40  ;;  %v1991_v40 = vadd.f32 %v2960_v2, %v1958_v41 }
 0xb03   :  { %v1993_v24 = vadd.f32 %v2958_v31, %v1963_v35 }
 0xb05   :  { %v2012_v4 = vmax.f32 %v1993_v24, 0.0 }
 0xb08   :  { %v1903_v32 = vpop.f32.mrf.mxu3  ;;  %v1964_v50 = vpop.f32.mrf.mxu0 }
 0xb09   :  { %v1965_v43 = vadd.f32 %v1964_v50, %v1903_v32  ;;  %v2011_v32 = vmax.f32 %v1992_v38, 0.0 }
 0xb0b   :  { %v1994_v25 = vadd.f32 %v2956_v47, %v1965_v43  ;;  %v2008_v43 = vmax.f32 %v1989_v33, 0.0 }
 0xb0d   :  { %v2013_v63 = vmax.f32 %v1994_v25, 0.0 }
 0xb0f   :  { %v2025_v50 = vpack.c.bf16 %v2013_v63, %v2012_v4 }
 0xb10   :  { %v1906_v5 = vpop.f32.mrf.mxu3  ;;  %v1967_v34 = vpop.f32.mrf.mxu0 }
 0xb11   :  { %v1968_v45 = vadd.f32 %v1967_v34, %v1906_v5  ;;  %v2010_v5 = vmax.f32 %v1991_v40, 0.0  ;;  %v2009_v34 = vmax.f32 %v1990_v12, 0.0 }
 0xb13   :  { %v1995_v14 = vadd.f32 %v2955_v61, %v1968_v45  ;;  %v2024_v10 = vpack.c.bf16 %v2011_v32, %v2010_v5 }
 0xb15   :  { %v2014_v26 = vmax.f32 %v1995_v14, 0.0 }
 0xb18   :  { %v1908_v54 = vpop.f32.mrf.mxu3  ;;  %v1969_v8 = vpop.f32.mrf.mxu0 }
 0xb19   :  { %v1970_v29 = vadd.f32 %v1969_v8, %v1908_v54  ;;  %v2023_v54 = vpack.c.bf16 %v2009_v34, %v2008_v43  ;;  %v2974_v43 = vld [vmem:[%s4431_s15 + $0x8] sm:$0xff] }
 0xb1b   :  { %v1996_v9 = vadd.f32 %v2957_v51, %v1970_v29 }
 0xb1d   :  { %v2015_v16 = vmax.f32 %v1996_v9, 0.0  ;;  %v2965_v9 = vld [vmem:[#allocation2 + $0x80] sm:$0xff] }
 0xb1f   :  { %v2026_v59 = vpack.c.bf16 %v2015_v16, %v2014_v26 }
 0xb20   :  { %v1911_v48 = vpop.f32.mrf.mxu3  ;;  %v1972_v1 = vpop.f32.mrf.mxu0 }
 0xb21   :  { %2032 = vmatpush.bf16.msrb.mxu1 %v2026_v59  ;;  %v1973_v29 = vadd.f32 %v1972_v1, %v1911_v48 }
 0xb23   :  { %v1997_v41 = vadd.f32 %v2965_v9, %v1973_v29 }
 0xb25   :  { %2033 = vmatpush.bf16.msrb.mxu1 %v2025_v50  ;;  %v2016_v30 = vmax.f32 %v1997_v41, 0.0 }
 0xb28   :  { %v1913_v39 = vpop.f32.mrf.mxu3  ;;  %v1974_v45 = vpop.f32.mrf.mxu0 }
 0xb29   :  { %2034 = vmatpush.bf16.msrb.mxu1 %v2024_v10  ;;  %v1975_v8 = vadd.f32 %v1974_v45, %v1913_v39 }
 0xb2b   :  { %v1998_v25 = vadd.f32 %v2964_v7, %v1975_v8 }
 0xb2d   :  { %2035 = vmatpush.bf16.msrb.mxu1 %v2023_v54  ;;  %v2017_v24 = vmax.f32 %v1998_v25, 0.0 }
 0xb30   :  { %v1916_v35 = vpop.f32.mrf.mxu3  ;;  %v1977_v61 = vpop.f32.mrf.mxu0 }
 0xb31   :  { %v1978_v14 = vadd.f32 %v1977_v61, %v1916_v35  ;;  %2036 = vmatpush.bf16.msrb.mxu1 %v4208_v62  ;;  %v2027_v62 = vpack.c.bf16 %v2017_v24, %v2016_v30 }
 0xb33   :  { %v1999_v47 = vadd.f32 %v2963_v0, %v1978_v14  ;;  %v2975_v14 = vld [vmem:[%s4431_s15 + $0x10] sm:$0xff] }
 0xb35   :  { %v2018_v51 = vmax.f32 %v1999_v47, 0.0  ;;  %2037 = vmatpush.bf16.msrb.mxu1 %v4206_v37  ;;  %v2966_v37 = vld [vmem:[%s4430_s14 + $0x38] sm:$0xff]  ;;  %v2976_v47 = vld [vmem:[%s4431_s15] sm:$0xff] }
 0xb37   :  { %v2028_v31 = vpack.c.bf16 %v2018_v51, %v2018_v51  ;;  %v2977_v51 = vld [vmem:[%s4431_s15 + $0x18] sm:$0xff] }
 0xb38   :  { %v1918_v26 = vpop.f32.mrf.mxu3  ;;  %v1979_v16 = vpop.f32.mrf.mxu0 }
 0xb39   :  { %2038 = vmatpush.bf16.msrb.mxu1 %v4204_v56  ;;  %v2030_v28 = vsel %vm201_vm1, %v2028_v31, 0  ;;  %v2967_v56 = vld [vmem:[%s4430_s14 + $0x30] sm:$0xff] }
 0xb3a   :  { %2061 = vmatpush.bf16.msra.mxu2 %v2030_v28 }
 0xb3d   :  { %2039 = vmatpush.bf16.msrb.mxu1 %v4200_v57  ;;  %v2968_v57 = vld [vmem:[%s4430_s14 + $0x28] sm:$0xff] }
 0xb3e   :  { %2062 = vmatpush.bf16.msra.mxu2 %v2027_v62 }
 0xb40   :  { %2040 = vmatmul.bf16.vlgmr.msrb.gmra.mxu1 %v4550_v44  ;;  %v2970_v44 = vld [vmem:[%s4430_s14 + $0x18] sm:$0xff] }
 0xb41   :  { %2101 = vmatpush.msra.mxu1 %v2966_v37  ;;  %2749 = vmatmul.msk.bf16.vlgmr.msra.gmra.mxu2 %vm807_vm7, %v4551_v22  ;;  %v2971_v22 = vld [vmem:[%s4430_s14 + $0x10] sm:$0xff] }
 0xb42   :  { %2137 = vmatpush.msrb.mxu2 %v3928_v18  ;;  %v2969_v18 = vld [vmem:[%s4430_s14 + $0x20] sm:$0xff] }
 0xb43   :  { %2102 = vmatpush.msra.mxu1 %v2967_v56  ;;  %v2978_v56 = vld [vmem:[%s4431_s15 + $0x20] sm:$0x3f] }
 0xb44   :  { %2138 = vmatpush.msrb.mxu2 %v3938_v19  ;;  %v2972_v19 = vld [vmem:[%s4430_s14 + $0x8] sm:$0xff] }
 0xb45   :  { %2103 = vmatpush.msra.mxu1 %v2968_v57 }
 0xb46   :  { %2139 = vmatpush.msrb.mxu2 %v3945_v17  ;;  %v2973_v17 = vld [vmem:[%s4430_s14] sm:$0xff] }
 0xb47   :  { %2104 = vmatpush.msra.mxu1 %v2969_v18 }
 0xb48   :  { %2140 = vmatpush.msrb.mxu2 %v3952_v42 }
 0xb49   :  { %2105 = vmatpush.msra.mxu1 %v2970_v44 }
 0xb4b   :  { %2106 = vmatpush.msra.mxu1 %v2971_v22 }
 0xb4d   :  { %2107 = vmatpush.msra.mxu1 %v2972_v19 }
 0xb4f   :  { %2108 = vmatpush.msra.mxu1 %v2973_v17 }
 0xb50   :  { %2045 = vmatmul.bf16.gmra.mxu1 %v4559_v52 }
 0xb51   :  { %2750 = vmatmul.msk.bf16.gmra.mxu2 %vm807_vm7, %v4560_v36 }
 0xb60   :  { %2050 = vmatmul.bf16.gmra.mxu1 %v4561_v11 }
 0xb61   :  { %2751 = vmatmul.msk.bf16.gmra.mxu2 %vm807_vm7, %v4562_v21 }
 0xb71   :  { %2757 = vmatmul.msk.f32.vlgmr.msrb.gmra.mxu2 %vm303_vm3, %v4094_v15 }
 0xb79   :  { %2758 = vmatmul.msk.f32.gmra.mxu2 %vm303_vm3, %v4100_v46 }
 0xb81   :  { %2759 = vmatmul.msk.f32.gmra.mxu2 %vm303_vm3, %v4106_v27 }
 0xb89   :  { %2760 = vmatmul.msk.f32.gmra.mxu2 %vm303_vm3, %v4112_v53 }
 0xb91   :  { %2761 = vmatmul.msk.f32.gmra.mxu2 %vm303_vm3, %v4118_v23 }
 0xbbd   :  { %v2041_v42 = vpop.f32.mrf.mxu1 }
 0xbc4   :  { %v2064_v52 = vpop.f32.mrf.mxu2 }
 0xbc5   :  { %v2065_v36 = vadd.f32 %v2064_v52, %v2041_v42  ;;  %v2043_v11 = vpop.f32.mrf.mxu1 }
 0xbc7   :  { %2752 = vmatmul.msk.f32.vlgmr.msra.gmra.mxu1 %vm279_vm4, %v2065_v36 }
 0xbcc   :  { %v2066_v21 = vpop.f32.mrf.mxu2 }
 0xbcd   :  { %v2067_v15 = vadd.f32 %v2066_v21, %v2043_v11  ;;  %v2046_v38 = vpop.f32.mrf.mxu1 }
 0xbcf   :  { %2753 = vmatmul.msk.f32.gmra.mxu1 %vm279_vm4, %v2067_v15 }
 0xbd4   :  { %v2069_v46 = vpop.f32.mrf.mxu2 }
 0xbd5   :  { %v2070_v63 = vadd.f32 %v2069_v46, %v2046_v38  ;;  %v2048_v27 = vpop.f32.mrf.mxu1 }
 0xbd7   :  { %2754 = vmatmul.msk.f32.gmra.mxu1 %vm279_vm4, %v2070_v63 }
 0xbdc   :  { %v2071_v53 = vpop.f32.mrf.mxu2 }
 0xbdd   :  { %v2072_v59 = vadd.f32 %v2071_v53, %v2048_v27  ;;  %v2051_v48 = vpop.f32.mrf.mxu1 }
 0xbdf   :  { %2755 = vmatmul.msk.f32.gmra.mxu1 %vm279_vm4, %v2072_v59 }
 0xbe4   :  { %v2074_v23 = vpop.f32.mrf.mxu2 }
 0xbe5   :  { %v2075_v1 = vadd.f32 %v2074_v23, %v2051_v48  ;;  %v2053_v2 = vpop.f32.mrf.mxu1 }
 0xbe7   :  { %2756 = vmatmul.msk.f32.gmra.mxu1 %vm279_vm4, %v2075_v1 }
 0xbec   :  { %v2076_v40 = vpop.f32.mrf.mxu2 }
 0xbf4   :  { %v2142_v4 = vpop.f32.mrf.mxu2 }
 0xbf5   :  { %v2143_v10 = vadd.f32 %v4007_v13, %v2142_v4 }
 0xbfc   :  { %v2145_v3 = vpop.f32.mrf.mxu2 }
 0xbfd   :  { %v2146_v60 = vadd.f32 %v4007_v13, %v2145_v3 }
 0xc04   :  { %v2148_v12 = vpop.f32.mrf.mxu2 }
 0xc05   :  { %v2149_v32 = vadd.f32 %v4007_v13, %v2148_v12 }
 0xc07   :  { %2266 = vrot.lane.b32.xlu1 %v2149_v32, %s3005_s27 }
 0xc0c   :  { %v2151_v50 = vpop.f32.mrf.mxu2 }
 0xc0d   :  { %v2152_v33 = vadd.f32 %v4007_v13, %v2151_v50 }
 0xc0f   :  { %2268 = vrot.lane.b32.xlu2 %v2152_v33, %s3005_s27  ;;  %2264 = vrot.lane.b32.xlu1 %v2146_v60, %s3005_s27 }
 0xc14   :  { %v2154_v5 = vpop.f32.mrf.mxu2 }
 0xc15   :  { %v2155_v34 = vadd.f32 %v4007_v13, %v2154_v5 }
 0xc17   :  { %2270 = vrot.lane.b32.xlu0 %v2155_v34, %s3005_s27 }
 0xc1f   :  { %2262 = vrot.lane.b32.xlu0 %v2143_v10, %s3005_s27 }
 0xc44   :  { %v2110_v39 = vpop.f32.mrf.mxu1 }
 0xc45   :  { %v4292_v7 = vadd.f32 %v2976_v47, %v2110_v39 }
 0xc47   :  { %v2157_v24 = vadd.f32 %v2143_v10, %v4292_v7 }
 0xc49   :  { %v2762_v62 = vmul.f32 -1.442695, %v2157_v24 }
 0xc4c   :  { %v2113_v45 = vpop.f32.mrf.mxu1 }
 0xc4d   :  { %v4280_v54 = vadd.f32 %v2974_v43, %v2113_v45 }
 0xc4f   :  { %v2158_v8 = vadd.f32 %v2146_v60, %v4280_v54 }
 0xc51   :  { %v2763_v35 = vmul.f32 -1.442695, %v2158_v8 }
 0xc53   :  { %2886 = vpow2.f32 %v2763_v35 }
 0xc54   :  { %v2116_v61 = vpop.f32.mrf.mxu1 }
 0xc55   :  { %v4286_v29 = vadd.f32 %v2975_v14, %v2116_v61 }
 0xc57   :  { %v2159_v13 = vadd.f32 %v2149_v32, %v4286_v29 }
 0xc59   :  { %v2764_v0 = vmul.f32 -1.442695, %v2159_v13  ;;  %v2887_v41 = vpop.eup %2886 }
 0xc5a   :  { %v4301_v16 = vadd.f32 1.0, %v2887_v41 }
 0xc5b   :  { %2888 = vpow2.f32 %v2764_v0 }
 0xc5c   :  { %v2119_v25 = vpop.f32.mrf.mxu1  ;;  %v2208_v35 = vand.u32 2147483648, %v4301_v16  ;;  %vm2202_vm15 = vweird.f32 %v4301_v16  ;;  %v2206_v0 = vand.u32 2147483647, %v4301_v16 }
 0xc5d   :  { %v4297_v9 = vadd.f32 %v2977_v51, %v2119_v25 }
 0xc5e   :  { %vm2207_vm2 = vcmp.eq.f32.partialorder %v2206_v0, 8.507059e+37 }
 0xc5f   :  { %v2160_v31 = vadd.f32 %v2152_v33, %v4297_v9 }
 0xc61   :  { %v2889_v26 = vpop.eup %2888  ;;  %v2765_v28 = vmul.f32 -1.442695, %v2160_v31  ;;  %v2209_v31 = vor.u32 1.1754944e-38, %v2208_v35 }
 0xc62   :  { %v2179_v30 = vadd.f32 1.0, %v2889_v26 }
 0xc63   :  { %2890 = vpow2.f32 %v2765_v28 }
 0xc64   :  { %2892 = vrcp.f32 %v2179_v30  ;;  %v2122_v37 = vpop.f32.mrf.mxu1  ;;  %v2223_v23 = vand.u32 2147483648, %v2179_v30  ;;  %vm2217_vm4 = vweird.f32 %v2179_v30  ;;  %v2221_v1 = vand.u32 2147483647, %v2179_v30 }
 0xc65   :  { %2894 = vrcp.f32 %v4301_v16  ;;  %v4307_v57 = vadd.f32 %v2978_v56, %v2122_v37 }
 0xc66   :  { %2896 = vpow2.f32 %v2762_v62  ;;  %v2224_v50 = vor.u32 1.1754944e-38, %v2223_v23  ;;  %vm2222_vm10 = vcmp.eq.f32.partialorder %v2221_v1, 8.507059e+37 }
 0xc67   :  { %v2161_v18 = vadd.f32 %v2155_v34, %v4307_v57 }
 0xc69   :  { %v2891_v44 = vpop.eup %2890  ;;  %v2766_v22 = vmul.f32 -1.442695, %v2161_v18  ;;  %v2269_v14 = vpop.permute.xlu2 %2268 }
 0xc6a   :  { %v2893_v19 = vpop.eup %2892  ;;  %v2180_v17 = vadd.f32 1.0, %v2891_v44 }
 0xc6b   :  { %v4310_v42 = vpop.eup %2894  ;;  %2898 = vpow2.f32 %v2766_v22  ;;  %v2213_v52 = vmul.f32 %v2893_v19, %v2179_v30  ;;  %vm2218_vm1 = vweird.f32 %v2893_v19 }
 0xc6c   :  { %2900 = vrcp.f32 %v2180_v17  ;;  %v2897_v11 = vpop.eup %2896  ;;  %v2198_v21 = vmul.f32 %v4310_v42, %v4301_v16  ;;  %vm2219_vm8 = vmor %vm2217_vm4, %vm2218_vm1  ;;  %v2238_v40 = vand.u32 2147483648, %v2180_v17  ;;  %v2236_v32 = vand.u32 2147483647, %v2180_v17 }
 0xc6d   :  { %v2214_v36 = vsub.f32 1.0, %v2213_v52  ;;  %v4314_v46 = vadd.f32 1.0, %v2897_v11  ;;  %vm2232_vm11 = vweird.f32 %v2180_v17  ;;  %vm2203_vm13 = vweird.f32 %v4310_v42 }
 0xc6e   :  { %v2199_v59 = vsub.f32 1.0, %v2198_v21  ;;  %v2239_v10 = vor.u32 1.1754944e-38, %v2238_v40  ;;  %vm2237_vm14 = vcmp.eq.f32.partialorder %v2236_v32, 8.507059e+37  ;;  %vm2204_vm0 = vmor %vm2202_vm15, %vm2203_vm13 }
 0xc6f   :  { %v2215_v15 = vmul.f32 %v2893_v19, %v2214_v36  ;;  %v2193_v36 = vand.u32 2147483648, %v4314_v46  ;;  %v2191_v11 = vand.u32 2147483647, %v4314_v46 }
 0xc70   :  { %v2200_v3 = vmul.f32 %v4310_v42, %v2199_v59 }
 0xc71   :  { %v2899_v38 = vpop.eup %2898  ;;  %v2216_v53 = vadd.f32 %v2893_v19, %v2215_v15  ;;  %v2194_v15 = vor.u32 1.1754944e-38, %v2193_v36  ;;  %vm2192_vm13 = vcmp.eq.f32.partialorder %v2191_v11, 8.507059e+37 }
 0xc72   :  { %v2901_v63 = vpop.eup %2900  ;;  %v4316_v27 = vadd.f32 1.0, %v2899_v38  ;;  %v2201_v45 = vadd.f32 %v4310_v42, %v2200_v3 }
 0xc73   :  { %v2228_v48 = vmul.f32 %v2901_v63, %v2180_v17  ;;  %v2220_v4 = vsel %vm2219_vm8, %v2893_v19, %v2216_v53  ;;  %vm2233_vm9 = vweird.f32 %v2901_v63 }
 0xc74   :  { %2902 = vrcp.f32 %v4316_v27  ;;  %v4321_v5 = vsel %vm2222_vm10, %v2224_v50, %v2220_v4  ;;  %vm2234_vm12 = vmor %vm2232_vm11, %vm2233_vm9  ;;  %v2205_v51 = vsel %vm2204_vm0, %v4310_v42, %v2201_v45  ;;  %v2253_v37 = vand.u32 2147483648, %v4316_v27 }
 0xc75   :  { %2904 = vrcp.f32 %v4314_v46  ;;  %v2229_v2 = vsub.f32 1.0, %v2228_v48  ;;  %v4337_v28 = vsel %vm2207_vm2, %v2209_v31, %v2205_v51  ;;  %vm2247_vm4 = vweird.f32 %v4316_v27 }
 0xc76   :  { %v2251_v56 = vand.u32 2147483647, %v4316_v27  ;;  %v2254_v22 = vor.u32 1.1754944e-38, %v2253_v37  ;;  %vm2187_vm11 = vweird.f32 %v4314_v46  ;;  %v2313_v45 = vsub.f32 1.0, %v4337_v28 }
 0xc77   :  { %v2230_v12 = vmul.f32 %v2901_v63, %v2229_v2  ;;  %v2344_v51 = vmul.f32 %v4321_v5, %v4073_v6 }
 0xc78   :  { %vm2252_vm9 = vcmp.eq.f32.partialorder %v2251_v56, 8.507059e+37  ;;  %v2812_v56 = vld [vmem:[%s4421_s5 + $0x10] sm:$0xff] }
 0xc79   :  { %v2231_v60 = vadd.f32 %v2901_v63, %v2230_v12  ;;  %v2267_v33 = vpop.permute.xlu1 %2266 }
 0xc7a   :  { %v2903_v34 = vpop.eup %2902  ;;  %v2279_v39 = vmul.f32 %v2267_v33, %v4321_v5 }
 0xc7b   :  { %v2905_v43 = vpop.eup %2904  ;;  %v2235_v8 = vsel %vm2234_vm12, %v2901_v63, %v2231_v60  ;;  %v2243_v61 = vmul.f32 %v2903_v34, %v4316_v27  ;;  %vm2248_vm1 = vweird.f32 %v2903_v34 }
 0xc7c   :  { %v4328_v13 = vsel %vm2237_vm14, %v2239_v10, %v2235_v8  ;;  %2291 = vrot.lane.b32.xlu0 %v2279_v39, %s3005_s27  ;;  %v2183_v41 = vmul.f32 %v2905_v43, %v4314_v46  ;;  %vm2249_vm8 = vmor %vm2247_vm4, %vm2248_vm1  ;;  %vm2188_vm10 = vweird.f32 %v2905_v43 }
 0xc7d   :  { %v2280_v47 = vmul.f32 %v2269_v14, %v4328_v13  ;;  %v2244_v25 = vsub.f32 1.0, %v2243_v61  ;;  %vm2189_vm12 = vmor %vm2187_vm11, %vm2188_vm10 }
 0xc7e   :  { %v2184_v16 = vsub.f32 1.0, %v2183_v41 }
 0xc7f   :  { %2293 = vrot.lane.b32.xlu1 %v2280_v47, %s3005_s27  ;;  %v2245_v24 = vmul.f32 %v2903_v34, %v2244_v25  ;;  %v2343_v47 = vmul.f32 %v4337_v28, %v4085_v20  ;;  %v2315_v25 = vsub.f32 1.0, %v4328_v13 }
 0xc80   :  { %v2185_v44 = vmul.f32 %v2905_v43, %v2184_v16 }
 0xc81   :  { %v2265_v26 = vpop.permute.xlu1 %2264  ;;  %v2246_v62 = vadd.f32 %v2903_v34, %v2245_v24 }
 0xc82   :  { %v2278_v30 = vmul.f32 %v2265_v26, %v4337_v28  ;;  %v2186_v52 = vadd.f32 %v2905_v43, %v2185_v44  ;;  %v2345_v26 = vmul.f32 %v4328_v13, %v4078_v55  ;;  %v2810_v55 = vld [vmem:[%s4421_s5] sm:$0xff]  ;;  %v2811_v13 = vld [vmem:[%s4421_s5 + $0x8] sm:$0xff] }
 0xc83   :  { %v2250_v18 = vsel %vm2249_vm8, %v2903_v34, %v2246_v62 }
 0xc84   :  { %2289 = vrot.lane.b32.xlu0 %v2278_v30, %s3005_s27  ;;  %v2255_v17 = vsel %vm2252_vm9, %v2254_v22, %v2250_v18  ;;  %v2190_v21 = vsel %vm2189_vm12, %v2905_v43, %v2186_v52  ;;  %v2314_v43 = vsub.f32 1.0, %v4321_v5  ;;  %v2423_v52 = vld [vmem:[%s4422_s6] sm:$0xff] }
 0xc85   :  { %v2195_v63 = vsel %vm2192_vm13, %v2194_v15, %v2190_v21  ;;  %v2316_v60 = vsub.f32 1.0, %v2255_v17  ;;  %v2346_v33 = vmul.f32 %v2255_v17, %v4090_v49  ;;  %v2424_v15 = vld [vmem:[%s4422_s6 + $0x8] sm:$0xff] }
 0xc86   :  { %v2312_v35 = vsub.f32 1.0, %v2195_v63  ;;  %v2342_v61 = vmul.f32 %v2195_v63, %v4066_v58 }
 0xc89   :  { %v2271_v19 = vpop.permute.xlu0 %2270 }
 0xc8a   :  { %v2281_v42 = vmul.f32 %v2271_v19, %v2255_v17 }
 0xc8c   :  { %2295 = vrot.lane.b32.xlu2 %v2281_v42, %s3005_s27 }
 0xc91   :  { %v2263_v38 = vpop.permute.xlu0 %2262 }
 0xc92   :  { %v2277_v27 = vmul.f32 %v2263_v38, %v2195_v63 }
 0xc94   :  { %2287 = vrot.lane.b32.xlu2 %v2277_v27, %s3005_s27 }
 0xce6   :  { %v2296_v53 = vpop.permute.xlu2 %2295 }
 0xce7   :  { %v2306_v59 = vadd.f32 %v2296_v53, %v4307_v57  ;;  %v2425_v53 = vld [vmem:[%s4422_s6 + $0x10] sm:$0xff]  ;;  %s3008_s6 = smov [#allocation3]  }
 0xce8   :  { %s2499_s14 = sshll.u32 %s3008_s6, 4  ;;  %s2500_s14 = int_to_ptr.vmem [resolvable:$true] %s2499_s14 }
 0xce9   :  { %2906 = vtanh.f32 %v2306_v59 }
 0xcee   :  { %v2292_v48 = vpop.permute.xlu0 %2291  ;;  %v2288_v23 = vpop.permute.xlu2 %2287 }
 0xcef   :  { %v2907_v1 = vpop.eup %2906  ;;  %v2304_v2 = vadd.f32 %v2292_v48, %v4286_v29  ;;  %v2302_v46 = vadd.f32 %v2288_v23, %v4292_v7 }
 0xcf0   :  { %2330 = vrot.lane.b32.xlu1 %v2907_v1, %s3007_s24  ;;  %v2480_v1 = vld [vmem:[%s4423_s7 + $0x8] sm:$0xff] }
 0xcf1   :  { %2908 = vtanh.f32 %v2304_v2  ;;  %v2294_v40 = vpop.permute.xlu1 %2293 }
 0xcf2   :  { %2910 = vtanh.f32 %v2302_v46  ;;  %v2305_v4 = vadd.f32 %v2294_v40, %v4297_v9  ;;  %v2479_v46 = vld [vmem:[%s4423_s7] sm:$0xff] }
 0xcf4   :  { %2912 = vtanh.f32 %v2305_v4 }
 0xcf6   :  { %v2290_v3 = vpop.permute.xlu0 %2289 }
 0xcf7   :  { %v2909_v12 = vpop.eup %2908  ;;  %v2303_v57 = vadd.f32 %v2290_v3, %v4280_v54  ;;  %v2481_v3 = vld [vmem:[%s4423_s7 + $0x10] sm:$0xff] }
 0xcf8   :  { %v2911_v32 = vpop.eup %2910  ;;  %2326 = vrot.lane.b32.xlu2 %v2909_v12, %s3007_s24 }
 0xcf9   :  { %2914 = vtanh.f32 %v2303_v57  ;;  %2322 = vrot.lane.b32.xlu1 %v2911_v32, %s3007_s24 }
 0xcfa   :  { %v2913_v29 = vpop.eup %2912 }
 0xcfb   :  { %2328 = vrot.lane.b32.xlu0 %v2913_v29, %s3007_s24 }
 0xcff   :  { %v2915_v7 = vpop.eup %2914 }
 0xd00   :  { %2324 = vrot.lane.b32.xlu2 %v2915_v7, %s3007_s24 }
 0xd52   :  { %v2327_v50 = vpop.permute.xlu2 %2326 }
 0xd53   :  { %v2339_v0 = vmul.f32 %v2327_v50, %v2314_v43 }
 0xd55   :  { %v2349_v62 = vadd.f32 %v2344_v51, %v2339_v0 }
 0xd5a   :  { %v2325_v54 = vpop.permute.xlu2 %2324 }
 0xd5b   :  { %v2338_v8 = vmul.f32 %v2325_v54, %v2313_v45 }
 0xd5d   :  { %v2348_v31 = vadd.f32 %v2343_v47, %v2338_v8 }
 0xd62   :  { %v2331_v9 = vpop.permute.xlu1 %2330 }
 0xd63   :  { %v2341_v34 = vmul.f32 %v2331_v9, %v2316_v60 }
 0xd65   :  { %v2351_v10 = vadd.f32 %v2346_v33, %v2341_v34 }
 0xd67   :  { %v2360_v39 = vpack.c.bf16 %v2351_v10, %v2351_v10 }
 0xd69   :  { %2383 = vrot.lane.b32.xlu0 %v2360_v39, %s3007_s24 }
 0xd6b   :  { %v2323_v14 = vpop.permute.xlu1 %2322 }
 0xd6c   :  { %v2337_v49 = vmul.f32 %v2323_v14, %v2312_v35 }
 0xd6d   :  { %v2329_v41 = vpop.permute.xlu0 %2328 }
 0xd6e   :  { %v2347_v24 = vadd.f32 %v2342_v61, %v2337_v49  ;;  %v2340_v30 = vmul.f32 %v2329_v41, %v2315_v25 }
 0xd70   :  { %v2350_v58 = vadd.f32 %v2345_v26, %v2340_v30  ;;  %v2358_v16 = vpack.c.bf16 %v2348_v31, %v2347_v24 }
 0xd72   :  { %2379 = vrot.lane.b32.xlu2 %v2358_v16, %s3007_s24  ;;  %v2359_v37 = vpack.c.bf16 %v2350_v58, %v2349_v62 }
 0xd74   :  { %2381 = vrot.lane.b32.xlu1 %v2359_v37, %s3007_s24 }
 0xdcc   :  { %v2380_v5 = vpop.permute.xlu2 %2379 }
 0xddb   :  { %v2384_v20 = vpop.permute.xlu0 %2383 }
 0xddc   :  { %v2397_v28 = vsel %vm510_vm5, %v2384_v20, 0 }
 0xddd   :  { %2404 = vmatpush.bf16.msrb.mxu1 %v2397_v28 }
 0xde6   :  { %v2382_v6 = vpop.permute.xlu1 %2381 }
 0xde7   :  { %2405 = vmatpush.bf16.msrb.mxu1 %v2382_v6 }
 0xdeb   :  { %2406 = vmatpush.bf16.msrb.mxu1 %v2380_v5 }
 0xdee   :  { %2779 = vmatmul.msk.bf16.vlgmr.msrb.gmra.mxu1 %vm479_vm6, %v2810_v55 }
 0xdfe   :  { %2780 = vmatmul.msk.bf16.gmra.mxu1 %vm479_vm6, %v2811_v13 }
 0xe0e   :  { %2781 = vmatmul.msk.bf16.gmra.mxu1 %vm479_vm6, %v2812_v56 }
 0xe6b   :  { %v2408_v18 = vpop.f32.mrf.mxu1 }
 0xe73   :  { %v2410_v44 = vpop.f32.mrf.mxu1 }
 0xe7b   :  { %v2413_v22 = vpop.f32.mrf.mxu1 }
 0xe83   :  { %v2415_v19 = vpop.f32.mrf.mxu1 }
 0xe8b   :  { %v2418_v17 = vpop.f32.mrf.mxu1 }
 0xe93   :  { %v2420_v42 = vpop.f32.mrf.mxu1 }
 0xe94   :  { %2782 = vmatpush.xpose.msk.msra.mxu2 %vm303_vm3, %v2420_v42 }
 0xe98   :  { %2783 = vmatpush.xpose.msk.msra.mxu2 %vm303_vm3, %v2418_v17 }
 0xe9c   :  { %2784 = vmatpush.xpose.msk.msra.mxu2 %vm303_vm3, %v2415_v19 }
 0xe9f   :  { %2785 = vmatmul.msk.f32.vlgmr.msra.gmra.mxu2 %vm303_vm3, %v2408_v18 }
 0xea7   :  { %2786 = vmatmul.msk.f32.gmra.mxu2 %vm303_vm3, %v2410_v44 }
 0xeaf   :  { %2787 = vmatmul.msk.f32.gmra.mxu2 %vm303_vm3, %v2413_v22 }
 0xf22   :  { %v2461_v36 = vpop.f32.mrf.mxu2 }
 0xf23   :  { %v2462_v11 = vadd.f32 %v2461_v36, %v2423_v52 }
 0xf25   :  { %v2470_v21 = vsel %vm807_vm7, %v2462_v11, -inf }
 0xf26   :  { %2471 = vmax.xlane.f32.xlu0 %v2470_v21 }
 0xf2a   :  { %v2464_v38 = vpop.f32.mrf.mxu2 }
 0xf2b   :  { %v2465_v63 = vadd.f32 %v2464_v38, %v2424_v15 }
 0xf2d   :  { %v2473_v27 = vsel %vm807_vm7, %v2465_v63, -inf }
 0xf2e   :  { %2474 = vmax.xlane.f32.xlu1 %v2473_v27 }
 0xf32   :  { %v2467_v59 = vpop.f32.mrf.mxu2 }
 0xf33   :  { %v2468_v48 = vadd.f32 %v2467_v59, %v2425_v53 }
 0xf35   :  { %v2476_v23 = vsel %vm807_vm7, %v2468_v48, -inf }
 0xf36   :  { %2477 = vmax.xlane.f32.xlu2 %v2476_v23 }
 0xf99   :  { %v2472_v40 = vpop.xlane.xlu0 %2471 }
 0xf9a   :  { %v2482_v12 = vmul.f32 %v2479_v46, %v2472_v40 }
 0xfa1   :  { %v2475_v2 = vpop.xlane.xlu1 %2474 }
 0xfa2   :  { %v2483_v4 = vmul.f32 %v2480_v1, %v2475_v2 }
 0xfa4   :  { %v2485_v32 = vadd.f32 %v2483_v4, %v2482_v12 }
 0xfa9   :  { %v2478_v57 = vpop.xlane.xlu2 %2477 }
 0xfaa   :  { %v2484_v29 = vmul.f32 %v2481_v3, %v2478_v57 }
 0xfac   :  { %v2486_v7 = vadd.f32 %v2485_v32, %v2484_v29 }
 0xfae   :  { %v2487_v50 = vrot.slane %v2486_v7, 4 }
 0xfb0   :  { %v2488_v60 = vadd.f32 %v2487_v50, %v2486_v7 }
 0xfb2   :  { %v2489_v9 = vrot.slane %v2488_v60, 2 }
 0xfb4   :  { %v2490_v33 = vadd.f32 %v2489_v9, %v2488_v60 }
 0xfb6   :  { %v2491_v34 = vrot.slane %v2490_v33, 1 }
 0xfb8   :  { %v2492_v10 = vadd.f32 %v2491_v34, %v2490_v33 }
 0xfba   :  { %2493 = vst [vmem:[#allocation3] sm:$0x1] %v2492_v10 }
 0xfbb   :  { %2504 = dma.vmem_to_hbm [thread:$0]  %s2500_s14, 16, %s2502_s23, [#allocation4]  }
 0xfbc   :  { %3003 = dma.done.wait [#allocation4], 16  }
 0xfbd   :  { %3004 = vsyncadd [#allocation4], 4294967280 }
 0xfbe   :  { %2509 = vsyncpa [#allocation4], 1 }

</bundles_post_ra>
